<compile_context>
chip_gen: v7x
topology: tpu7x:2x2x1
jax: 0.10.0
libtpu: 0.0.40
codegen_flags: <defaults>
</compile_context>

<pallas_src>
import functools

import jax
import jax.numpy as jnp
from jax.experimental import pallas as pl
from jax.experimental.pallas import tpu as pltpu


def _round_up(x, m):
    return (x + m - 1) // m * m


def _nbytes(a):
    return int(a.size) * a.dtype.itemsize


# ----------------------------- Pallas kernel ------------------------------- #
def _fused_gnn_kernel(h0_ref, astack_ref, deg_ref, bedge_ref, wcat_ref,
                      wgru_ref, bgru_ref, out_ref, *, num_edge_types,
                      num_propagations):
    """One GNN block (all propagation steps); node state resident in out_ref across grid.

    h0_ref     : [NP, HP]       f32   initial node states (consumed only at grid step 0)
    astack_ref : [E, NP, NP]    bf16  dense adjacency, adj[e, tgt, src]
    deg_ref    : [NP, EP]       f32   per-edge-type in-degree (A_e @ 1), E padded to EP
    bedge_ref  : [1, EP, HP]    f32   per-edge-type message bias for this block
    wcat_ref   : [1, HP, E*HP]  bf16  [W_0^T | ... | W_{E-1}^T]
    wgru_ref   : [1, 2*HP, 4*HP] bf16 [Wir|Wiz|Win|0 ; Whr|Whz|0|Whn] (transposed gates)
    bgru_ref   : [1, 1, 4*HP]   f32   [bir+bhr | biz+bhz | bin | bhn]
    out_ref    : [NP, HP]       f32   resident node state / final output
    """
    blk = pl.program_id(0)

    @pl.when(blk == 0)
    def _():
        out_ref[...] = h0_ref[...]

    _, hp = out_ref.shape
    wcat = wcat_ref[0]                                                 # (HP, E*HP) bf16
    wgru = wgru_ref[0]                                                 # (2*HP, 4*HP) bf16
    bgru = bgru_ref[0]                                                 # (1, 4*HP) f32
    # sum_e (A_e @ 1) b_e^T -- constant across the propagation steps of this block.
    msg_bias = jnp.dot(deg_ref[...], bedge_ref[0],
                       preferred_element_type=jnp.float32)             # (NP, HP)

    def step(_, h):
        # --- relational message passing ('sum' aggregation) -----------------
        hw = jnp.dot(h.astype(jnp.bfloat16), wcat,
                     preferred_element_type=jnp.float32)               # (NP, E*HP)
        hw = hw.astype(jnp.bfloat16)
        msgs = msg_bias
        for e in range(num_edge_types):                                # lane-aligned slices
            msgs = msgs + jnp.dot(astack_ref[e], hw[:, e * hp:(e + 1) * hp],
                                  preferred_element_type=jnp.float32)

        # --- GRU cell (torch.nn.GRUCell, gate order r, z, n): one K=2*HP matmul
        gin = jnp.concatenate([msgs.astype(jnp.bfloat16),
                               h.astype(jnp.bfloat16)], axis=-1)       # (NP, 2*HP)
        gates = jnp.dot(gin, wgru, preferred_element_type=jnp.float32) + bgru
        r = jax.nn.sigmoid(gates[:, :hp])
        z = jax.nn.sigmoid(gates[:, hp:2 * hp])
        n = jnp.tanh(gates[:, 2 * hp:3 * hp] + r * gates[:, 3 * hp:])
        return (1.0 - z) * n + z * h                                   # f32 carry

    h = jax.lax.fori_loop(0, num_propagations, step, out_ref[...], unroll=True)
    out_ref[...] = h.astype(out_ref.dtype)


# ----------------------------- host-side packing --------------------------- #
def build_adjacency(edge_lists, num_nodes, num_nodes_padded):
    """edge_lists: list of [2, num_edges] int arrays -> [E, NP, NP] f32, adj[e, tgt, src]."""
    del num_nodes  # only the padded extent is materialized; extra rows/cols stay zero
    mats = []
    for el in edge_lists:
        src, tgt = el[0], el[1]
        a = jnp.zeros((num_nodes_padded, num_nodes_padded), jnp.float32)
        a = a.at[tgt, src].add(1.0)
        mats.append(a)
    return jnp.stack(mats, axis=0)


def _pack_params(params, h, hp, ep, num_edge_types):
    """Pad to lane-dense HP, transpose to (in, out) layout, stack per block."""
    e = num_edge_types
    pad2 = ((0, hp - h), (0, hp - h))
    zeros_hp = jnp.zeros((hp, hp), jnp.float32)
    wcat_l, bedge_l, wgru_l, bgru_l = [], [], [], []

    def gate_t(w, g):                       # torch [3H, H] gate g -> padded W_g^T (HP, HP)
        return jnp.pad(w[g * h:(g + 1) * h, :].T, pad2)

    def gate_b(b, g):                       # torch [3H] gate g -> padded (HP,)
        return jnp.pad(b[g * h:(g + 1) * h], (0, hp - h))

    for (w_edge, b_edge, w_ih, b_ih, w_hh, b_hh) in params:
        # message weights: Wcat[in, e*HP + out] = W_e[out, in]
        w_t = jnp.pad(jnp.transpose(w_edge, (0, 2, 1)), ((0, 0),) + pad2)   # (E, HP, HP)
        wcat_l.append(jnp.transpose(w_t, (1, 0, 2)).reshape(hp, e * hp))
        bedge_l.append(jnp.pad(b_edge, ((0, ep - e), (0, hp - h))))          # (EP, HP)

        top = jnp.concatenate([gate_t(w_ih, 0), gate_t(w_ih, 1),
                               gate_t(w_ih, 2), zeros_hp], axis=1)           # (HP, 4*HP)
        bot = jnp.concatenate([gate_t(w_hh, 0), gate_t(w_hh, 1),
                               zeros_hp, gate_t(w_hh, 2)], axis=1)           # (HP, 4*HP)
        wgru_l.append(jnp.concatenate([top, bot], axis=0))                   # (2*HP, 4*HP)
        bgru_l.append(jnp.concatenate(
            [gate_b(b_ih, 0) + gate_b(b_hh, 0),
             gate_b(b_ih, 1) + gate_b(b_hh, 1),
             gate_b(b_ih, 2), gate_b(b_hh, 2)]).reshape(1, 4 * hp))

    stack = lambda xs, dt: jnp.stack(xs, axis=0).astype(dt)
    return (stack(wcat_l, jnp.bfloat16), stack(bedge_l, jnp.float32),
            stack(wgru_l, jnp.bfloat16), stack(bgru_l, jnp.float32))


# ----------------------------- forward pass -------------------------------- #
def stacked_relational_gnn(node_states, edge_lists, params, num_propagations=1):
    """Forward pass of StackedRelationalGNN (eval mode, aggr='sum')."""
    n_nodes, hidden = node_states.shape
    num_blocks = len(params)
    num_edge_types = len(edge_lists)
    hp = _round_up(hidden, 128)
    np_ = _round_up(n_nodes, 128)       # lane-dense: adjacency keeps N as its last dim
    ep = _round_up(num_edge_types, 8)

    adj = build_adjacency(edge_lists, n_nodes, np_)                    # (E, NP, NP) f32
    deg_t = jnp.pad(jnp.transpose(jnp.sum(adj, axis=-1)),
                    ((0, 0), (0, ep - num_edge_types)))                # (NP, EP)
    astack = adj.astype(jnp.bfloat16)                                  # counts: exact in bf16

    wcat, bedge, wgru, bgru = _pack_params(params, hidden, hp, ep, num_edge_types)
    h0 = jnp.pad(node_states.astype(jnp.float32),
                 ((0, np_ - n_nodes), (0, hp - hidden)))

    blk3 = lambda b: (b, 0, 0)
    const2 = lambda b: (0, 0)
    const3 = lambda b: (0, 0, 0)

    # advisory cost estimate (per-block weights are visited exactly once each)
    flops_blk = (num_propagations * 2 *
                 (np_ * hp * num_edge_types * hp            # h @ Wcat
                  + num_edge_types * np_ * np_ * hp         # A_e @ hw_e
                  + np_ * 2 * hp * 4 * hp)                  # fused GRU matmul
                 + 2 * np_ * ep * hp)                       # deg_t @ b_edge
    trans_blk = num_propagations * 3 * np_ * hp
    bytes_total = (_nbytes(h0) + _nbytes(astack) + _nbytes(deg_t) + np_ * hp * 4
                   + _nbytes(wcat) + _nbytes(bedge) + _nbytes(wgru) + _nbytes(bgru))

    # VMEM budget: constant-index inputs + output (double-buffered by default),
    # double-buffered per-block weights, in-kernel temporaries, headroom.
    resident = 2 * (_nbytes(h0) + _nbytes(astack) + _nbytes(deg_t)) + 2 * np_ * hp * 4
    per_block = (_nbytes(wcat) + _nbytes(bedge) + _nbytes(wgru)
                 + _nbytes(bgru)) // num_blocks
    temporaries = np_ * (num_edge_types + 8) * hp * 4
    vmem_limit = int(min(100 * 1024 * 1024,
                         resident + 2 * per_block + 2 * temporaries + (16 << 20)))

    kernel = functools.partial(_fused_gnn_kernel,
                               num_edge_types=num_edge_types,
                               num_propagations=num_propagations)
    out = pl.pallas_call(
        kernel,
        out_shape=jax.ShapeDtypeStruct((np_, hp), jnp.float32),
        grid_spec=pltpu.PrefetchScalarGridSpec(
            num_scalar_prefetch=0,
            grid=(num_blocks,),
            in_specs=[
                pl.BlockSpec((np_, hp), const2),                        # h0
                pl.BlockSpec((num_edge_types, np_, np_), const3),       # astack
                pl.BlockSpec((np_, ep), const2),                        # deg_t
                pl.BlockSpec((1, ep, hp), blk3),                        # b_edge
                pl.BlockSpec((1, hp, num_edge_types * hp), blk3),       # Wcat
                pl.BlockSpec((1, 2 * hp, 4 * hp), blk3),                # W_gru (fused)
                pl.BlockSpec((1, 1, 4 * hp), blk3),                     # b_gru (fused)
            ],
            out_specs=pl.BlockSpec((np_, hp), const2),
        ),
        compiler_params=pltpu.CompilerParams(
            dimension_semantics=("arbitrary",),
            vmem_limit_bytes=vmem_limit),
        cost_estimate=pl.CostEstimate(
            flops=num_blocks * flops_blk,
            transcendentals=num_blocks * trans_blk,
            bytes_accessed=int(bytes_total)),
    )(h0, astack, deg_t, bedge, wcat, wgru, bgru)
    return out[:n_nodes, :hidden]


# ----------------------------- parameter init ------------------------------ #
def _xavier_uniform(key, shape):
    fan_out, fan_in = shape[-2], shape[-1]
    limit = (6.0 / (fan_in + fan_out)) ** 0.5
    return jax.random.uniform(key, shape, jnp.float32, -limit, limit)


def _orthogonal(key, shape):
    a = jax.random.normal(key, shape, jnp.float32)
    q, r = jnp.linalg.qr(a)
    return q * jnp.sign(jnp.diagonal(r))


def init_stacked_gnn_params(key, hidden_dim, num_edge_types, num_gnn_blocks):
    """Torch-layout params mirroring RelationalGatedGraphConv.reset_parameters()."""
    h, e = hidden_dim, num_edge_types
    params = []
    for b in range(num_gnn_blocks):
        kb = jax.random.fold_in(key, b)
        k_edge, k_ih, k_hh = jax.random.split(kb, 3)
        w_edge = _xavier_uniform(k_edge, (e, h, h))           # [E, out, in]
        b_edge = jnp.zeros((e, h), jnp.float32)
        w_ih = _xavier_uniform(k_ih, (3 * h, h))              # [3H, H]
        w_hh = _orthogonal(k_hh, (3 * h, h))                  # [3H, H]
        b_ih = jnp.zeros((3 * h,), jnp.float32)
        b_hh = jnp.zeros((3 * h,), jnp.float32)
        params.append((w_edge, b_edge, w_ih, b_ih, w_hh, b_hh))
    return params


# ----------------------------- pure-JAX reference -------------------------- #
def _reference(node_states, edge_lists, params, num_propagations=1):
    num_nodes, hidden = node_states.shape
    adj = build_adjacency(edge_lists, num_nodes, num_nodes)
    h = node_states
    for (w_edge, b_edge, w_ih, b_ih, w_hh, b_hh) in params:
        for _ in range(num_propagations):
            msgs = jnp.zeros_like(h)
            for e in range(adj.shape[0]):
                msgs = msgs + adj[e] @ (h @ w_edge[e].T + b_edge[e][None, :])
            gi = msgs @ w_ih.T + b_ih[None, :]
            gh = h @ w_hh.T + b_hh[None, :]
            i_r, i_z, i_n = gi[:, :hidden], gi[:, hidden:2 * hidden], gi[:, 2 * hidden:]
            h_r, h_z, h_n = gh[:, :hidden], gh[:, hidden:2 * hidden], gh[:, 2 * hidden:]
            r = jax.nn.sigmoid(i_r + h_r)
            z = jax.nn.sigmoid(i_z + h_z)
            n = jnp.tanh(i_n + r * h_n)
            h = (1.0 - z) * n + z * h
    return h


if __name__ == "__main__":
    HIDDEN_DIM = 32
    NUM_EDGE_TYPES = 3
    NUM_GNN_BLOCKS = 2
    NUM_PROPAGATIONS = 2
    NUM_NODES = 16
    EDGES_PER_TYPE = 10

    key = jax.random.PRNGKey(0)
    k_nodes, k_edges, k_params = jax.random.split(key, 3)

    node_states = jax.random.normal(k_nodes, (NUM_NODES, HIDDEN_DIM), jnp.float32)
    edge_lists = [
        jax.random.randint(jax.random.fold_in(k_edges, e),
                           (2, EDGES_PER_TYPE), 0, NUM_NODES, jnp.int32)
        for e in range(NUM_EDGE_TYPES)
    ]
    params = init_stacked_gnn_params(k_params, HIDDEN_DIM, NUM_EDGE_TYPES, NUM_GNN_BLOCKS)

    out = stacked_relational_gnn(node_states, edge_lists, params,
                                 num_propagations=NUM_PROPAGATIONS)
    out = jax.block_until_ready(out)

    ref = _reference(node_states, edge_lists, params,
                     num_propagations=NUM_PROPAGATIONS)
    assert out.shape == (NUM_NODES, HIDDEN_DIM)
    # Tolerance accounts for bf16 MXU operands (f32 accumulation) over
    # num_blocks * num_propagations sequential GNN/GRU steps.
    assert jnp.allclose(out, ref, rtol=5e-2, atol=5e-2)

    print("KERNEL_OK")
</pallas_src>

<mosaic_0001>
module attributes {stable_mosaic.version = 11 : i64} {
  func.func @_fused_gnn_kernel(%arg0: i32, %arg1: memref<128x128xf32, #tpu.memory_space<vmem>>, %arg2: memref<3x128x128xbf16, #tpu.memory_space<vmem>>, %arg3: memref<128x8xf32, #tpu.memory_space<vmem>>, %arg4: memref<1x8x128xf32, #tpu.memory_space<vmem>>, %arg5: memref<1x128x384xbf16, #tpu.memory_space<vmem>>, %arg6: memref<1x256x512xbf16, #tpu.memory_space<vmem>>, %arg7: memref<1x1x512xf32, #tpu.memory_space<vmem>>, %arg8: memref<128x128xf32, #tpu.memory_space<vmem>>) attributes {dimension_semantics = [#tpu.dimension_semantics<arbitrary>], iteration_bounds = array<i64: 2>, scalar_prefetch = 0 : i64, scratch_operands = 0 : i64, tpu.core_type = #tpu.core_type<tc>, window_params = [{pipeline_mode = #tpu.pipeline_mode<synchronous>, transform_indices = @transform_0, window_bounds = array<i64: 128, 128>}, {pipeline_mode = #tpu.pipeline_mode<synchronous>, transform_indices = @transform_1, window_bounds = array<i64: 3, 128, 128>}, {pipeline_mode = #tpu.pipeline_mode<synchronous>, transform_indices = @transform_2, window_bounds = array<i64: 128, 8>}, {transform_indices = @transform_3, window_bounds = array<i64: 1, 8, 128>}, {transform_indices = @transform_4, window_bounds = array<i64: 1, 128, 384>}, {transform_indices = @transform_5, window_bounds = array<i64: 1, 256, 512>}, {transform_indices = @transform_6, window_bounds = array<i64: 1, 1, 512>}, {pipeline_mode = #tpu.pipeline_mode<synchronous>, transform_indices = @transform_7, window_bounds = array<i64: 128, 128>}]} {
    %c0_i32 = arith.constant 0 : i32
    %0 = arith.cmpi eq, %arg0, %c0_i32 : i32
    %1 = arith.extui %0 : i1 to i32
    %c0_i32_0 = arith.constant 0 : i32
    %2 = arith.cmpi ne, %1, %c0_i32_0 : i32
    scf.if %2 {
      %c0_51 = arith.constant 0 : index
      %c0_52 = arith.constant 0 : index
      %107 = vector.load %arg1[%c0_51, %c0_52] : memref<128x128xf32, #tpu.memory_space<vmem>>, vector<128x128xf32>
      %c0_53 = arith.constant 0 : index
      %c0_54 = arith.constant 0 : index
      %108 = vector.load %arg8[%c0_53, %c0_54] : memref<128x128xf32, #tpu.memory_space<vmem>>, vector<128x128xf32>
      tpu.vector_store %arg8[%c0_53, %c0_54], %107 {strides = array<i32>} : memref<128x128xf32, #tpu.memory_space<vmem>>, vector<128x128xf32>,
    } else {
    }
    %c0 = arith.constant 0 : index
    %c0_1 = arith.constant 0 : index
    %c0_2 = arith.constant 0 : index
    %3 = vector.load %arg5[%c0, %c0_1, %c0_2] : memref<1x128x384xbf16, #tpu.memory_space<vmem>>, vector<1x128x384xbf16>
    %4 = vector.shape_cast %3 : vector<1x128x384xbf16> to vector<128x384xbf16>
    %c0_3 = arith.constant 0 : index
    %c0_4 = arith.constant 0 : index
    %c0_5 = arith.constant 0 : index
    %5 = vector.load %arg6[%c0_3, %c0_4, %c0_5] : memref<1x256x512xbf16, #tpu.memory_space<vmem>>, vector<1x256x512xbf16>
    %6 = vector.shape_cast %5 : vector<1x256x512xbf16> to vector<256x512xbf16>
    %c0_6 = arith.constant 0 : index
    %c0_7 = arith.constant 0 : index
    %c0_8 = arith.constant 0 : index
    %7 = vector.load %arg7[%c0_6, %c0_7, %c0_8] : memref<1x1x512xf32, #tpu.memory_space<vmem>>, vector<1x1x512xf32>
    %8 = vector.shape_cast %7 : vector<1x1x512xf32> to vector<1x512xf32>
    %c0_9 = arith.constant 0 : index
    %c0_10 = arith.constant 0 : index
    %9 = vector.load %arg3[%c0_9, %c0_10] : memref<128x8xf32, #tpu.memory_space<vmem>>, vector<128x8xf32>
    %c0_11 = arith.constant 0 : index
    %c0_12 = arith.constant 0 : index
    %c0_13 = arith.constant 0 : index
    %10 = vector.load %arg4[%c0_11, %c0_12, %c0_13] : memref<1x8x128xf32, #tpu.memory_space<vmem>>, vector<1x8x128xf32>
    %11 = vector.shape_cast %10 : vector<1x8x128xf32> to vector<8x128xf32>
    %cst = arith.constant dense<0.000000e+00> : vector<128x128xf32>
    %12 = tpu.matmul %9, %11, %cst {dimension_numbers = #tpu.dot_dimension_numbers<[1], [0], [0], [1], [0, 0, 1, 1], [], []>} : vector<128x8xf32>, vector<8x128xf32>, vector<128x128xf32> -> vector<128x128xf32>
    %c0_14 = arith.constant 0 : index
    %c0_15 = arith.constant 0 : index
    %13 = vector.load %arg8[%c0_14, %c0_15] : memref<128x128xf32, #tpu.memory_space<vmem>>, vector<128x128xf32>
    %c0_i32_16 = arith.constant 0 : i32
    %14 = arith.truncf %13 : vector<128x128xf32> to vector<128x128xbf16>
    %cst_17 = arith.constant dense<0.000000e+00> : vector<128x384xf32>
    %15 = tpu.matmul %14, %4, %cst_17 {dimension_numbers = #tpu.dot_dimension_numbers<[1], [0], [0], [1], [0, 0, 1, 1], [], []>} : vector<128x128xbf16>, vector<128x384xbf16>, vector<128x384xf32> -> vector<128x384xf32>
    %16 = arith.truncf %15 : vector<128x384xf32> to vector<128x384xbf16>
    %c0_18 = arith.constant 0 : index
    %c0_19 = arith.constant 0 : index
    %c0_20 = arith.constant 0 : index
    %17 = vector.load %arg2[%c0_18, %c0_19, %c0_20] : memref<3x128x128xbf16, #tpu.memory_space<vmem>>, vector<1x128x128xbf16>
    %18 = vector.shape_cast %17 : vector<1x128x128xbf16> to vector<128x128xbf16>
    %19 = vector.extract_strided_slice %16 {offsets = [0, 0], sizes = [128, 128], strides = [1, 1]} : vector<128x384xbf16> to vector<128x128xbf16>
    %cst_21 = arith.constant dense<0.000000e+00> : vector<128x128xf32>
    %20 = tpu.matmul %18, %19, %cst_21 {dimension_numbers = #tpu.dot_dimension_numbers<[1], [0], [0], [1], [0, 0, 1, 1], [], []>} : vector<128x128xbf16>, vector<128x128xbf16>, vector<128x128xf32> -> vector<128x128xf32>
    %21 = arith.addf %12, %20 : vector<128x128xf32>
    %c1 = arith.constant 1 : index
    %c0_22 = arith.constant 0 : index
    %c0_23 = arith.constant 0 : index
    %22 = vector.load %arg2[%c1, %c0_22, %c0_23] : memref<3x128x128xbf16, #tpu.memory_space<vmem>>, vector<1x128x128xbf16>
    %23 = vector.shape_cast %22 : vector<1x128x128xbf16> to vector<128x128xbf16>
    %24 = vector.extract_strided_slice %16 {offsets = [0, 128], sizes = [128, 128], strides = [1, 1]} : vector<128x384xbf16> to vector<128x128xbf16>
    %cst_24 = arith.constant dense<0.000000e+00> : vector<128x128xf32>
    %25 = tpu.matmul %23, %24, %cst_24 {dimension_numbers = #tpu.dot_dimension_numbers<[1], [0], [0], [1], [0, 0, 1, 1], [], []>} : vector<128x128xbf16>, vector<128x128xbf16>, vector<128x128xf32> -> vector<128x128xf32>
    %26 = arith.addf %21, %25 : vector<128x128xf32>
    %c2 = arith.constant 2 : index
    %c0_25 = arith.constant 0 : index
    %c0_26 = arith.constant 0 : index
    %27 = vector.load %arg2[%c2, %c0_25, %c0_26] : memref<3x128x128xbf16, #tpu.memory_space<vmem>>, vector<1x128x128xbf16>
    %28 = vector.shape_cast %27 : vector<1x128x128xbf16> to vector<128x128xbf16>
    %29 = vector.extract_strided_slice %16 {offsets = [0, 256], sizes = [128, 128], strides = [1, 1]} : vector<128x384xbf16> to vector<128x128xbf16>
    %cst_27 = arith.constant dense<0.000000e+00> : vector<128x128xf32>
    %30 = tpu.matmul %28, %29, %cst_27 {dimension_numbers = #tpu.dot_dimension_numbers<[1], [0], [0], [1], [0, 0, 1, 1], [], []>} : vector<128x128xbf16>, vector<128x128xbf16>, vector<128x128xf32> -> vector<128x128xf32>
    %31 = arith.addf %26, %30 : vector<128x128xf32>
    %32 = arith.truncf %31 : vector<128x128xf32> to vector<128x128xbf16>
    %33 = arith.truncf %13 : vector<128x128xf32> to vector<128x128xbf16>
    %34 = tpu.concatenate %32, %33 in 1 : vector<128x128xbf16>, vector<128x128xbf16> -> vector<128x256xbf16>
    %cst_28 = arith.constant dense<0.000000e+00> : vector<128x512xf32>
    %35 = tpu.matmul %34, %6, %cst_28 {dimension_numbers = #tpu.dot_dimension_numbers<[1], [0], [0], [1], [0, 0, 1, 1], [], []>} : vector<128x256xbf16>, vector<256x512xbf16>, vector<128x512xf32> -> vector<128x512xf32>
    %36 = vector.broadcast %8 : vector<1x512xf32> to vector<128x512xf32>
    %37 = arith.addf %35, %36 : vector<128x512xf32>
    %38 = vector.extract_strided_slice %37 {offsets = [0, 0], sizes = [128, 128], strides = [1, 1]} : vector<128x512xf32> to vector<128x128xf32>
    %39 = arith.negf %38 : vector<128x128xf32>
    %40 = math.exp %39 : vector<128x128xf32>
    %cst_29 = arith.constant 1.000000e+00 : f32
    %41 = vector.broadcast %cst_29 : f32 to vector<128x128xf32>
    %42 = arith.addf %41, %40 : vector<128x128xf32>
    %43 = arith.divf %41, %42 : vector<128x128xf32>
    %44 = vector.extract_strided_slice %37 {offsets = [0, 128], sizes = [128, 128], strides = [1, 1]} : vector<128x512xf32> to vector<128x128xf32>
    %45 = arith.negf %44 : vector<128x128xf32>
    %46 = math.exp %45 : vector<128x128xf32>
    %cst_30 = arith.constant 1.000000e+00 : f32
    %47 = vector.broadcast %cst_30 : f32 to vector<128x128xf32>
    %48 = arith.addf %47, %46 : vector<128x128xf32>
    %49 = arith.divf %47, %48 : vector<128x128xf32>
    %50 = vector.extract_strided_slice %37 {offsets = [0, 256], sizes = [128, 128], strides = [1, 1]} : vector<128x512xf32> to vector<128x128xf32>
    %51 = vector.extract_strided_slice %37 {offsets = [0, 384], sizes = [128, 128], strides = [1, 1]} : vector<128x512xf32> to vector<128x128xf32>
    %52 = arith.mulf %43, %51 : vector<128x128xf32>
    %53 = arith.addf %50, %52 : vector<128x128xf32>
    %54 = math.tanh %53 : vector<128x128xf32>
    %cst_31 = arith.constant 1.000000e+00 : f32
    %55 = vector.broadcast %cst_31 : f32 to vector<128x128xf32>
    %56 = arith.subf %55, %49 : vector<128x128xf32>
    %57 = arith.mulf %56, %54 : vector<128x128xf32>
    %58 = arith.mulf %49, %13 : vector<128x128xf32>
    %59 = arith.addf %57, %58 : vector<128x128xf32>
    %c1_i32 = arith.constant 1 : i32
    %60 = arith.truncf %59 : vector<128x128xf32> to vector<128x128xbf16>
    %cst_32 = arith.constant dense<0.000000e+00> : vector<128x384xf32>
    %61 = tpu.matmul %60, %4, %cst_32 {dimension_numbers = #tpu.dot_dimension_numbers<[1], [0], [0], [1], [0, 0, 1, 1], [], []>} : vector<128x128xbf16>, vector<128x384xbf16>, vector<128x384xf32> -> vector<128x384xf32>
    %62 = arith.truncf %61 : vector<128x384xf32> to vector<128x384xbf16>
    %c0_33 = arith.constant 0 : index
    %c0_34 = arith.constant 0 : index
    %c0_35 = arith.constant 0 : index
    %63 = vector.load %arg2[%c0_33, %c0_34, %c0_35] : memref<3x128x128xbf16, #tpu.memory_space<vmem>>, vector<1x128x128xbf16>
    %64 = vector.shape_cast %63 : vector<1x128x128xbf16> to vector<128x128xbf16>
    %65 = vector.extract_strided_slice %62 {offsets = [0, 0], sizes = [128, 128], strides = [1, 1]} : vector<128x384xbf16> to vector<128x128xbf16>
    %cst_36 = arith.constant dense<0.000000e+00> : vector<128x128xf32>
    %66 = tpu.matmul %64, %65, %cst_36 {dimension_numbers = #tpu.dot_dimension_numbers<[1], [0], [0], [1], [0, 0, 1, 1], [], []>} : vector<128x128xbf16>, vector<128x128xbf16>, vector<128x128xf32> -> vector<128x128xf32>
    %67 = arith.addf %12, %66 : vector<128x128xf32>
    %c1_37 = arith.constant 1 : index
    %c0_38 = arith.constant 0 : index
    %c0_39 = arith.constant 0 : index
    %68 = vector.load %arg2[%c1_37, %c0_38, %c0_39] : memref<3x128x128xbf16, #tpu.memory_space<vmem>>, vector<1x128x128xbf16>
    %69 = vector.shape_cast %68 : vector<1x128x128xbf16> to vector<128x128xbf16>
    %70 = vector.extract_strided_slice %62 {offsets = [0, 128], sizes = [128, 128], strides = [1, 1]} : vector<128x384xbf16> to vector<128x128xbf16>
    %cst_40 = arith.constant dense<0.000000e+00> : vector<128x128xf32>
    %71 = tpu.matmul %69, %70, %cst_40 {dimension_numbers = #tpu.dot_dimension_numbers<[1], [0], [0], [1], [0, 0, 1, 1], [], []>} : vector<128x128xbf16>, vector<128x128xbf16>, vector<128x128xf32> -> vector<128x128xf32>
    %72 = arith.addf %67, %71 : vector<128x128xf32>
    %c2_41 = arith.constant 2 : index
    %c0_42 = arith.constant 0 : index
    %c0_43 = arith.constant 0 : index
    %73 = vector.load %arg2[%c2_41, %c0_42, %c0_43] : memref<3x128x128xbf16, #tpu.memory_space<vmem>>, vector<1x128x128xbf16>
    %74 = vector.shape_cast %73 : vector<1x128x128xbf16> to vector<128x128xbf16>
    %75 = vector.extract_strided_slice %62 {offsets = [0, 256], sizes = [128, 128], strides = [1, 1]} : vector<128x384xbf16> to vector<128x128xbf16>
    %cst_44 = arith.constant dense<0.000000e+00> : vector<128x128xf32>
    %76 = tpu.matmul %74, %75, %cst_44 {dimension_numbers = #tpu.dot_dimension_numbers<[1], [0], [0], [1], [0, 0, 1, 1], [], []>} : vector<128x128xbf16>, vector<128x128xbf16>, vector<128x128xf32> -> vector<128x128xf32>
    %77 = arith.addf %72, %76 : vector<128x128xf32>
    %78 = arith.truncf %77 : vector<128x128xf32> to vector<128x128xbf16>
    %79 = arith.truncf %59 : vector<128x128xf32> to vector<128x128xbf16>
    %80 = tpu.concatenate %78, %79 in 1 : vector<128x128xbf16>, vector<128x128xbf16> -> vector<128x256xbf16>
    %cst_45 = arith.constant dense<0.000000e+00> : vector<128x512xf32>
    %81 = tpu.matmul %80, %6, %cst_45 {dimension_numbers = #tpu.dot_dimension_numbers<[1], [0], [0], [1], [0, 0, 1, 1], [], []>} : vector<128x256xbf16>, vector<256x512xbf16>, vector<128x512xf32> -> vector<128x512xf32>
    %82 = vector.broadcast %8 : vector<1x512xf32> to vector<128x512xf32>
    %83 = arith.addf %81, %82 : vector<128x512xf32>
    %84 = vector.extract_strided_slice %83 {offsets = [0, 0], sizes = [128, 128], strides = [1, 1]} : vector<128x512xf32> to vector<128x128xf32>
    %85 = arith.negf %84 : vector<128x128xf32>
    %86 = math.exp %85 : vector<128x128xf32>
    %cst_46 = arith.constant 1.000000e+00 : f32
    %87 = vector.broadcast %cst_46 : f32 to vector<128x128xf32>
    %88 = arith.addf %87, %86 : vector<128x128xf32>
    %89 = arith.divf %87, %88 : vector<128x128xf32>
    %90 = vector.extract_strided_slice %83 {offsets = [0, 128], sizes = [128, 128], strides = [1, 1]} : vector<128x512xf32> to vector<128x128xf32>
    %91 = arith.negf %90 : vector<128x128xf32>
    %92 = math.exp %91 : vector<128x128xf32>
    %cst_47 = arith.constant 1.000000e+00 : f32
    %93 = vector.broadcast %cst_47 : f32 to vector<128x128xf32>
    %94 = arith.addf %93, %92 : vector<128x128xf32>
    %95 = arith.divf %93, %94 : vector<128x128xf32>
    %96 = vector.extract_strided_slice %83 {offsets = [0, 256], sizes = [128, 128], strides = [1, 1]} : vector<128x512xf32> to vector<128x128xf32>
    %97 = vector.extract_strided_slice %83 {offsets = [0, 384], sizes = [128, 128], strides = [1, 1]} : vector<128x512xf32> to vector<128x128xf32>
    %98 = arith.mulf %89, %97 : vector<128x128xf32>
    %99 = arith.addf %96, %98 : vector<128x128xf32>
    %100 = math.tanh %99 : vector<128x128xf32>
    %cst_48 = arith.constant 1.000000e+00 : f32
    %101 = vector.broadcast %cst_48 : f32 to vector<128x128xf32>
    %102 = arith.subf %101, %95 : vector<128x128xf32>
    %103 = arith.mulf %102, %100 : vector<128x128xf32>
    %104 = arith.mulf %95, %59 : vector<128x128xf32>
    %105 = arith.addf %103, %104 : vector<128x128xf32>
    %c0_49 = arith.constant 0 : index
    %c0_50 = arith.constant 0 : index
    %106 = vector.load %arg8[%c0_49, %c0_50] : memref<128x128xf32, #tpu.memory_space<vmem>>, vector<128x128xf32>
    tpu.vector_store %arg8[%c0_49, %c0_50], %105 {strides = array<i32>} : memref<128x128xf32, #tpu.memory_space<vmem>>, vector<128x128xf32>,
    return
  }
  func.func @transform_0(%arg0: i32) -> (i32, i32) {
    %c0_i32 = arith.constant 0 : i32
    %c0_i32_0 = arith.constant 0 : i32
    %c0_i32_1 = arith.constant 0 : i32
    return %c0_i32, %c0_i32_0 : i32, i32
  }
  func.func @transform_1(%arg0: i32) -> (i32, i32, i32) {
    %c0_i32 = arith.constant 0 : i32
    %c0_i32_0 = arith.constant 0 : i32
    %c0_i32_1 = arith.constant 0 : i32
    %c0_i32_2 = arith.constant 0 : i32
    return %c0_i32, %c0_i32_0, %c0_i32_1 : i32, i32, i32
  }
  func.func @transform_2(%arg0: i32) -> (i32, i32) {
    %c0_i32 = arith.constant 0 : i32
    %c0_i32_0 = arith.constant 0 : i32
    %c0_i32_1 = arith.constant 0 : i32
    return %c0_i32, %c0_i32_0 : i32, i32
  }
  func.func @transform_3(%arg0: i32) -> (i32, i32, i32) {
    %c0_i32 = arith.constant 0 : i32
    %c0_i32_0 = arith.constant 0 : i32
    %c0_i32_1 = arith.constant 0 : i32
    return %arg0, %c0_i32, %c0_i32_0 : i32, i32, i32
  }
  func.func @transform_4(%arg0: i32) -> (i32, i32, i32) {
    %c0_i32 = arith.constant 0 : i32
    %c0_i32_0 = arith.constant 0 : i32
    %c0_i32_1 = arith.constant 0 : i32
    return %arg0, %c0_i32, %c0_i32_0 : i32, i32, i32
  }
  func.func @transform_5(%arg0: i32) -> (i32, i32, i32) {
    %c0_i32 = arith.constant 0 : i32
    %c0_i32_0 = arith.constant 0 : i32
    %c0_i32_1 = arith.constant 0 : i32
    return %arg0, %c0_i32, %c0_i32_0 : i32, i32, i32
  }
  func.func @transform_6(%arg0: i32) -> (i32, i32, i32) {
    %c0_i32 = arith.constant 0 : i32
    %c0_i32_0 = arith.constant 0 : i32
    %c0_i32_1 = arith.constant 0 : i32
    return %arg0, %c0_i32, %c0_i32_0 : i32, i32, i32
  }
  func.func @transform_7(%arg0: i32) -> (i32, i32) {
    %c0_i32 = arith.constant 0 : i32
    %c0_i32_0 = arith.constant 0 : i32
    %c0_i32_1 = arith.constant 0 : i32
    return %c0_i32, %c0_i32_0 : i32, i32
  }
}

</mosaic_0001>

<bundles_post_ra>
// kernel: tpu_custom_call.1
= control target key start
LH: loop header
LB: loop body
LE: loop exit
PB: predicated region body
PF: predicated region fallthrough
CT: control target
= control target key end

     0   :  { %12 = vsyncpa [#allocation3], 0  ;;  %s6722_s0 = inlined_call_operand.vmem [shape: f32[128,128], index: 0, kind: input, shape index: {}]   ;;  %s6723_s1 = inlined_call_operand.hbm [shape: bf16[3,128,128], index: 1, kind: input, shape index: {}]   ;;  %s6724_s2 = inlined_call_operand.vmem [shape: f32[128,8], index: 2, kind: input, shape index: {}]   ;;  %s6725_s3 = inlined_call_operand.vmem [shape: f32[2,8,128], index: 3, kind: input, shape index: {}]   ;;  %s6726_s4 = inlined_call_operand.hbm [shape: bf16[2,128,384], index: 4, kind: input, shape index: {}]   ;;  %s6727_s5 = inlined_call_operand.hbm [shape: bf16[2,256,512], index: 5, kind: input, shape index: {}]   ;;  %s6728_s6 = inlined_call_operand.vmem [shape: f32[2,1,512], index: 6, kind: input, shape index: {}]   ;;  %s6729_s7 = inlined_call_operand.hbm [shape: f32[128,128], index: 7, kind: output, shape index: {}]  }
   0x1   :  { %13 = vsyncpa [#allocation6], 0 }
   0x2   :  { %15 = vsyncpa [#allocation6 + $0x1], 0 }
   0x3   :  { %16 = vsyncpa [#allocation4], 0  ;;  %s5336_s24 = smov 0   ;;  %s5338_s25 = smov 0  }
   0x4   :  { %s5340_s26 = smov 0   ;;  %s5342_s27 = smov 0  }
   0x5 LB: > { %s5357_s28 = sadd.s32 1, %s5281_s27   ;;  %s118_s29 = sadd.s32 1, %s5277_s26  ;;  %s5281_s27 = sphi %s5342_s27, %s6827_s27   ;;  %s5277_s26 = sphi %s5340_s26, %s6826_s26   ;;  %s5273_s25 = sphi %s5338_s25, %s6825_s25   ;;  %s5269_s24 = sphi %s5336_s24, %s6824_s24  }
   0x6   : > { %s115_s30 = ssub.s32 %s5281_s27, %s5357_s28  ;;  %p125_p0 = scmp.ne.s32.totalorder %s5277_s26, %s5273_s25 }
   0x7   : > { %p116_p1 = scmp.eq.s32.totalorder %s115_s30, 0  ;;  %p126_p2 = scmp.eq.s32.totalorder %s5281_s27, 0 }
   0x8   : > { %p4525_p3 = scmp.lt.s32.totalorder %s5281_s27, 2  ;;  %s254_s9 = sand.u32 1, %s5281_s27  }
   0x9   : > { %s5367_s8 = scalar_select %p116_p1, %s5277_s26, %s118_s29  }
   0xa   : > { %p127_p4 = por %p126_p2, %p125_p0  ;;  %s256_s10 = sand.u32 1, %s5277_s26  }
   0xb   : > { %s4498_s11 = smul.u32 192, %s256_s10  ;;  %s5385_s19 = scalar_lea.sflag [#allocation6], %s254_s9 }
   0xc   : > { %p5373_p5 = pnand %p4525_p3, %p127_p4  ;;  %s4499_s13 = smul.u32 3072, %s5281_s27 }
   0xd   : > { %s258_s17 = scalar_lea.vmem [#allocation5], %s4498_s11  ;;  %s5130_s23 = scalar_lea.hbm %s6726_s4, 6144 }
   0xe   : > { %s6763_s12 = scalar_select %p5373_p5, 1, 0 }
   0xf   : > { %s5381_s16 = scalar_lea.hbm %s6726_s4, %s4499_s13  ;;  %s265_s18 = sshll.u32 %s258_s17, 4  ;;  %s5383_s18 = int_to_ptr.vmem [resolvable:$true] %s265_s18 }
  0x10   : > { %s5125_s20 = scalar_lea.hbm %s5381_s16, 3072  ;;  %p6731_p7 = pneg %p5373_p5 }
  0x11   : > { %p5126_p6 = scmp.ne.s32.totalorder %s5381_s16, %s5125_s20  ;;  %p5131_p10 = scmp.lt.u32.totalorder %s5381_s16, %s6726_s4 }
  0x12   : > { %p5132_p11 = scmp.lt.u32.totalorder %s5130_s23, %s5125_s20  ;;  %p5134_p13 = scmp.lt.u32.totalorder %s5125_s20, %s5381_s16 }
  0x13   : > { %p5128_p8 = pnand %p6731_p7, %p5126_p6 }
  0x14   : > { %p5133_p12 = por %p5132_p11, %p5131_p10 }
  0x15   : > { %p5129_p9 = pneg %p5128_p8 }
  0x16   : > { %p5135_p0 = por %p5134_p13, %p5133_p12 }
  0x18   : > { %p5136_p1 = pnand %p5135_p0, %p5129_p9 }
  0x1a   : > { %5139 = shalt.err (!%p5136_p1)
}
  0x1b   : > { %s5140_s9 = scalar_lea.vmem %s5383_s18, 3072  ;;  %s5283_s11 = smov [#allocation5]  }
  0x1c   : > { %p5141_p2 = scmp.ne.s32.totalorder %s5383_s18, %s5140_s9  ;;  %s5145_s13 = sshll.u32 %s5283_s11, 4  ;;  %s5146_s13 = int_to_ptr.vmem [resolvable:$false] %s5145_s13 }
  0x1d   : > { %s5147_s14 = scalar_lea.vmem %s5146_s13, 6144  ;;  %p5148_p6 = scmp.lt.s32.totalorder %s5383_s18, %s5146_s13 }
  0x1e   : > { %p5143_p3 = pnand %p5141_p2, %p6731_p7  ;;  %p5149_p8 = scmp.lt.s32.totalorder %s5147_s14, %s5140_s9 }
  0x20   : > { %p5144_p4 = pneg %p5143_p3  ;;  %p5150_p10 = por %p5149_p8, %p5148_p6 }
  0x22   : > { %p5151_p11 = pnand %p5150_p10, %p5144_p4 }
  0x24   : > { %5154 = shalt.err (!%p5151_p11)
}
  0x25   : > { %s5284_s15 = smov 192   ;;  %s5285_s17 = smov 12  }
  0x26   : > { %4520 = dma.hbm_to_vmem [thread:$0]  (!%p5373_p5), %s5381_s16, 3072, %s5383_s18, %s5385_s19, %s5284_s15, %s5284_s15, %s5285_s17  }
  0x27   : > { %s3769_s20 = sshll.u32 %s256_s10, 9  ;;  %s5416_s21 = sadd.s32 4294967295, %s5281_s27  }
  0x28   : > { %p131_p9 = scmp.ne.s32.totalorder %s5273_s25, %s5269_s24  ;;  %p6730_p12 = scmp.eq.s32.totalorder %s5416_s21, 0 }
  0x29   : > { %p3765_p13 = scmp.ge.s32.totalorder %s5281_s27, 1  ;;  %p215_p0 = scmp.lt.s32.totalorder %s5281_s27, 3 }
  0x2a   : > { %p5426_p2 = por %p6730_p12, %p131_p9  ;;  %s5286_s10 = smov [#allocation2]  }
  0x2b   : > { %p5430_p3 = pnand %p3765_p13, %p215_p0  ;;  %s230_s18 = sshll.u32 %s5286_s10, 4  ;;  %s5434_s18 = int_to_ptr.vmem [resolvable:$true] %s230_s18 }
  0x2c   : > { %s6764_s22 = scalar_select %p5426_p2, 1, 0 }
  0x2d   : > { %s6765_s16 = scalar_select %p5430_p3, 1, 0 }
  0x2e   : > { %p4513_p4 = pneg %p5430_p3  ;;  %s3974_s24 = sshll.u32 %s5281_s27, 13 }
  0x2f   : > { %s279_s23 = scalar_lea.vmem [#allocation7], %s3769_s20  ;;  %s5448_s13 = scalar_lea.hbm %s6727_s5, %s3974_s24 }
  0x30   : > { %s286_s29 = sshll.u32 %s279_s23, 4  ;;  %p5441_p6 = pnand %p4513_p4, %p6730_p12  ;;  %s5450_s29 = int_to_ptr.vmem [resolvable:$true] %s286_s29 }
  0x31   : > { %s5155_s17 = scalar_lea.hbm %s6723_s1, 3072 }
  0x32   : > { %p5156_p8 = scmp.ne.s32.totalorder %s6723_s1, %s5155_s17  ;;  %p5157_p10 = pneg %p5441_p6 }
  0x33   : > { %p5162_p13 = scmp.lt.u32.totalorder %s5155_s17, %s6723_s1 }
  0x34   : > { %p5158_p11 = pnand %p5157_p10, %p5156_p8 }
  0x36   : > { %p5159_p9 = pneg %p5158_p11 }
  0x38   : > { %p5164_p0 = pnand %p5162_p13, %p5159_p9 }
  0x3a   : > { %5167 = shalt.err (!%p5164_p0)
}
  0x3b   : > { %s5168_s24 = scalar_lea.vmem %s5434_s18, 3072  ;;  %p5176_p7 = scmp.lt.s32.totalorder %s5434_s18, %s5434_s18 }
  0x3c   : > { %p5169_p4 = scmp.ne.s32.totalorder %s5434_s18, %s5168_s24  ;;  %p5177_p2 = scmp.lt.s32.totalorder %s5168_s24, %s5168_s24 }
  0x3e   : > { %p5171_p1 = pnand %p5169_p4, %p5157_p10  ;;  %p5178_p3 = por %p5177_p2, %p5176_p7 }
  0x40   : > { %p5172_p12 = pneg %p5171_p1 }
  0x42   : > { %p5179_p5 = pnand %p5178_p3, %p5172_p12 }
  0x44   : > { %5182 = shalt.err (!%p5179_p5)
}
  0x45   : > { %s5287_s9 = smov 64   ;;  %s5288_s11 = smov 4  }
  0x46   : > { %4516 = dma.hbm_to_vmem [thread:$0]  (!%p5441_p6), %s6723_s1, 3072, %s5434_s18, [#allocation3], %s5287_s9, %s5287_s9, %s5288_s11  }
  0x47   : > { %s5183_s17 = scalar_lea.hbm %s5448_s13, 8192  ;;  %p6767_p8 = scmp.ne.s32.totalorder %s6763_s12, 0 }
  0x48   : > { %p5184_p1 = scmp.ne.s32.totalorder %s5448_s13, %s5183_s17  ;;  %s5188_s10 = scalar_lea.hbm %s6727_s5, 16384 }
  0x49   : > { %p6768_p7 = pneg %p6767_p8  ;;  %p5189_p2 = scmp.lt.u32.totalorder %s5448_s13, %s6727_s5 }
  0x4a   : > { %p5190_p3 = scmp.lt.u32.totalorder %s5188_s10, %s5183_s17  ;;  %p5192_p11 = scmp.lt.u32.totalorder %s5183_s17, %s5448_s13 }
  0x4b   : > { %p5186_p12 = pnand %p5184_p1, %p6768_p7 }
  0x4c   : > { %p5191_p10 = por %p5190_p3, %p5189_p2 }
  0x4d   : > { %p5187_p5 = pneg %p5186_p12 }
  0x4e   : > { %p5193_p9 = por %p5192_p11, %p5191_p10 }
  0x50   : > { %p5194_p13 = pnand %p5193_p9, %p5187_p5 }
  0x52   : > { %5197 = shalt.err (!%p5194_p13)
}
  0x53   : > { %s5198_s18 = scalar_lea.vmem %s5450_s29, 8192  ;;  %p6769_p0 = pmov %p6768_p7 }
  0x54   : > { %p5199_p6 = scmp.ne.s32.totalorder %s5450_s29, %s5198_s18  ;;  %s5289_s30 = smov [#allocation7]  }
  0x55   : > { %s5203_s9 = sshll.u32 %s5289_s30, 4  ;;  %s5204_s9 = int_to_ptr.vmem [resolvable:$false] %s5203_s9 }
  0x56   : > { %p5201_p4 = pnand %p5199_p6, %p6769_p0  ;;  %s5205_s11 = scalar_lea.vmem %s5204_s9, 16384 }
  0x57   : > { %p5206_p7 = scmp.lt.s32.totalorder %s5450_s29, %s5204_s9  ;;  %p5207_p12 = scmp.lt.s32.totalorder %s5205_s11, %s5198_s18 }
  0x58   : > { %p5202_p1 = pneg %p5201_p4 }
  0x59   : > { %p5208_p2 = por %p5207_p12, %p5206_p7 }
  0x5b   : > { %p5209_p3 = pnand %p5208_p2, %p5202_p1 }
  0x5d   : > { %5212 = shalt.err (!%p5209_p3)
}
  0x5e   : > { %s5290_s14 = smov 256   ;;  %s5291_s15 = smov 16  }
  0x5f   : > { %4523 = dma.hbm_to_vmem [thread:$0]  (!%p6767_p8), %s5448_s13, 8192, %s5450_s29, %s5385_s19, %s5290_s14, %s5290_s14, %s5291_s15  }
  0x60   : > { %p6770_p5 = scmp.ne.s32.totalorder %s6765_s16, 0 }
  0x62   : > { %305 = sbr.rel (%p6770_p5) target bundleno = 1950 (0x79e), region = 48 }
  0x69   : > { %p6771_p10 = scmp.eq.s32.totalorder %s5416_s21, 0 }
  0x6b   : > { %5256 = dma.done.wait (%p6771_p10), [#allocation3], 3072   ;;  %p6772_p11 = pmov %p6771_p10 }
  0x6c   : > { %s311_s17 = sand.u32 1, %s5416_s21   ;;  %s313_s27 = sand.u32 1, %s5273_s25  }
  0x6d   : > { %5258 = vsyncadd (%p6772_p11), [#allocation3], 4294964224  ;;  %s4500_s20 = smul.u32 192, %s313_s27  ;;  %s312_s10 = scalar_lea.sflag [#allocation6], %s311_s17 }
  0x6e   : > { %p6773_p9 = scmp.ne.s32.totalorder %s6764_s22, 0 }
  0x6f   : > { %s5505_s23 = scalar_lea.vmem [#allocation5], %s4500_s20 }
  0x70   : > { %5260 = dma.done.wait (%p6773_p9), %s312_s10, 11264  }
  0x71   : > { %5262 = vsyncadd (%p6773_p9), %s312_s10, 4294956032  ;;  %s3774_s12 = sshll.u32 %s313_s27, 9  ;;  %p363_p8 = scmp.lt.s32.totalorder %s5416_s21, 1 }
  0x72   : > { %s5523_s14 = scalar_lea.vmem [#allocation7], %s3774_s12  ;;  %p6774_p13 = scmp.ne.s32.totalorder %s5416_s21, 0 }
  0x73   : > { %s364_s19 = scalar_select %p363_p8, %s5416_s21, 1 }
  0x74   : > { %375 = sbr.rel (%p6774_p13) target bundleno = 125 (0x7d), region = 64  ;;  %v376_v0 = vld [vmem:[%s6722_s0] sm:$0xff] (!%p6774_p13)  ;;  %v377_v1 = vld [vmem:[%s6722_s0 + $0x8] sm:$0xff] (!%p6774_p13)  ;;  %v378_v2 = vld [vmem:[%s6722_s0 + $0x10] sm:$0xff] (!%p6774_p13) }
  0x75   : > { %s3775_s16 = sshll.u32 %s364_s19, 3  ;;  %s3776_s29 = sshll.u32 %s364_s19, 2  ;;  %392 = vst [vmem:[#allocation8] sm:$0xff] (!%p6774_p13), %v376_v0  ;;  %393 = vst [vmem:[#allocation8 + $0x8] sm:$0xff] (!%p6774_p13), %v377_v1  ;;  %v379_v3 = vld [vmem:[%s6722_s0 + $0x18] sm:$0xff] (!%p6774_p13)  ;;  %v380_v4 = vld [vmem:[%s6722_s0 + $0x20] sm:$0xff] (!%p6774_p13) }
  0x76   : > { %s5516_s18 = scalar_lea.vmem %s6725_s3, %s3775_s16  ;;  %s5521_s11 = scalar_lea.vmem %s6728_s6, %s3776_s29  ;;  %394 = vst [vmem:[#allocation8 + $0x10] sm:$0xff] (!%p6774_p13), %v378_v2  ;;  %v381_v5 = vld [vmem:[%s6722_s0 + $0x28] sm:$0xff] (!%p6774_p13)  ;;  %395 = vst [vmem:[#allocation8 + $0x18] sm:$0xff] (!%p6774_p13), %v379_v3  ;;  %v382_v6 = vld [vmem:[%s6722_s0 + $0x30] sm:$0xff] (!%p6774_p13) }
  0x77   : > { %396 = vst [vmem:[#allocation8 + $0x20] sm:$0xff] (!%p6774_p13), %v380_v4  ;;  %397 = vst [vmem:[#allocation8 + $0x28] sm:$0xff] (!%p6774_p13), %v381_v5  ;;  %v383_v7 = vld [vmem:[%s6722_s0 + $0x38] sm:$0xff] (!%p6774_p13)  ;;  %v384_v8 = vld [vmem:[%s6722_s0 + $0x40] sm:$0xff] (!%p6774_p13) }
  0x78   : > { %398 = vst [vmem:[#allocation8 + $0x30] sm:$0xff] (!%p6774_p13), %v382_v6  ;;  %399 = vst [vmem:[#allocation8 + $0x38] sm:$0xff] (!%p6774_p13), %v383_v7  ;;  %v385_v9 = vld [vmem:[%s6722_s0 + $0x48] sm:$0xff] (!%p6774_p13)  ;;  %v386_v10 = vld [vmem:[%s6722_s0 + $0x50] sm:$0xff] (!%p6774_p13) }
  0x79   : > { %400 = vst [vmem:[#allocation8 + $0x40] sm:$0xff] (!%p6774_p13), %v384_v8  ;;  %v387_v11 = vld [vmem:[%s6722_s0 + $0x58] sm:$0xff] (!%p6774_p13)  ;;  %401 = vst [vmem:[#allocation8 + $0x48] sm:$0xff] (!%p6774_p13), %v385_v9  ;;  %v388_v12 = vld [vmem:[%s6722_s0 + $0x60] sm:$0xff] (!%p6774_p13) }
  0x7a   : > { %402 = vst [vmem:[#allocation8 + $0x50] sm:$0xff] (!%p6774_p13), %v386_v10  ;;  %403 = vst [vmem:[#allocation8 + $0x58] sm:$0xff] (!%p6774_p13), %v387_v11  ;;  %v389_v13 = vld [vmem:[%s6722_s0 + $0x68] sm:$0xff] (!%p6774_p13)  ;;  %v390_v14 = vld [vmem:[%s6722_s0 + $0x70] sm:$0xff] (!%p6774_p13) }
  0x7b   : > { %404 = vst [vmem:[#allocation8 + $0x60] sm:$0xff] %v388_v12  ;;  %405 = vst [vmem:[#allocation8 + $0x68] sm:$0xff] %v389_v13  ;;  %v391_v15 = vld [vmem:[%s6722_s0 + $0x78] sm:$0xff] }
  0x7c   : > { %406 = vst [vmem:[#allocation8 + $0x70] sm:$0xff] %v390_v14  ;;  %407 = vst [vmem:[#allocation8 + $0x78] sm:$0xff] %v391_v15 }
  0x7d PF: > { %v4572_v16 = vld [vmem:[%s5505_s23 + $0x4] ss:$12 sps:$4 sm:$0xff]   ;;  %v4574_v17 = vld [vmem:[%s5505_s23] ss:$12 sps:$4 sm:$0xff]   ;;  %v6736_v18 = vmov 0   ;;  %vm522_vm0 = vcmask 64512  }
  0x7e   : > { %900 = vmatprep.mubr.bf16.mxu1 %v6736_v18  ;;  %868 = vmatprep.subr.bf16.mxu1 %v4572_v16  ;;  %v5579_v19 = vld [vmem:[%s5505_s23 + $0x1c] ss:$12 sps:$4 sm:$0xff]   ;;  %v5582_v20 = vld [vmem:[%s5505_s23 + $0x18] ss:$12 sps:$4 sm:$0xff]   ;;  %v5586_v21 = vld [vmem:[%s5505_s23 + $0x34] ss:$12 sps:$4 sm:$0xff]  }
  0x7f   : > { %869 = vmatpush1.bf16.msra.mxu1 %v4574_v17  ;;  %v5590_v22 = vld [vmem:[%s5505_s23 + $0x30] ss:$12 sps:$4 sm:$0xff]   ;;  %v5594_v23 = vld [vmem:[%s5505_s23 + $0x4c] ss:$12 sps:$4 sm:$0xff]   ;;  %v5598_v24 = vld [vmem:[%s5505_s23 + $0x48] ss:$12 sps:$4 sm:$0xff]  }
  0x80   : > { %870 = vmatprep.subr.bf16.mxu1 %v5579_v19  ;;  %v5602_v25 = vld [vmem:[%s5505_s23 + $0x64] ss:$12 sps:$4 sm:$0xff]   ;;  %v5606_v26 = vld [vmem:[%s5505_s23 + $0x60] ss:$12 sps:$4 sm:$0xff]   ;;  %v5614_v29 = vld [vmem:[%s5505_s23 + $0x7c] ss:$12 sps:$4 sm:$0xff]  }
  0x81   : > { %v521_v27 = vld [vmem:[%s5516_s18] sm:$0xff]  ;;  %v506_v30 = vld [vmem:[%s6724_s2 + $0x8] sm:$0xff]  ;;  %v507_v34 = vld [vmem:[%s6724_s2 + $0x10] sm:$0xff]  ;;  %p4527_p6 = scmp.eq.s32.totalorder %s5416_s21, 1 }
  0x82   : > { %v505_v28 = vld [vmem:[%s6724_s2] sm:$0xff]  ;;  %4120 = vmatprep.subr.mxu0 %v521_v27  ;;  %v5624_v32 = vld [vmem:[%s5505_s23 + $0x8] ss:$12 sps:$4 sm:$0xff]   ;;  %v508_v35 = vld [vmem:[%s6724_s2 + $0x18] sm:$0xff] }
  0x83   : > { %871 = vmatpush1.bf16.msra.mxu1 %v5582_v20  ;;  %v5620_v31 = vld [vmem:[%s5505_s23 + $0x78] ss:$12 sps:$4 sm:$0xff]   ;;  %4121 = vmatpush3.msra.mxu0 %v521_v27  ;;  %v5627_v33 = vld [vmem:[%s5505_s23 + $0x94] ss:$12 sps:$4 sm:$0xff]   ;;  %v5649_v39 = vld [vmem:[%s5505_s23 + $0x90] ss:$12 sps:$4 sm:$0xff]  }
  0x84   : > { %872 = vmatprep.subr.bf16.mxu1 %v5586_v21  ;;  %4122 = vmatprep.mubr.msk.f32.mxu0 %vm522_vm0, %v505_v28  ;;  %v4597_v36 = vld [vmem:[%s5505_s23 + $0x20] ss:$12 sps:$4 sm:$0xff]   ;;  %v4598_v38 = vld [vmem:[%s5505_s23 + $0x38] ss:$12 sps:$4 sm:$0xff]   ;;  %v511_v42 = vld [vmem:[%s6724_s2 + $0x30] sm:$0xff] }
  0x85   : > { %4123 = vmatmul.mubr.msk.f32.vlgmr.msra.gmra.mrb[0].mxu0 %vm522_vm0, %v506_v30  ;;  %4146 = vmatprep.subr.bf16.mxu0 %v5624_v32  ;;  %v509_v37 = vld [vmem:[%s6724_s2 + $0x20] sm:$0xff]  ;;  %v510_v40 = vld [vmem:[%s6724_s2 + $0x28] sm:$0xff]  ;;  %v4599_v43 = vld [vmem:[%s5505_s23 + $0x50] ss:$12 sps:$4 sm:$0xff]  }
  0x86   : > { %4147 = vmatpush3.bf16.msra.mxu0 %v5624_v32  ;;  %4125 = vmatprep.mubr.msk.f32.mxu0 %vm522_vm0, %v507_v34  ;;  %v5657_v41 = vld [vmem:[%s5505_s23 + $0xac] ss:$12 sps:$4 sm:$0xff]   ;;  %v5664_v44 = vld [vmem:[%s5505_s23 + $0xa8] ss:$12 sps:$4 sm:$0xff]   ;;  %v716_v45 = vld [vmem:[#allocation8] sm:$0xff] }
  0x87   : > { %873 = vmatpush1.bf16.msra.mxu1 %v5590_v22  ;;  %4148 = vmatprep.subr.bf16.mxu0 %v4597_v36  ;;  %v717_v46 = vld [vmem:[#allocation8 + $0x8] sm:$0xff]  ;;  %v512_v47 = vld [vmem:[%s6724_s2 + $0x38] sm:$0xff]  ;;  %v513_v48 = vld [vmem:[%s6724_s2 + $0x40] sm:$0xff] }
  0x88   : > { %874 = vmatprep.subr.bf16.mxu1 %v5594_v23  ;;  %v514_v49 = vld [vmem:[%s6724_s2 + $0x48] sm:$0xff]  ;;  %v5680_v51 = vpack.c.bf16 %v717_v46, %v716_v45  ;;  %v515_v52 = vld [vmem:[%s6724_s2 + $0x50] sm:$0xff]  ;;  %v719_v55 = vld [vmem:[#allocation8 + $0x18] sm:$0xff] }
  0x89   : > { %4126 = vmatmul.mubr.msk.f32.gmra.mrb[2].mxu0 %vm522_vm0, %v508_v35  ;;  %v4600_v50 = vld [vmem:[%s5505_s23 + $0x68] ss:$12 sps:$4 sm:$0xff]   ;;  %v4601_v53 = vld [vmem:[%s5505_s23 + $0x80] ss:$12 sps:$4 sm:$0xff]   ;;  %v516_v56 = vld [vmem:[%s6724_s2 + $0x58] sm:$0xff] }
  0x8a   : > { %4128 = vmatprep.mubr.msk.f32.mxu0 %vm522_vm0, %v509_v37  ;;  %4149 = vmatpush3.bf16.msra.mxu0 %v4597_v36  ;;  %6775 = vst [vmem:[#allocation12_spill] sm:$0xff] %v5680_v51  ;;  %v718_v54 = vld [vmem:[#allocation8 + $0x10] sm:$0xff]  ;;  %v517_v57 = vld [vmem:[%s6724_s2 + $0x60] sm:$0xff]  ;;  %v518_v59 = vld [vmem:[%s6724_s2 + $0x68] sm:$0xff] }
  0x8b   : > { %875 = vmatpush1.bf16.msra.mxu1 %v5598_v24  ;;  %4150 = vmatprep.subr.bf16.mxu0 %v4598_v38  ;;  %v4602_v58 = vld [vmem:[%s5505_s23 + $0x98] ss:$12 sps:$4 sm:$0xff]   ;;  %v5703_v60 = vpack.c.bf16 %v719_v55, %v718_v54  ;;  %v519_v61 = vld [vmem:[%s6724_s2 + $0x70] sm:$0xff]  ;;  %v721_v0 = vld [vmem:[#allocation8 + $0x28] sm:$0xff] }
  0x8c   : > { %876 = vmatprep.subr.bf16.mxu1 %v5602_v25  ;;  %v4603_v62 = vld [vmem:[%s5505_s23 + $0xb0] ss:$12 sps:$4 sm:$0xff]   ;;  %v720_v63 = vld [vmem:[#allocation8 + $0x20] sm:$0xff]  ;;  %v725_v6 = vld [vmem:[#allocation8 + $0x48] sm:$0xff] }
  0x8d   : > { %4129 = vmatmul.mubr.msk.f32.gmra.mrb[4].mxu0 %vm522_vm0, %v510_v40  ;;  %v520_v1 = vld [vmem:[%s6724_s2 + $0x78] sm:$0xff]  ;;  %v5718_v2 = vpack.c.bf16 %v721_v0, %v720_v63  ;;  %v722_v3 = vld [vmem:[#allocation8 + $0x30] sm:$0xff]  ;;  %v724_v5 = vld [vmem:[#allocation8 + $0x40] sm:$0xff] }
  0x8e   : > { %4131 = vmatprep.mubr.msk.f32.mxu0 %vm522_vm0, %v511_v42  ;;  %4151 = vmatpush3.bf16.msra.mxu0 %v4598_v38  ;;  %v723_v4 = vld [vmem:[#allocation8 + $0x38] sm:$0xff]  ;;  %v5729_v8 = vpack.c.bf16 %v725_v6, %v724_v5  ;;  %v726_v9 = vld [vmem:[#allocation8 + $0x50] sm:$0xff]  ;;  %v728_v11 = vld [vmem:[#allocation8 + $0x60] sm:$0xff] }
  0x8f   : > { %877 = vmatpush1.bf16.msra.mxu1 %v5606_v26  ;;  %4152 = vmatprep.subr.bf16.mxu0 %v4599_v43  ;;  %v5726_v7 = vpack.c.bf16 %v723_v4, %v722_v3  ;;  %v727_v10 = vld [vmem:[#allocation8 + $0x58] sm:$0xff]  ;;  %v729_v12 = vld [vmem:[#allocation8 + $0x68] sm:$0xff]  ;;  %v730_v15 = vld [vmem:[#allocation8 + $0x70] sm:$0xff] }
  0x90   : > { %878 = vmatprep.subr.bf16.mxu1 %v5614_v29  ;;  %v5734_v13 = vpack.c.bf16 %v727_v10, %v726_v9  ;;  %v5737_v14 = vpack.c.bf16 %v729_v12, %v728_v11  ;;  %v731_v16 = vld [vmem:[#allocation8 + $0x78] sm:$0xff]  ;;  %v4604_v27 = vld [vmem:[#allocation2] sm:$0xff]  }
  0x91   : > { %4132 = vmatmul.mubr.msk.f32.gmra.mrb[6].mxu0 %vm522_vm0, %v512_v47  ;;  %v5742_v17 = vpack.c.bf16 %v731_v16, %v730_v15 }
  0x92   : > { %4134 = vmatprep.mubr.msk.f32.mxu0 %vm522_vm0, %v513_v48  ;;  %4153 = vmatpush3.bf16.msra.mxu0 %v4599_v43 }
  0x93   : > { %879 = vmatpush1.bf16.msra.mxu1 %v5620_v31  ;;  %4154 = vmatprep.subr.bf16.mxu0 %v4600_v50  ;;  %6776 = vst [vmem:[#allocation13_spill] sm:$0xff] %v5742_v17 }
  0x94   : > { %880 = vmatprep.subr.bf16.mxu1 %v5627_v33 }
  0x95   : > { %4135 = vmatmul.mubr.msk.f32.gmra.mrb[8].mxu0 %vm522_vm0, %v514_v49 }
  0x96   : > { %4137 = vmatprep.mubr.msk.f32.mxu0 %vm522_vm0, %v515_v52  ;;  %4155 = vmatpush3.bf16.msra.mxu0 %v4600_v50 }
  0x97   : > { %881 = vmatpush1.bf16.msra.mxu1 %v5649_v39  ;;  %4156 = vmatprep.subr.bf16.mxu0 %v4601_v53 }
  0x98   : > { %882 = vmatprep.subr.bf16.mxu1 %v5657_v41 }
  0x99   : > { %4138 = vmatmul.mubr.msk.f32.gmra.mrb[10].mxu0 %vm522_vm0, %v516_v56 }
  0x9a   : > { %4140 = vmatprep.mubr.msk.f32.mxu0 %vm522_vm0, %v517_v57  ;;  %4157 = vmatpush3.bf16.msra.mxu0 %v4601_v53 }
  0x9b   : > { %883 = vmatpush1.bf16.msra.mxu1 %v5664_v44  ;;  %4158 = vmatprep.subr.bf16.mxu0 %v4602_v58 }
  0x9d   : > { %4141 = vmatmul.mubr.msk.f32.gmra.mrb[12].mxu0 %vm522_vm0, %v518_v59 }
  0x9e   : > { %901 = vmatmul.mubr.bf16.vlgmr.msra.gmra.mrb[0].mxu1 %v5680_v51  ;;  %4143 = vmatprep.mubr.msk.f32.mxu0 %vm522_vm0, %v519_v61 }
  0x9f   : > { %910 = vmatprep.mubr.bf16.mxu1 %v6736_v18  ;;  %4159 = vmatpush3.bf16.msra.mxu0 %v4602_v58 }
  0xa0   : > { %4160 = vmatprep.subr.bf16.mxu0 %v4603_v62 }
  0xa1   : > { %4144 = vmatmul.mubr.msk.f32.gmra.mrb[14].mxu0 %vm522_vm0, %v520_v1 }
  0xa2   : > { %4162 = vmatprep.mubr.bf16.mxu0 %v5680_v51 }
  0xa3   : > { %4161 = vmatpush3.bf16.msra.mxu0 %v4603_v62 }
  0xa6   : > { %911 = vmatmul.mubr.bf16.gmra.mrb[4].mxu1 %v5703_v60  ;;  %4163 = vmatmul.mubr.bf16.vlgmr.msra.gmra.mrb[16].mxu0 %v5703_v60 }
  0xa7   : > { %920 = vmatprep.mubr.bf16.mxu1 %v6736_v18  ;;  %4166 = vmatprep.mubr.bf16.mxu0 %v5718_v2 }
  0xae   : > { %921 = vmatmul.mubr.bf16.gmra.mrb[8].mxu1 %v5718_v2  ;;  %4167 = vmatmul.mubr.bf16.gmra.mrb[20].mxu0 %v5726_v7 }
  0xaf   : > { %930 = vmatprep.mubr.bf16.mxu1 %v6736_v18  ;;  %4170 = vmatprep.mubr.bf16.mxu0 %v5729_v8 }
  0xb6   : > { %931 = vmatmul.mubr.bf16.gmra.mrb[12].mxu1 %v5726_v7  ;;  %4171 = vmatmul.mubr.bf16.gmra.mrb[24].mxu0 %v5734_v13 }
  0xb7   : > { %940 = vmatprep.mubr.bf16.mxu1 %v6736_v18  ;;  %4174 = vmatprep.mubr.bf16.mxu0 %v5737_v14 }
  0xbe   : > { %941 = vmatmul.mubr.bf16.gmra.mrb[16].mxu1 %v5729_v8  ;;  %4175 = vmatmul.mubr.bf16.gmra.mrb[28].mxu0 %v5742_v17 }
  0xbf   : > { %950 = vmatprep.mubr.bf16.mxu1 %v6736_v18  ;;  %4194 = vmatprep.mubr.bf16.mxu0 %v4604_v27 }
  0xc6   : > { %951 = vmatmul.mubr.bf16.gmra.mrb[20].mxu1 %v5734_v13 }
  0xc7   : > { %960 = vmatprep.mubr.bf16.mxu1 %v6736_v18 }
  0xce   : > { %961 = vmatmul.mubr.bf16.gmra.mrb[24].mxu1 %v5737_v14 }
  0xcf   : > { %970 = vmatprep.mubr.bf16.mxu1 %v6736_v18 }
  0xd6   : > { %971 = vmatmul.mubr.bf16.gmra.mrb[28].mxu1 %v5742_v17  ;;  %v5859_v17 = vld [vmem:[%s5523_s14 + $0xc4] ss:$16 sps:$4 sm:$0xff]  }
  0xd7   : > { %2016 = vmatprep.mubr.bf16.mxu1 %v5680_v51  ;;  %v5853_v51 = vld [vmem:[%s5523_s14 + $0xa0] ss:$16 sps:$4 sm:$0xff]   ;;  %6789 = vst [vmem:[#allocation26_spill] sm:$0xff] %v5859_v17 }
  0xd8   : > { %6788 = vst [vmem:[#allocation25_spill] sm:$0xff] %v5853_v51 }
 0x158   : > { %v5751_v28 = vpop.f32.mrb[0].mxu0 }
 0x159   : > { %v5753_v30 = vpop.f32.mrb[1].mxu0 }
 0x15c   : > { %v5755_v34 = vpop.f32.mrb[2].mxu0 }
 0x15d   : > { %v5757_v35 = vpop.f32.mrb[3].mxu0 }
 0x160   : > { %v5759_v36 = vpop.f32.mrb[4].mxu0 }
 0x161   : > { %v5761_v37 = vpop.f32.mrb[5].mxu0 }
 0x164   : > { %v5763_v38 = vpop.f32.mrb[6].mxu0 }
 0x165   : > { %v5765_v40 = vpop.f32.mrb[7].mxu0 }
 0x168   : > { %v5767_v43 = vpop.f32.mrb[8].mxu0 }
 0x169   : > { %v5769_v46 = vpop.f32.mrb[9].mxu0 }
 0x16c   : > { %v5773_v52 = vpop.f32.mrb[10].mxu0 }
 0x16d   : > { %v5775_v53 = vpop.f32.mrb[11].mxu0 }
 0x170   : > { %v5777_v55 = vpop.f32.mrb[12].mxu0 }
 0x171   : > { %v902_v42 = vpop.f32.mrb[0].mxu1  ;;  %v5779_v57 = vpop.f32.mrb[13].mxu0 }
 0x172   : > { %v904_v45 = vpop.f32.mrb[1].mxu1 }
 0x173   : > { %v906_v47 = vpop.f32.mrb[2].mxu1 }
 0x174   : > { %v1078_v48 = vpack.c.bf16 %v906_v47, %v902_v42  ;;  %v908_v49 = vpop.f32.mrb[3].mxu1  ;;  %v5783_v63 = vpop.f32.mrb[14].mxu0 }
 0x175   : > { %v5771_v50 = vpack.c.bf16 %v908_v49, %v904_v45  ;;  %v5785_v0 = vpop.f32.mrb[15].mxu0  ;;  %v5797_v49 = vld [vmem:[%s5523_s14 + $0x4] ss:$16 sps:$4 sm:$0xff]  }
 0x176   : > { %4178 = vmatprep.subr.bf16.mxu0 %v1078_v48  ;;  %6778 = vst [vmem:[#allocation15_spill] sm:$0xff] %v5797_v49  ;;  %1984 = vmatprep.subr.bf16.mxu1 %v5797_v49 }
 0x177   : > { %4179 = vmatpush3.bf16.msra.mxu0 %v1078_v48  ;;  %v5794_v48 = vld [vmem:[%s5523_s14] ss:$16 sps:$4 sm:$0xff]  }
 0x178   : > { %6777 = vst [vmem:[#allocation14_spill] sm:$0xff] %v5794_v48  ;;  %1985 = vmatpush1.bf16.msra.mxu1 %v5794_v48  ;;  %v5837_v48 = vld [vmem:[%s5523_s14 + $0x84] ss:$16 sps:$4 sm:$0xff]  }
 0x179   : > { %v912_v54 = vpop.f32.mrb[4].mxu1  ;;  %v4164_v4 = vpop.f32.mrb[16].mxu0  ;;  %6785 = vst [vmem:[#allocation22_spill] sm:$0xff] %v5837_v48 }
 0x17a   : > { %v914_v56 = vpop.f32.mrb[5].mxu1  ;;  %v1015_v6 = vpop.f32.mrb[17].mxu0 }
 0x17b   : > { %v916_v58 = vpop.f32.mrb[6].mxu1  ;;  %v4165_v11 = vpop.f32.mrb[18].mxu0 }
 0x17c   : > { %v1081_v59 = vpack.c.bf16 %v916_v58, %v912_v54  ;;  %v918_v61 = vpop.f32.mrb[7].mxu1  ;;  %v5789_v15 = vpack.c.bf16 %v4165_v11, %v4164_v4  ;;  %v1018_v16 = vpop.f32.mrb[19].mxu0  ;;  %v5800_v58 = vld [vmem:[%s5523_s14 + $0x24] ss:$16 sps:$4 sm:$0xff]  }
 0x17d   : > { %v5781_v62 = vpack.c.bf16 %v918_v61, %v914_v56  ;;  %v5791_v27 = vpack.c.bf16 %v1018_v16, %v1015_v6  ;;  %6779 = vst [vmem:[#allocation16_spill] sm:$0xff] %v5800_v58  ;;  %v5809_v6 = vld [vmem:[%s5523_s14 + $0x20] ss:$16 sps:$4 sm:$0xff]   ;;  %1986 = vmatprep.subr.bf16.mxu1 %v5800_v58 }
 0x17e   : > { %4180 = vmatprep.subr.bf16.mxu0 %v1081_v59  ;;  %6780 = vst [vmem:[#allocation17_spill] sm:$0xff] %v5809_v6  ;;  %1987 = vmatpush1.bf16.msra.mxu1 %v5809_v6  ;;  %v5819_v16 = vld [vmem:[%s5523_s14 + $0x40] ss:$16 sps:$4 sm:$0xff]  }
 0x17f   : > { %4181 = vmatpush3.bf16.msra.mxu0 %v1081_v59  ;;  %6782 = vst [vmem:[#allocation19_spill] sm:$0xff] %v5819_v16  ;;  %v5831_v58 = vld [vmem:[%s5523_s14 + $0x60] ss:$16 sps:$4 sm:$0xff]  }
 0x180   : > { %6784 = vst [vmem:[#allocation21_spill] sm:$0xff] %v5831_v58 }
 0x181   : > { %v922_v1 = vpop.f32.mrb[8].mxu1  ;;  %v4168_v47 = vpop.f32.mrb[20].mxu0 }
 0x182   : > { %v924_v3 = vpop.f32.mrb[9].mxu1  ;;  %v1031_v56 = vpop.f32.mrb[21].mxu0 }
 0x183   : > { %v926_v5 = vpop.f32.mrb[10].mxu1 }
 0x184   : > { %v1084_v9 = vpack.c.bf16 %v926_v5, %v922_v1  ;;  %v928_v10 = vpop.f32.mrb[11].mxu1  ;;  %v4169_v1 = vpop.f32.mrb[22].mxu0 }
 0x185   : > { %v5787_v12 = vpack.c.bf16 %v928_v10, %v924_v3  ;;  %v5805_v4 = vpack.c.bf16 %v4169_v1, %v4168_v47  ;;  %v1034_v5 = vpop.f32.mrb[23].mxu0  ;;  %v5815_v10 = vld [vmem:[%s5523_s14 + $0x44] ss:$16 sps:$4 sm:$0xff]  }
 0x186   : > { %4182 = vmatprep.subr.bf16.mxu0 %v1084_v9  ;;  %6781 = vst [vmem:[#allocation18_spill] sm:$0xff] %v5815_v10  ;;  %1988 = vmatprep.subr.bf16.mxu1 %v5815_v10  ;;  %v5823_v47 = vld [vmem:[%s5523_s14 + $0x64] ss:$16 sps:$4 sm:$0xff]  }
 0x187   : > { %4183 = vmatpush3.bf16.msra.mxu0 %v1084_v9  ;;  %v5811_v9 = vpack.c.bf16 %v1034_v5, %v1031_v56  ;;  %6783 = vst [vmem:[#allocation20_spill] sm:$0xff] %v5823_v47  ;;  %1989 = vmatpush1.bf16.msra.mxu1 %v5819_v16 }
 0x188   : > { %1990 = vmatprep.subr.bf16.mxu1 %v5823_v47 }
 0x189   : > { %v932_v42 = vpop.f32.mrb[12].mxu1 }
 0x18a   : > { %v934_v45 = vpop.f32.mrb[13].mxu1 }
 0x18b   : > { %v936_v54 = vpop.f32.mrb[14].mxu1  ;;  %1991 = vmatpush1.bf16.msra.mxu1 %v5831_v58 }
 0x18c   : > { %v1087_v59 = vpack.c.bf16 %v936_v54, %v932_v42  ;;  %v938_v61 = vpop.f32.mrb[15].mxu1  ;;  %1992 = vmatprep.subr.bf16.mxu1 %v5837_v48 }
 0x18d   : > { %v5803_v3 = vpack.c.bf16 %v938_v61, %v934_v45  ;;  %v4172_v45 = vpop.f32.mrb[24].mxu0 }
 0x18e   : > { %4184 = vmatprep.subr.bf16.mxu0 %v1087_v59  ;;  %v1047_v56 = vpop.f32.mrb[25].mxu0 }
 0x18f   : > { %4185 = vmatpush3.bf16.msra.mxu0 %v1087_v59  ;;  %v4173_v5 = vpop.f32.mrb[26].mxu0 }
 0x190   : > { %v5827_v18 = vpack.c.bf16 %v4173_v5, %v4172_v45  ;;  %v1050_v6 = vpop.f32.mrb[27].mxu0 }
 0x191   : > { %v942_v11 = vpop.f32.mrb[16].mxu1  ;;  %v5833_v10 = vpack.c.bf16 %v1050_v6, %v1047_v56 }
 0x192   : > { %v944_v42 = vpop.f32.mrb[17].mxu1 }
 0x193   : > { %v946_v54 = vpop.f32.mrb[18].mxu1 }
 0x194   : > { %v1090_v61 = vpack.c.bf16 %v946_v54, %v942_v11  ;;  %v948_v1 = vpop.f32.mrb[19].mxu1  ;;  %v4176_v54 = vpop.f32.mrb[28].mxu0 }
 0x195   : > { %v5825_v59 = vpack.c.bf16 %v948_v1, %v944_v42  ;;  %v5841_v42 = vld [vmem:[%s5523_s14 + $0x80] ss:$16 sps:$4 sm:$0xff]   ;;  %v5845_v1 = vld [vmem:[%s5523_s14 + $0xa4] ss:$16 sps:$4 sm:$0xff]   ;;  %v1063_v56 = vpop.f32.mrb[29].mxu0 }
 0x196   : > { %4186 = vmatprep.subr.bf16.mxu0 %v1090_v61  ;;  %6786 = vst [vmem:[#allocation23_spill] sm:$0xff] %v5841_v42  ;;  %6787 = vst [vmem:[#allocation24_spill] sm:$0xff] %v5845_v1  ;;  %v4177_v16 = vpop.f32.mrb[30].mxu0  ;;  %1993 = vmatpush1.bf16.msra.mxu1 %v5841_v42  ;;  %v5893_v42 = vld [vmem:[%s5523_s14 + $0x144] ss:$16 sps:$4 sm:$0xff]  }
 0x197   : > { %4187 = vmatpush3.bf16.msra.mxu0 %v1090_v61  ;;  %v5849_v49 = vpack.c.bf16 %v4177_v16, %v4176_v54  ;;  %v1066_v58 = vpop.f32.mrb[31].mxu0  ;;  %1994 = vmatprep.subr.bf16.mxu1 %v5845_v1  ;;  %v5863_v16 = vld [vmem:[%s5523_s14 + $0xc0] ss:$16 sps:$4 sm:$0xff]  }
 0x198   : > { %v5855_v48 = vpack.c.bf16 %v1066_v58, %v1063_v56  ;;  %6790 = vst [vmem:[#allocation27_spill] sm:$0xff] %v5863_v16  ;;  %v5881_v1 = vld [vmem:[%s5523_s14 + $0x100] ss:$16 sps:$4 sm:$0xff]  }
 0x199   : > { %v952_v11 = vpop.f32.mrb[20].mxu1 }
 0x19a   : > { %v954_v45 = vpop.f32.mrb[21].mxu1  ;;  %1995 = vmatpush1.bf16.msra.mxu1 %v5853_v51  ;;  %v5877_v51 = vld [vmem:[%s5523_s14 + $0x104] ss:$16 sps:$4 sm:$0xff]  }
 0x19b   : > { %v956_v6 = vpop.f32.mrb[22].mxu1  ;;  %1996 = vmatprep.subr.bf16.mxu1 %v5859_v17  ;;  %6793 = vst [vmem:[#allocation30_spill] sm:$0xff] %v5877_v51 }
 0x19c   : > { %v1093_v5 = vpack.c.bf16 %v956_v6, %v952_v11  ;;  %v958_v47 = vpop.f32.mrb[23].mxu1 }
 0x19d   : > { %v5847_v61 = vpack.c.bf16 %v958_v47, %v954_v45  ;;  %v5867_v45 = vld [vmem:[%s5523_s14 + $0xe4] ss:$16 sps:$4 sm:$0xff]  }
 0x19e   : > { %4188 = vmatprep.subr.bf16.mxu0 %v1093_v5  ;;  %6791 = vst [vmem:[#allocation28_spill] sm:$0xff] %v5867_v45  ;;  %1997 = vmatpush1.bf16.msra.mxu1 %v5863_v16 }
 0x19f   : > { %4189 = vmatpush3.bf16.msra.mxu0 %v1093_v5  ;;  %v5873_v5 = vld [vmem:[%s5523_s14 + $0xe0] ss:$16 sps:$4 sm:$0xff]   ;;  %1998 = vmatprep.subr.bf16.mxu1 %v5867_v45 }
 0x1a0   : > { %6792 = vst [vmem:[#allocation29_spill] sm:$0xff] %v5873_v5 }
 0x1a1   : > { %v962_v11 = vpop.f32.mrb[24].mxu1 }
 0x1a2   : > { %v964_v47 = vpop.f32.mrb[25].mxu1  ;;  %1999 = vmatpush1.bf16.msra.mxu1 %v5873_v5  ;;  %v4605_v5 = vld [vmem:[#allocation2 + $0x8] sm:$0xff]  }
 0x1a3   : > { %v966_v58 = vpop.f32.mrb[26].mxu1  ;;  %2000 = vmatprep.subr.bf16.mxu1 %v5877_v51  ;;  %v4606_v51 = vld [vmem:[#allocation2 + $0x10] sm:$0xff]  }
 0x1a4   : > { %v1096_v54 = vpack.c.bf16 %v966_v58, %v962_v11  ;;  %v968_v6 = vpop.f32.mrb[27].mxu1 }
 0x1a5   : > { %v5869_v56 = vpack.c.bf16 %v968_v6, %v964_v47  ;;  %v5885_v47 = vld [vmem:[%s5523_s14 + $0x124] ss:$16 sps:$4 sm:$0xff]  }
 0x1a6   : > { %4190 = vmatprep.subr.bf16.mxu0 %v1096_v54  ;;  %2001 = vmatpush1.bf16.msra.mxu1 %v5881_v1 }
 0x1a7   : > { %4191 = vmatpush3.bf16.msra.mxu0 %v1096_v54  ;;  %v5889_v54 = vld [vmem:[%s5523_s14 + $0x120] ss:$16 sps:$4 sm:$0xff]   ;;  %2002 = vmatprep.subr.bf16.mxu1 %v5885_v47 }
 0x1a9   : > { %v972_v17 = vpop.f32.mrb[28].mxu1 }
 0x1aa   : > { %v974_v11 = vpop.f32.mrb[29].mxu1  ;;  %2003 = vmatpush1.bf16.msra.mxu1 %v5889_v54 }
 0x1ab   : > { %v976_v58 = vpop.f32.mrb[30].mxu1  ;;  %2004 = vmatprep.subr.bf16.mxu1 %v5893_v42 }
 0x1ac   : > { %v1099_v6 = vpack.c.bf16 %v976_v58, %v972_v17  ;;  %v978_v16 = vpop.f32.mrb[31].mxu1  ;;  %v5898_v17 = vld [vmem:[%s5523_s14 + $0x140] ss:$16 sps:$4 sm:$0xff]   ;;  %v4607_v58 = vld [vmem:[#allocation2 + $0x18] sm:$0xff]  }
 0x1ad   : > { %v1100_v45 = vpack.c.bf16 %v978_v16, %v974_v11  ;;  %v5902_v16 = vld [vmem:[%s5523_s14 + $0x164] ss:$16 sps:$4 sm:$0xff]   ;;  %v5908_v11 = vld [vmem:[%s5523_s14 + $0x160] ss:$16 sps:$4 sm:$0xff]  }
 0x1ae   : > { %4192 = vmatprep.subr.bf16.mxu0 %v1099_v6  ;;  %6794 = vst [vmem:[#allocation31_spill] sm:$0xff] %v5902_v16  ;;  %2005 = vmatpush1.bf16.msra.mxu1 %v5898_v17  ;;  %6795 = vst [vmem:[#allocation32_spill] sm:$0xff] %v5908_v11 }
 0x1af   : > { %4193 = vmatpush3.bf16.msra.mxu0 %v1099_v6  ;;  %2006 = vmatprep.subr.bf16.mxu1 %v5902_v16  ;;  %v5912_v6 = vld [vmem:[%s5523_s14 + $0x184] ss:$16 sps:$4 sm:$0xff]   ;;  %v4609_v16 = vld [vmem:[#allocation2 + $0x28] sm:$0xff]  }
 0x1b0   : > { %4210 = vmatprep.subr.bf16.mxu0 %v5771_v50 }
 0x1b2   : > { %4195 = vmatmul.mubr.bf16.vlgmr.msra.gmra.mrb[32].mxu0 %v4605_v5  ;;  %v4608_v5 = vld [vmem:[#allocation2 + $0x20] sm:$0xff]   ;;  %2007 = vmatpush1.bf16.msra.mxu1 %v5908_v11  ;;  %v4610_v11 = vld [vmem:[#allocation2 + $0x30] sm:$0xff]  }
 0x1b3   : > { %4211 = vmatpush3.bf16.msra.mxu0 %v5771_v50  ;;  %4198 = vmatprep.mubr.bf16.mxu0 %v4606_v51  ;;  %v5918_v51 = vld [vmem:[%s5523_s14 + $0x180] ss:$16 sps:$4 sm:$0xff]   ;;  %v5922_v50 = vld [vmem:[%s5523_s14 + $0x1a4] ss:$16 sps:$4 sm:$0xff]  }
 0x1b4   : > { %4212 = vmatprep.subr.bf16.mxu0 %v5781_v62  ;;  %2008 = vmatprep.subr.bf16.mxu1 %v5912_v6 }
 0x1b6   : > { %2009 = vmatpush1.bf16.msra.mxu1 %v5918_v51 }
 0x1b7   : > { %4213 = vmatpush3.bf16.msra.mxu0 %v5781_v62  ;;  %v5928_v62 = vld [vmem:[%s5523_s14 + $0x1a0] ss:$16 sps:$4 sm:$0xff]   ;;  %2010 = vmatprep.subr.bf16.mxu1 %v5922_v50 }
 0x1b8   : > { %4214 = vmatprep.subr.bf16.mxu0 %v5787_v12 }
 0x1ba   : > { %4199 = vmatmul.mubr.bf16.gmra.mrb[36].mxu0 %v4607_v58  ;;  %2011 = vmatpush1.bf16.msra.mxu1 %v5928_v62  ;;  %v4612_v58 = vld [vmem:[#allocation2 + $0x40] sm:$0xff]  }
 0x1bb   : > { %4215 = vmatpush3.bf16.msra.mxu0 %v5787_v12  ;;  %4202 = vmatprep.mubr.bf16.mxu0 %v4608_v5  ;;  %v4611_v12 = vld [vmem:[#allocation2 + $0x38] sm:$0xff]   ;;  %v4614_v5 = vld [vmem:[#allocation2 + $0x50] sm:$0xff]  }
 0x1bc   : > { %4216 = vmatprep.subr.bf16.mxu0 %v5803_v3 }
 0x1bf   : > { %4217 = vmatpush3.bf16.msra.mxu0 %v5803_v3  ;;  %v4613_v3 = vld [vmem:[#allocation2 + $0x48] sm:$0xff]  }
 0x1c0   : > { %4218 = vmatprep.subr.bf16.mxu0 %v5825_v59 }
 0x1c2   : > { %4203 = vmatmul.mubr.bf16.gmra.mrb[40].mxu0 %v4609_v16  ;;  %v5045_v16 = vld [vmem:[%s5505_s23] ss:$12 sps:$4 sm:$0xff]  }
 0x1c3   : > { %4219 = vmatpush3.bf16.msra.mxu0 %v5825_v59  ;;  %4206 = vmatprep.mubr.bf16.mxu0 %v4610_v11  ;;  %v4615_v59 = vld [vmem:[#allocation2 + $0x58] sm:$0xff]   ;;  %v4624_v11 = vld [vmem:[#allocation2 + $0xa0] sm:$0xff]  }
 0x1c4   : > { %4220 = vmatprep.subr.bf16.mxu0 %v5847_v61 }
 0x1c7   : > { %4221 = vmatpush3.bf16.msra.mxu0 %v5847_v61  ;;  %v4616_v61 = vld [vmem:[#allocation2 + $0x60] sm:$0xff]  }
 0x1c8   : > { %4222 = vmatprep.subr.bf16.mxu0 %v5869_v56 }
 0x1ca   : > { %4207 = vmatmul.mubr.bf16.gmra.mrb[44].mxu0 %v4611_v12 }
 0x1cb   : > { %4223 = vmatpush3.bf16.msra.mxu0 %v5869_v56  ;;  %4226 = vmatprep.mubr.bf16.mxu0 %v4612_v58  ;;  %v4618_v56 = vld [vmem:[#allocation2 + $0x70] sm:$0xff]   ;;  %v4676_v58 = vld [vmem:[%s5523_s14 + $0x8] ss:$16 sps:$4 sm:$0xff]  }
 0x1cc   : > { %4224 = vmatprep.subr.bf16.mxu0 %v1100_v45 }
 0x1cf   : > { %4225 = vmatpush3.bf16.msra.mxu0 %v1100_v45  ;;  %v4617_v45 = vld [vmem:[#allocation2 + $0x68] sm:$0xff]  }
 0x1d0   : > { %4242 = vmatprep.subr.bf16.mxu0 %v5791_v27 }
 0x1d2   : > { %4227 = vmatmul.mubr.bf16.vlgmr.msra.gmra.mrb[32].mxu0 %v4613_v3 }
 0x1d3   : > { %4243 = vmatpush3.bf16.msra.mxu0 %v5791_v27  ;;  %4230 = vmatprep.mubr.bf16.mxu0 %v4614_v5  ;;  %v4620_v27 = vld [vmem:[#allocation2 + $0x80] sm:$0xff]   ;;  %v4681_v5 = vld [vmem:[%s5523_s14 + $0x2c] ss:$16 sps:$4 sm:$0xff]  }
 0x1d4   : > { %4244 = vmatprep.subr.bf16.mxu0 %v5789_v15 }
 0x1d7   : > { %4245 = vmatpush3.bf16.msra.mxu0 %v5789_v15  ;;  %v4619_v15 = vld [vmem:[#allocation2 + $0x78] sm:$0xff]  }
 0x1d8   : > { %4246 = vmatprep.subr.bf16.mxu0 %v5811_v9 }
 0x1da   : > { %4231 = vmatmul.mubr.bf16.gmra.mrb[36].mxu0 %v4615_v59 }
 0x1db   : > { %4247 = vmatpush3.bf16.msra.mxu0 %v5811_v9  ;;  %4234 = vmatprep.mubr.bf16.mxu0 %v4616_v61  ;;  %v4622_v9 = vld [vmem:[#allocation2 + $0x90] sm:$0xff]  }
 0x1dc   : > { %4248 = vmatprep.subr.bf16.mxu0 %v5805_v4 }
 0x1df   : > { %4249 = vmatpush3.bf16.msra.mxu0 %v5805_v4  ;;  %v4621_v4 = vld [vmem:[#allocation2 + $0x88] sm:$0xff]  }
 0x1e0   : > { %4250 = vmatprep.subr.bf16.mxu0 %v5833_v10 }
 0x1e2   : > { %4235 = vmatmul.mubr.bf16.gmra.mrb[40].mxu0 %v4617_v45 }
 0x1e3   : > { %4251 = vmatpush3.bf16.msra.mxu0 %v5833_v10  ;;  %4238 = vmatprep.mubr.bf16.mxu0 %v4618_v56  ;;  %v5044_v10 = vld [vmem:[%s5505_s23 + $0x4] ss:$12 sps:$4 sm:$0xff]   ;;  %v4679_v56 = vld [vmem:[%s5523_s14 + $0x28] ss:$16 sps:$4 sm:$0xff]  }
 0x1e4   : > { %4252 = vmatprep.subr.bf16.mxu0 %v5827_v18 }
 0x1e7   : > { %4253 = vmatpush3.bf16.msra.mxu0 %v5827_v18  ;;  %v4623_v18 = vld [vmem:[#allocation2 + $0x98] sm:$0xff]  }
 0x1e8   : > { %4254 = vmatprep.subr.bf16.mxu0 %v5855_v48 }
 0x1ea   : > { %4239 = vmatmul.mubr.bf16.gmra.mrb[44].mxu0 %v4619_v15 }
 0x1eb   : > { %4255 = vmatpush3.bf16.msra.mxu0 %v5855_v48  ;;  %4258 = vmatprep.mubr.bf16.mxu0 %v4620_v27  ;;  %v4625_v48 = vld [vmem:[#allocation2 + $0xa8] sm:$0xff]  }
 0x1ec   : > { %4256 = vmatprep.subr.bf16.mxu0 %v5849_v49 }
 0x1ef   : > { %4257 = vmatpush3.bf16.msra.mxu0 %v5849_v49  ;;  %v4626_v49 = vld [vmem:[#allocation2 + $0xb0] sm:$0xff]  }
 0x1f0   : > { %2522 = vmatprep.subr.bf16.mxu0 %v5044_v10 }
 0x1f2   : > { %4259 = vmatmul.mubr.bf16.vlgmr.msra.gmra.mrb[32].mxu0 %v4621_v4  ;;  %v4684_v4 = vld [vmem:[%s5523_s14 + $0x4c] ss:$16 sps:$4 sm:$0xff]  }
 0x1f3   : > { %4262 = vmatprep.mubr.bf16.mxu0 %v4622_v9  ;;  %2523 = vmatpush1.bf16.msra.mxu0 %v5045_v16 }
 0x1f4   : > { %2524 = vmatprep.subr.bf16.mxu0 %v5579_v19  ;;  %v4627_v19 = vld [vmem:[#allocation2 + $0xb8] sm:$0xff]  }
 0x1f7   : > { %2525 = vmatpush1.bf16.msra.mxu0 %v5582_v20  ;;  %v6796_v20 = vmov 0  }
 0x1f8   : > { %2526 = vmatprep.subr.bf16.mxu0 %v5586_v21  ;;  %v5974_v21 = vld [vmem:[%s5523_s14 + $0x1c4] ss:$16 sps:$4 sm:$0xff]  }
 0x1f9   : > { %2012 = vmatprep.subr.bf16.mxu1 %v5974_v21 }
 0x1fa   : > { %4263 = vmatmul.mubr.bf16.gmra.mrb[36].mxu0 %v4623_v18 }
 0x1fb   : > { %4266 = vmatprep.mubr.bf16.mxu0 %v4624_v11  ;;  %2527 = vmatpush1.bf16.msra.mxu0 %v5590_v22  ;;  %v5977_v22 = vld [vmem:[%s5523_s14 + $0x1c0] ss:$16 sps:$4 sm:$0xff]   ;;  %v4682_v11 = vld [vmem:[%s5523_s14 + $0x48] ss:$16 sps:$4 sm:$0xff]  }
 0x1fc   : > { %2528 = vmatprep.subr.bf16.mxu0 %v5594_v23  ;;  %2013 = vmatpush1.bf16.msra.mxu1 %v5977_v22  ;;  %v5982_v23 = vld [vmem:[%s5523_s14 + $0x1e4] ss:$16 sps:$4 sm:$0xff]  }
 0x1fd   : > { %2014 = vmatprep.subr.bf16.mxu1 %v5982_v23 }
 0x1ff   : > { %2529 = vmatpush1.bf16.msra.mxu0 %v5598_v24  ;;  %v5985_v24 = vld [vmem:[%s5523_s14 + $0x1e0] ss:$16 sps:$4 sm:$0xff]  }
 0x200   : > { %2530 = vmatprep.subr.bf16.mxu0 %v5602_v25  ;;  %2015 = vmatpush1.bf16.msra.mxu1 %v5985_v24  ;;  %v5990_v25 = vld [vmem:[%s5523_s14 + $0xc] ss:$16 sps:$4 sm:$0xff]  }
 0x201   : > { %2097 = vmatprep.subr.bf16.mxu1 %v5990_v25 }
 0x202   : > { %4267 = vmatmul.mubr.bf16.gmra.mrb[40].mxu0 %v4625_v48 }
 0x203   : > { %4270 = vmatprep.mubr.bf16.mxu0 %v4626_v49  ;;  %2531 = vmatpush1.bf16.msra.mxu0 %v5606_v26  ;;  %v4687_v49 = vld [vmem:[%s5523_s14 + $0x6c] ss:$16 sps:$4 sm:$0xff]  }
 0x204   : > { %2532 = vmatprep.subr.bf16.mxu0 %v5614_v29 }
 0x207   : > { %2533 = vmatpush1.bf16.msra.mxu0 %v5620_v31 }
 0x208   : > { %2534 = vmatprep.subr.bf16.mxu0 %v5627_v33 }
 0x20a   : > { %4271 = vmatmul.mubr.bf16.gmra.mrb[44].mxu0 %v4627_v19 }
 0x20b   : > { %2535 = vmatpush1.bf16.msra.mxu0 %v5649_v39  ;;  %2554 = vmatprep.mubr.bf16.mxu0 %v6796_v20 }
 0x20c   : > { %2536 = vmatprep.subr.bf16.mxu0 %v5657_v41 }
 0x20f   : > { %2537 = vmatpush1.bf16.msra.mxu0 %v5664_v44 }
 0x210   : > { %4274 = vmatprep.subr.bf16.mxu0 %v5624_v32 }
 0x2c5   : > { %v4260_v26 = vpop.f32.mrb[32].mxu0 }
 0x2c6   : > { %v4402_v29 = vadd.f32 %v4260_v26, %v5757_v35  ;;  %v1556_v31 = vpop.f32.mrb[33].mxu0 }
 0x2c7   : > { %v4403_v32 = vadd.f32 %v1556_v31, %v5753_v30  ;;  %v4261_v33 = vpop.f32.mrb[34].mxu0  ;;  %v4685_v31 = vld [vmem:[%s5523_s14 + $0x68] ss:$16 sps:$4 sm:$0xff]  }
 0x2c8   : > { %v4404_v39 = vadd.f32 %v4261_v33, %v5755_v34  ;;  %v1559_v41 = vpop.f32.mrb[35].mxu0 }
 0x2c9   : > { %v4405_v44 = vadd.f32 %v5751_v28, %v1559_v41 }
 0x2ca   : > { %v5997_v12 = vpack.c.bf16 %v4404_v39, %v4402_v29  ;;  %v4690_v39 = vld [vmem:[%s5523_s14 + $0x8c] ss:$16 sps:$4 sm:$0xff]  }
 0x2cb   : > { %v6000_v3 = vpack.c.bf16 %v4405_v44, %v4403_v32 }
 0x2cd   : > { %v4264_v59 = vpop.f32.mrb[36].mxu0  ;;  %2017 = vmatmul.mubr.bf16.vlgmr.msra.gmra.mrb[32].mxu1 %v6000_v3 }
 0x2ce   : > { %v4406_v61 = vadd.f32 %v4264_v59, %v5765_v40  ;;  %v1572_v45 = vpop.f32.mrb[37].mxu0  ;;  %2098 = vmatpush1.bf16.msra.mxu1 %v4676_v58  ;;  %2026 = vmatprep.mubr.bf16.mxu1 %v5703_v60  ;;  %v4688_v59 = vld [vmem:[%s5523_s14 + $0x88] ss:$16 sps:$4 sm:$0xff]  }
 0x2cf   : > { %v4407_v15 = vadd.f32 %v1572_v45, %v5761_v37  ;;  %v4265_v27 = vpop.f32.mrb[38].mxu0  ;;  %2099 = vmatprep.subr.bf16.mxu1 %v4681_v5  ;;  %v4693_v45 = vld [vmem:[%s5523_s14 + $0xac] ss:$16 sps:$4 sm:$0xff]  }
 0x2d0   : > { %v4408_v9 = vadd.f32 %v4265_v27, %v5763_v38  ;;  %v1575_v10 = vpop.f32.mrb[39].mxu0 }
 0x2d1   : > { %v4409_v16 = vadd.f32 %v5759_v36, %v1575_v10 }
 0x2d2   : > { %v6011_v18 = vpack.c.bf16 %v4408_v9, %v4406_v61  ;;  %2100 = vmatpush1.bf16.msra.mxu1 %v4679_v56 }
 0x2d3   : > { %v6014_v48 = vpack.c.bf16 %v4409_v16, %v4407_v15  ;;  %2101 = vmatprep.subr.bf16.mxu1 %v4684_v4  ;;  %v4691_v4 = vld [vmem:[%s5523_s14 + $0xa8] ss:$16 sps:$4 sm:$0xff]   ;;  %v4696_v16 = vld [vmem:[%s5523_s14 + $0xcc] ss:$16 sps:$4 sm:$0xff]  }
 0x2d5   : > { %v4268_v19 = vpop.f32.mrb[40].mxu0  ;;  %2027 = vmatmul.mubr.bf16.gmra.mrb[36].mxu1 %v5997_v12 }
 0x2d6   : > { %v4410_v26 = vadd.f32 %v4268_v19, %v5775_v53  ;;  %v1588_v29 = vpop.f32.mrb[41].mxu0  ;;  %2102 = vmatpush1.bf16.msra.mxu1 %v4682_v11  ;;  %2036 = vmatprep.mubr.bf16.mxu1 %v5718_v2 }
 0x2d7   : > { %v4411_v32 = vadd.f32 %v1588_v29, %v5769_v46  ;;  %v4269_v33 = vpop.f32.mrb[42].mxu0  ;;  %2103 = vmatprep.subr.bf16.mxu1 %v4687_v49  ;;  %v4694_v29 = vld [vmem:[%s5523_s14 + $0xc8] ss:$16 sps:$4 sm:$0xff]  }
 0x2d8   : > { %v4412_v41 = vadd.f32 %v4269_v33, %v5773_v52  ;;  %v1591_v44 = vpop.f32.mrb[43].mxu0  ;;  %v4697_v33 = vld [vmem:[%s5523_s14 + $0xe8] ss:$16 sps:$4 sm:$0xff]  }
 0x2d9   : > { %v4413_v58 = vadd.f32 %v5767_v43, %v1591_v44  ;;  %v4705_v44 = vld [vmem:[%s5523_s14 + $0x12c] ss:$16 sps:$4 sm:$0xff]  }
 0x2da   : > { %v6025_v5 = vpack.c.bf16 %v4412_v41, %v4410_v26  ;;  %2104 = vmatpush1.bf16.msra.mxu1 %v4685_v31  ;;  %v4700_v41 = vld [vmem:[%s5523_s14 + $0x108] ss:$16 sps:$4 sm:$0xff]  }
 0x2db   : > { %v6028_v61 = vpack.c.bf16 %v4413_v58, %v4411_v32  ;;  %2105 = vmatprep.subr.bf16.mxu1 %v4690_v39  ;;  %v4699_v32 = vld [vmem:[%s5523_s14 + $0xec] ss:$16 sps:$4 sm:$0xff]   ;;  %v4703_v58 = vld [vmem:[%s5523_s14 + $0x128] ss:$16 sps:$4 sm:$0xff]  }
 0x2dc   : > { %v4702_v39 = vld [vmem:[%s5523_s14 + $0x10c] ss:$16 sps:$4 sm:$0xff]  }
 0x2dd   : > { %v4272_v56 = vpop.f32.mrb[44].mxu0  ;;  %2037 = vmatmul.mubr.bf16.gmra.mrb[40].mxu1 %v6014_v48 }
 0x2de   : > { %v4414_v15 = vadd.f32 %v4272_v56, %v5785_v0  ;;  %v1604_v27 = vpop.f32.mrb[45].mxu0  ;;  %2106 = vmatpush1.bf16.msra.mxu1 %v4688_v59  ;;  %2046 = vmatprep.mubr.bf16.mxu1 %v5726_v7  ;;  %v4708_v59 = vld [vmem:[%s5523_s14 + $0x14c] ss:$16 sps:$4 sm:$0xff]  }
 0x2df   : > { %v4415_v9 = vadd.f32 %v1604_v27, %v5779_v57  ;;  %v4273_v10 = vpop.f32.mrb[46].mxu0  ;;  %2107 = vmatprep.subr.bf16.mxu1 %v4693_v45  ;;  %v4706_v45 = vld [vmem:[%s5523_s14 + $0x148] ss:$16 sps:$4 sm:$0xff]   ;;  %v4711_v56 = vld [vmem:[%s5523_s14 + $0x16c] ss:$16 sps:$4 sm:$0xff]  }
 0x2e0   : > { %v4416_v11 = vadd.f32 %v4273_v10, %v5783_v63  ;;  %v1607_v49 = vpop.f32.mrb[47].mxu0  ;;  %v4714_v27 = vld [vmem:[%s5523_s14 + $0x18c] ss:$16 sps:$4 sm:$0xff]   ;;  %v4715_v10 = vld [vmem:[%s5523_s14 + $0x1a8] ss:$16 sps:$4 sm:$0xff]  }
 0x2e1   : > { %v4417_v19 = vadd.f32 %v5777_v55, %v1607_v49  ;;  %v4718_v49 = vld [vmem:[%s5523_s14 + $0x1c8] ss:$16 sps:$4 sm:$0xff]  }
 0x2e2   : > { %v6039_v26 = vpack.c.bf16 %v4416_v11, %v4414_v15  ;;  %2108 = vmatpush1.bf16.msra.mxu1 %v4691_v4  ;;  %v4709_v15 = vld [vmem:[%s5523_s14 + $0x168] ss:$16 sps:$4 sm:$0xff]   ;;  %v4720_v11 = vld [vmem:[%s5523_s14 + $0x1cc] ss:$16 sps:$4 sm:$0xff]  }
 0x2e3   : > { %v6042_v31 = vpack.c.bf16 %v4417_v19, %v4415_v9  ;;  %2109 = vmatprep.subr.bf16.mxu1 %v4696_v16  ;;  %v4712_v4 = vld [vmem:[%s5523_s14 + $0x188] ss:$16 sps:$4 sm:$0xff]   ;;  %v4717_v9 = vld [vmem:[%s5523_s14 + $0x1ac] ss:$16 sps:$4 sm:$0xff]  }
 0x2e4   : > { %v6797_v16 = vld [vmem:[#allocation13_spill] sm:$0xff] }
 0x2e5   : > { %2047 = vmatmul.mubr.bf16.gmra.mrb[44].mxu1 %v6011_v18  ;;  %v4723_v19 = vld [vmem:[%s5523_s14 + $0x1ec] ss:$16 sps:$4 sm:$0xff]  }
 0x2e6   : > { %2110 = vmatpush1.bf16.msra.mxu1 %v4694_v29  ;;  %2056 = vmatprep.mubr.bf16.mxu1 %v5729_v8  ;;  %v4721_v29 = vld [vmem:[%s5523_s14 + $0x1e8] ss:$16 sps:$4 sm:$0xff]  }
 0x2e7   : > { %2111 = vmatprep.subr.bf16.mxu1 %v4699_v32  ;;  %v6798_v32 = vld [vmem:[#allocation12_spill] sm:$0xff] }
 0x2ea   : > { %2112 = vmatpush1.bf16.msra.mxu1 %v4697_v33  ;;  %v6799_v33 = vld [vmem:[#allocation15_spill] sm:$0xff] }
 0x2eb   : > { %2113 = vmatprep.subr.bf16.mxu1 %v4702_v39  ;;  %v6800_v39 = vld [vmem:[#allocation14_spill] sm:$0xff] }
 0x2ed   : > { %2057 = vmatmul.mubr.bf16.gmra.mrb[48].mxu1 %v6028_v61 }
 0x2ee   : > { %2114 = vmatpush1.bf16.msra.mxu1 %v4700_v41  ;;  %2066 = vmatprep.mubr.bf16.mxu1 %v5734_v13  ;;  %v6801_v41 = vld [vmem:[#allocation16_spill] sm:$0xff] }
 0x2ef   : > { %2115 = vmatprep.subr.bf16.mxu1 %v4705_v44  ;;  %v6802_v44 = vld [vmem:[#allocation17_spill] sm:$0xff] }
 0x2f2   : > { %2116 = vmatpush1.bf16.msra.mxu1 %v4703_v58  ;;  %v6803_v58 = vld [vmem:[#allocation18_spill] sm:$0xff] }
 0x2f3   : > { %2117 = vmatprep.subr.bf16.mxu1 %v4708_v59  ;;  %v6804_v59 = vld [vmem:[#allocation19_spill] sm:$0xff] }
 0x2f5   : > { %2067 = vmatmul.mubr.bf16.gmra.mrb[52].mxu1 %v6025_v5 }
 0x2f6   : > { %2118 = vmatpush1.bf16.msra.mxu1 %v4706_v45  ;;  %2076 = vmatprep.mubr.bf16.mxu1 %v5737_v14  ;;  %v6805_v45 = vld [vmem:[#allocation20_spill] sm:$0xff] }
 0x2f7   : > { %2119 = vmatprep.subr.bf16.mxu1 %v4711_v56  ;;  %v6806_v56 = vld [vmem:[#allocation21_spill] sm:$0xff] }
 0x2fa   : > { %2120 = vmatpush1.bf16.msra.mxu1 %v4709_v15  ;;  %v6809_v15 = vld [vmem:[#allocation24_spill] sm:$0xff] }
 0x2fb   : > { %2121 = vmatprep.subr.bf16.mxu1 %v4714_v27  ;;  %v6810_v27 = vld [vmem:[#allocation25_spill] sm:$0xff] }
 0x2fd   : > { %2077 = vmatmul.mubr.bf16.gmra.mrb[56].mxu1 %v6042_v31 }
 0x2fe   : > { %2122 = vmatpush1.bf16.msra.mxu1 %v4712_v4  ;;  %2086 = vmatprep.mubr.bf16.mxu1 %v6797_v16  ;;  %v6813_v4 = vld [vmem:[#allocation28_spill] sm:$0xff] }
 0x2ff   : > { %2123 = vmatprep.subr.bf16.mxu1 %v4717_v9  ;;  %v6814_v9 = vld [vmem:[#allocation29_spill] sm:$0xff] }
 0x302   : > { %2124 = vmatpush1.bf16.msra.mxu1 %v4715_v10 }
 0x303   : > { %2125 = vmatprep.subr.bf16.mxu1 %v4720_v11 }
 0x305   : > { %2087 = vmatmul.mubr.bf16.gmra.mrb[60].mxu1 %v6039_v26 }
 0x306   : > { %2126 = vmatpush1.bf16.msra.mxu1 %v4718_v49  ;;  %2129 = vmatprep.mubr.bf16.mxu1 %v6798_v32 }
 0x307   : > { %2127 = vmatprep.subr.bf16.mxu1 %v4723_v19 }
 0x30a   : > { %2128 = vmatpush1.bf16.msra.mxu1 %v4721_v29 }
 0x30b   : > { %3103 = vmatprep.subr.bf16.mxu1 %v6799_v33 }
 0x30d   : > { %2130 = vmatmul.mubr.bf16.vlgmr.msra.gmra.mrb[64].mxu1 %v6000_v3  ;;  %v6807_v3 = vld [vmem:[#allocation22_spill] sm:$0xff] }
 0x30e   : > { %2139 = vmatprep.mubr.bf16.mxu1 %v5703_v60  ;;  %3104 = vmatpush1.bf16.msra.mxu1 %v6800_v39  ;;  %v6808_v60 = vld [vmem:[#allocation23_spill] sm:$0xff] }
 0x30f   : > { %3105 = vmatprep.subr.bf16.mxu1 %v6801_v41 }
 0x312   : > { %3106 = vmatpush1.bf16.msra.mxu1 %v6802_v44 }
 0x313   : > { %3107 = vmatprep.subr.bf16.mxu1 %v6803_v58 }
 0x315   : > { %2140 = vmatmul.mubr.bf16.gmra.mrb[68].mxu1 %v5997_v12  ;;  %v6811_v12 = vld [vmem:[#allocation26_spill] sm:$0xff] }
 0x316   : > { %2149 = vmatprep.mubr.bf16.mxu1 %v5718_v2  ;;  %3108 = vmatpush1.bf16.msra.mxu1 %v6804_v59  ;;  %v6812_v2 = vld [vmem:[#allocation27_spill] sm:$0xff] }
 0x317   : > { %3109 = vmatprep.subr.bf16.mxu1 %v6805_v45 }
 0x31a   : > { %3110 = vmatpush1.bf16.msra.mxu1 %v6806_v56 }
 0x31b   : > { %3111 = vmatprep.subr.bf16.mxu1 %v6807_v3 }
 0x31d   : > { %2150 = vmatmul.mubr.bf16.gmra.mrb[72].mxu1 %v6014_v48  ;;  %v6815_v48 = vld [vmem:[#allocation30_spill] sm:$0xff] }
 0x31e   : > { %2159 = vmatprep.mubr.bf16.mxu1 %v5726_v7  ;;  %3112 = vmatpush1.bf16.msra.mxu1 %v6808_v60  ;;  %v6816_v7 = vld [vmem:[#allocation31_spill] sm:$0xff] }
 0x31f   : > { %3113 = vmatprep.subr.bf16.mxu1 %v6809_v15 }
 0x322   : > { %3114 = vmatpush1.bf16.msra.mxu1 %v6810_v27 }
 0x323   : > { %3115 = vmatprep.subr.bf16.mxu1 %v6811_v12 }
 0x325   : > { %2160 = vmatmul.mubr.bf16.gmra.mrb[76].mxu1 %v6011_v18 }
 0x326   : > { %2169 = vmatprep.mubr.bf16.mxu1 %v5729_v8  ;;  %3116 = vmatpush1.bf16.msra.mxu1 %v6812_v2  ;;  %v6817_v8 = vld [vmem:[#allocation32_spill] sm:$0xff] }
 0x327   : > { %3117 = vmatprep.subr.bf16.mxu1 %v6813_v4 }
 0x32a   : > { %3118 = vmatpush1.bf16.msra.mxu1 %v6814_v9 }
 0x32b   : > { %3119 = vmatprep.subr.bf16.mxu1 %v6815_v48 }
 0x32d   : > { %2170 = vmatmul.mubr.bf16.gmra.mrb[80].mxu1 %v6028_v61 }
 0x32e   : > { %2179 = vmatprep.mubr.bf16.mxu1 %v5734_v13  ;;  %3120 = vmatpush1.bf16.msra.mxu1 %v5881_v1 }
 0x32f   : > { %3121 = vmatprep.subr.bf16.mxu1 %v5885_v47  ;;  %v1644_v47 = vlaneseq }
 0x332   : > { %3122 = vmatpush1.bf16.msra.mxu1 %v5889_v54 }
 0x333   : > { %3123 = vmatprep.subr.bf16.mxu1 %v5893_v42 }
 0x335   : > { %2180 = vmatmul.mubr.bf16.gmra.mrb[84].mxu1 %v6025_v5 }
 0x336   : > { %2189 = vmatprep.mubr.bf16.mxu1 %v5737_v14  ;;  %3124 = vmatpush1.bf16.msra.mxu1 %v5898_v17 }
 0x337   : > { %3125 = vmatprep.subr.bf16.mxu1 %v6816_v7 }
 0x33a   : > { %3126 = vmatpush1.bf16.msra.mxu1 %v6817_v8 }
 0x33b   : > { %3127 = vmatprep.subr.bf16.mxu1 %v5912_v6 }
 0x33d   : > { %2190 = vmatmul.mubr.bf16.gmra.mrb[88].mxu1 %v6042_v31 }
 0x33e   : > { %2199 = vmatprep.mubr.bf16.mxu1 %v6797_v16  ;;  %3128 = vmatpush1.bf16.msra.mxu1 %v5918_v51 }
 0x33f   : > { %3129 = vmatprep.subr.bf16.mxu1 %v5922_v50  ;;  %v6120_v50 = vshrl.u32 %v1644_v47, 7 }
 0x342   : > { %3130 = vmatpush1.bf16.msra.mxu1 %v5928_v62  ;;  %v1646_v62 = vsub.s32 0, %v6120_v50 }
 0x343   : > { %3131 = vmatprep.subr.bf16.mxu1 %v5974_v21 }
 0x345   : > { %2200 = vmatmul.mubr.bf16.gmra.mrb[92].mxu1 %v6039_v26 }
 0x346   : > { %3132 = vmatpush1.bf16.msra.mxu1 %v5977_v22  ;;  %v6124_v22 = vld [vmem:[%s5521_s11] sm:$0xf] }
 0x347   : > { %3133 = vmatprep.subr.bf16.mxu1 %v5982_v23  ;;  %v1650_v23 = vsub.s32 1, %v6120_v50  ;;  %v6128_v5 = vrot.slane %v6124_v22, %v1646_v62 }
 0x349   : > { %v6131_v61 = vrot.slane %v6124_v22, %v1650_v23 }
 0x34a   : > { %3134 = vmatpush1.bf16.msra.mxu1 %v5985_v24 }
 0x34b   : > { %3216 = vmatprep.subr.bf16.mxu1 %v5990_v25 }
 0x3a0   : > { %v2018_v13 = vpop.f32.mrb[32].mxu1 }
 0x3a1   : > { %v2020_v14 = vpop.f32.mrb[33].mxu1  ;;  %v2019_v26 = vadd.f32 %v2018_v13, %v6128_v5 }
 0x3a2   : > { %v2022_v42 = vpop.f32.mrb[34].mxu1  ;;  %v2021_v10 = vadd.f32 %v2020_v14, %v6131_v61 }
 0x3a3   : > { %v2024_v1 = vpop.f32.mrb[35].mxu1  ;;  %v2023_v11 = vadd.f32 %v2022_v42, %v6128_v5  ;;  %v3906_v32 = vmul.f32 -1.442695, %v2019_v26 }
 0x3a4   : > { %v2025_v19 = vadd.f32 %v2024_v1, %v6131_v61  ;;  %v3922_v39 = vmul.f32 -1.442695, %v2021_v10 }
 0x3a5   : > { %v3907_v41 = vmul.f32 -1.442695, %v2023_v11  ;;  %4724 = vpow2.f32 %v3906_v32 }
 0x3a6   : > { %v3923_v44 = vmul.f32 -1.442695, %v2025_v19  ;;  %4726 = vpow2.f32 %v3922_v39 }
 0x3a7   : > { %4728 = vpow2.f32 %v3907_v41 }
 0x3a8   : > { %v2028_v54 = vpop.f32.mrb[36].mxu1  ;;  %4730 = vpow2.f32 %v3923_v44 }
 0x3a9   : > { %v2030_v17 = vpop.f32.mrb[37].mxu1  ;;  %v2029_v33 = vadd.f32 %v2028_v54, %v6128_v5 }
 0x3aa   : > { %v2032_v6 = vpop.f32.mrb[38].mxu1  ;;  %v2031_v58 = vadd.f32 %v2030_v17, %v6131_v61 }
 0x3ab   : > { %v2034_v51 = vpop.f32.mrb[39].mxu1  ;;  %v3908_v59 = vmul.f32 -1.442695, %v2029_v33  ;;  %v2033_v45 = vadd.f32 %v2032_v6, %v6128_v5 }
 0x3ac   : > { %v2035_v60 = vadd.f32 %v2034_v51, %v6131_v61  ;;  %v3924_v27 = vmul.f32 -1.442695, %v2031_v58 }
 0x3ad   : > { %4732 = vpow2.f32 %v3908_v59  ;;  %v3909_v2 = vmul.f32 -1.442695, %v2033_v45 }
 0x3ae   : > { %v3925_v48 = vmul.f32 -1.442695, %v2035_v60  ;;  %4734 = vpow2.f32 %v3924_v27 }
 0x3af   : > { %4736 = vpow2.f32 %v3909_v2  ;;  %v4725_v47 = vpop.eup %4724 }
 0x3b0   : > { %v2038_v21 = vpop.f32.mrb[40].mxu1  ;;  %4738 = vpow2.f32 %v3925_v48  ;;  %v4727_v6 = vpop.eup %4726 }
 0x3b1   : > { %v2040_v24 = vpop.f32.mrb[41].mxu1  ;;  %v2039_v4 = vadd.f32 %v2038_v21, %v6128_v5  ;;  %v4729_v21 = vpop.eup %4728 }
 0x3b2   : > { %v2042_v25 = vpop.f32.mrb[42].mxu1  ;;  %v2041_v9 = vadd.f32 %v2040_v24, %v6131_v61  ;;  %v4731_v23 = vpop.eup %4730  ;;  %v2258_v24 = vadd.f32 1.0, %v4725_v47  ;;  %v2259_v10 = vadd.f32 1.0, %v4729_v21 }
 0x3b3   : > { %v2044_v18 = vpop.f32.mrb[43].mxu1  ;;  %v2043_v7 = vadd.f32 %v2042_v25, %v6128_v5  ;;  %v3910_v13 = vmul.f32 -1.442695, %v2039_v4  ;;  %v2355_v19 = vadd.f32 1.0, %v4731_v23 }
 0x3b4   : > { %v2045_v8 = vadd.f32 %v2044_v18, %v6131_v61  ;;  %v3926_v42 = vmul.f32 -1.442695, %v2041_v9  ;;  %v2354_v18 = vadd.f32 1.0, %v4727_v6 }
 0x3b5   : > { %v3911_v54 = vmul.f32 -1.442695, %v2043_v7  ;;  %4740 = vpow2.f32 %v3910_v13 }
 0x3b6   : > { %v3927_v51 = vmul.f32 -1.442695, %v2045_v8  ;;  %4742 = vpow2.f32 %v3926_v42 }
 0x3b7   : > { %v4733_v25 = vpop.eup %4732  ;;  %4744 = vpow2.f32 %v3911_v54 }
 0x3b8   : > { %v2048_v31 = vpop.f32.mrb[44].mxu1  ;;  %4746 = vpow2.f32 %v3927_v51  ;;  %v4735_v33 = vpop.eup %4734  ;;  %v2260_v39 = vadd.f32 1.0, %v4733_v25 }
 0x3b9   : > { %v2050_v16 = vpop.f32.mrb[45].mxu1  ;;  %v2049_v26 = vadd.f32 %v2048_v31, %v6128_v5  ;;  %4748 = vrcp.f32 %v2258_v24  ;;  %v4737_v44 = vpop.eup %4736  ;;  %v2356_v27 = vadd.f32 1.0, %v4735_v33  ;;  %v1658_v24 = vsub.s32 3, %v6120_v50 }
 0x3ba   : > { %v2052_v49 = vpop.f32.mrb[46].mxu1  ;;  %v2051_v11 = vadd.f32 %v2050_v16, %v6131_v61  ;;  %4750 = vrcp.f32 %v2354_v18  ;;  %v4739_v16 = vpop.eup %4738  ;;  %v2261_v4 = vadd.f32 1.0, %v4737_v44 }
 0x3bb   : > { %v6137_v29 = vpop.f32.mrb[47].mxu1  ;;  %v3912_v58 = vmul.f32 -1.442695, %v2049_v26  ;;  %v2053_v59 = vadd.f32 %v2052_v49, %v6128_v5  ;;  %4752 = vrcp.f32 %v2259_v10  ;;  %v2357_v8 = vadd.f32 1.0, %v4739_v16 }
 0x3bc   : > { %v3928_v31 = vmul.f32 -1.442695, %v2051_v11  ;;  %4754 = vrcp.f32 %v2355_v19  ;;  %v2055_v2 = vadd.f32 %v6137_v29, %v6131_v61  ;;  %v1654_v19 = vsub.s32 2, %v6120_v50 }
 0x3bd   : > { %4756 = vrcp.f32 %v2260_v39  ;;  %v3913_v48 = vmul.f32 -1.442695, %v2053_v59 }
 0x3be   : > { %4758 = vpow2.f32 %v3912_v58  ;;  %v3929_v13 = vmul.f32 -1.442695, %v2055_v2  ;;  %v6202_v50 = vrot.slane %v6124_v22, %v1654_v19 }
 0x3bf   : > { %v4741_v9 = vpop.eup %4740  ;;  %4760 = vpow2.f32 %v3928_v31 }
 0x3c0   : > { %v6142_v56 = vpop.f32.mrb[48].mxu1  ;;  %v4743_v7 = vpop.eup %4742  ;;  %4762 = vrcp.f32 %v2356_v27  ;;  %v2262_v54 = vadd.f32 1.0, %v4741_v9 }
 0x3c1   : > { %v6144_v3 = vpop.f32.mrb[49].mxu1  ;;  %v4745_v49 = vpop.eup %4744  ;;  %4764 = vrcp.f32 %v2261_v4  ;;  %v2059_v6 = vadd.f32 %v6142_v56, %v6128_v5  ;;  %v2358_v51 = vadd.f32 1.0, %v4743_v7 }
 0x3c2   : > { %v6147_v15 = vpop.f32.mrb[50].mxu1  ;;  %v4747_v47 = vpop.eup %4746  ;;  %4766 = vpow2.f32 %v3913_v48  ;;  %v2061_v21 = vadd.f32 %v6144_v3, %v6131_v61  ;;  %v2263_v18 = vadd.f32 1.0, %v4745_v49 }
 0x3c3   : > { %v6149_v12 = vpop.f32.mrb[51].mxu1  ;;  %v4749_v25 = vpop.eup %4748  ;;  %4768 = vrcp.f32 %v2357_v8  ;;  %v2063_v26 = vadd.f32 %v6147_v15, %v6128_v5  ;;  %v2359_v11 = vadd.f32 1.0, %v4747_v47  ;;  %v3914_v3 = vmul.f32 -1.442695, %v2059_v6 }
 0x3c4   : > { %v6191_v56 = vpop.eup %4750  ;;  %4770 = vpow2.f32 %v3929_v13  ;;  %v2065_v39 = vadd.f32 %v6149_v12, %v6131_v61  ;;  %v3930_v58 = vmul.f32 -1.442695, %v2061_v21  ;;  %v6199_v15 = vrot.slane %v6124_v22, %v1658_v24 }
 0x3c5   : > { %v4753_v33 = vpop.eup %4752  ;;  %4772 = vrcp.f32 %v2262_v54  ;;  %v3915_v31 = vmul.f32 -1.442695, %v2063_v26 }
 0x3c6   : > { %v6196_v44 = vpop.eup %4754  ;;  %4774 = vrcp.f32 %v2358_v51  ;;  %v3931_v4 = vmul.f32 -1.442695, %v2065_v39 }
 0x3c7   : > { %v4757_v59 = vpop.eup %4756  ;;  %4776 = vrcp.f32 %v2263_v18 }
 0x3c8   : > { %v6155_v14 = vpop.f32.mrb[52].mxu1  ;;  %v4759_v16 = vpop.eup %4758  ;;  %4778 = vrcp.f32 %v2359_v11 }
 0x3c9   : > { %v6157_v1 = vpop.f32.mrb[53].mxu1  ;;  %v4761_v2 = vpop.eup %4760  ;;  %4780 = vpow2.f32 %v3914_v3  ;;  %v2264_v49 = vadd.f32 1.0, %v4759_v16  ;;  %v2069_v13 = vadd.f32 %v6155_v14, %v6128_v5 }
 0x3ca   : > { %v6159_v17 = vpop.f32.mrb[54].mxu1  ;;  %v6204_v9 = vpop.eup %4762  ;;  %4782 = vpow2.f32 %v3930_v58  ;;  %v2360_v54 = vadd.f32 1.0, %v4761_v2  ;;  %v2071_v26 = vadd.f32 %v6157_v1, %v6131_v61 }
 0x3cb   : > { %v6161_v62 = vpop.f32.mrb[55].mxu1  ;;  %v4765_v8 = vpop.eup %4764  ;;  %4784 = vpow2.f32 %v3915_v31  ;;  %v2073_v58 = vadd.f32 %v6159_v17, %v6128_v5  ;;  %v3916_v16 = vmul.f32 -1.442695, %v2069_v13 }
 0x3cc   : > { %v4767_v22 = vpop.eup %4766  ;;  %4786 = vpow2.f32 %v3931_v4 }
 0x3cd   : > { %v6211_v24 = vpop.eup %4768  ;;  %4788 = vrcp.f32 %v2264_v49  ;;  %v2265_v39 = vadd.f32 1.0, %v4767_v22 }
 0x3ce   : > { %v4771_v18 = vpop.eup %4770  ;;  %4790 = vrcp.f32 %v2360_v54 }
 0x3cf   : > { %v4773_v14 = vpop.eup %4772  ;;  %v2361_v4 = vadd.f32 1.0, %v4771_v18 }
 0x3d0   : > { %v6165_v32 = vpop.f32.mrb[56].mxu1  ;;  %v6220_v31 = vpop.eup %4774 }
 0x3d1   : > { %v6167_v41 = vpop.f32.mrb[57].mxu1  ;;  %v6222_v1 = vpop.eup %4776 }
 0x3d2   : > { %v6170_v45 = vpop.f32.mrb[58].mxu1 }
 0x3d3   : > { %v6172_v60 = vpop.f32.mrb[59].mxu1 }
 0x3d8   : > { %v6176_v42 = vpop.f32.mrb[60].mxu1 }
 0x3d9   : > { %v6180_v29 = vpop.f32.mrb[61].mxu1 }
 0x3da   : > { %v6184_v23 = vpop.f32.mrb[62].mxu1 }
 0x3db   : > { %v6189_v10 = vpop.f32.mrb[63].mxu1 }
 0x3e0   : > { %v2131_v27 = vpop.f32.mrb[64].mxu1 }
 0x3e1   : > { %v2133_v12 = vpop.f32.mrb[65].mxu1  ;;  %v2132_v6 = vadd.f32 %v2131_v27, %v6202_v50 }
 0x3e2   : > { %v2134_v48 = vadd.f32 %v2133_v12, %v6199_v15  ;;  %v2135_v7 = vpop.f32.mrb[66].mxu1  ;;  %v6224_v12 = vpop.eup %4778 }
 0x3e3   : > { %v2137_v47 = vpop.f32.mrb[67].mxu1  ;;  %v2136_v19 = vadd.f32 %v2135_v7, %v6202_v50  ;;  %v4781_v49 = vpop.eup %4780 }
 0x3e4   : > { %v2402_v51 = vmul.f32 %v4749_v25, %v2134_v48  ;;  %v2138_v21 = vadd.f32 %v2137_v47, %v6199_v15  ;;  %v2075_v25 = vadd.f32 %v6161_v62, %v6131_v61  ;;  %v3932_v48 = vmul.f32 -1.442695, %v2071_v26  ;;  %v4783_v13 = vpop.eup %4782 }
 0x3e5   : > { %v3917_v62 = vmul.f32 -1.442695, %v2073_v58 }
 0x3e6   : > { %v2418_v11 = vadd.f32 %v2402_v51, %v2132_v6  ;;  %v2403_v3 = vmul.f32 %v4753_v33, %v2138_v21  ;;  %v3933_v47 = vmul.f32 -1.442695, %v2075_v25  ;;  %v4785_v21 = vpop.eup %4784 }
 0x3e8   : > { %v2419_v27 = vadd.f32 %v2403_v3, %v2136_v19  ;;  %v2141_v2 = vpop.f32.mrb[68].mxu1  ;;  %4792 = vtanh.f32 %v2418_v11  ;;  %v6230_v19 = vpop.eup %4786  ;;  %v2266_v3 = vadd.f32 1.0, %v4781_v49  ;;  %v2451_v49 = vsub.f32 1.0, %v6196_v44 }
 0x3e9   : > { %v2143_v33 = vpop.f32.mrb[69].mxu1  ;;  %v2142_v54 = vadd.f32 %v2141_v2, %v6202_v50 }
 0x3ea   : > { %4794 = vtanh.f32 %v2419_v27  ;;  %v2144_v17 = vadd.f32 %v2143_v33, %v6199_v15  ;;  %v2145_v7 = vpop.f32.mrb[70].mxu1  ;;  %v2083_v27 = vadd.f32 %v6170_v45, %v6128_v5  ;;  %v5046_v33 = vld [vmem:[#allocation8] sm:$0xff]  ;;  %v2081_v45 = vadd.f32 %v6167_v41, %v6131_v61 }
 0x3eb   : > { %4796 = vrcp.f32 %v2265_v39  ;;  %v2147_v22 = vpop.f32.mrb[71].mxu1  ;;  %v2146_v26 = vadd.f32 %v2145_v7, %v6202_v50  ;;  %v2079_v39 = vadd.f32 %v6165_v32, %v6128_v5 }
 0x3ec   : > { %4798 = vpow2.f32 %v3916_v16  ;;  %v2404_v6 = vmul.f32 %v4757_v59, %v2144_v17  ;;  %v2148_v51 = vadd.f32 %v2147_v22, %v6199_v15  ;;  %v6234_v59 = vpop.eup %4788  ;;  %v2362_v16 = vadd.f32 1.0, %v4783_v13 }
 0x3ed   : > { %4800 = vrcp.f32 %v2361_v4  ;;  %v6238_v4 = vpop.eup %4790 }
 0x3ee   : > { %4802 = vpow2.f32 %v3932_v48  ;;  %v2420_v18 = vadd.f32 %v2404_v6, %v2142_v54  ;;  %v2405_v11 = vmul.f32 %v4765_v8, %v2148_v51  ;;  %v2450_v8 = vsub.f32 1.0, %v6191_v56 }
 0x3ef   : > { %4804 = vpow2.f32 %v3917_v62  ;;  %v2482_v48 = vmul.f32 %v5046_v33, %v6191_v56  ;;  %v3918_v62 = vmul.f32 -1.442695, %v2079_v39 }
 0x3f0   : > { %4806 = vpow2.f32 %v3933_v47  ;;  %v2421_v58 = vadd.f32 %v2405_v11, %v2146_v26  ;;  %v2151_v25 = vpop.f32.mrb[72].mxu1  ;;  %v3919_v11 = vmul.f32 -1.442695, %v2083_v27 }
 0x3f1   : > { %4808 = vtanh.f32 %v2420_v18  ;;  %v2153_v2 = vpop.f32.mrb[73].mxu1  ;;  %v2152_v13 = vadd.f32 %v2151_v25, %v6202_v50  ;;  %v5047_v18 = vld [vmem:[#allocation8 + $0x8] sm:$0xff] }
 0x3f2   : > { %4810 = vtanh.f32 %v2421_v58  ;;  %v2154_v32 = vadd.f32 %v2153_v2, %v6199_v15  ;;  %v2155_v17 = vpop.f32.mrb[74].mxu1  ;;  %v4793_v7 = vpop.eup %4792  ;;  %v2483_v26 = vmul.f32 %v5047_v18, %v6196_v44 }
 0x3f3   : > { %4812 = vrcp.f32 %v2266_v3  ;;  %v2157_v47 = vpop.f32.mrb[75].mxu1  ;;  %v2466_v56 = vmul.f32 %v4793_v7, %v2450_v8  ;;  %v2156_v2 = vadd.f32 %v2155_v17, %v6202_v50  ;;  %v2089_v8 = vadd.f32 %v6176_v42, %v6128_v5 }
 0x3f4   : > { %v4795_v22 = vpop.eup %4794  ;;  %v2406_v54 = vmul.f32 %v4773_v14, %v2154_v32  ;;  %v2158_v6 = vadd.f32 %v2157_v47, %v6199_v15  ;;  %4814 = vrcp.f32 %v2362_v16  ;;  %v2267_v14 = vadd.f32 1.0, %v4785_v21 }
 0x3f5   : > { %v4797_v51 = vpop.eup %4796  ;;  %v2467_v58 = vmul.f32 %v4795_v22, %v2451_v49  ;;  %v6251_v33 = vadd.f32 %v2482_v48, %v2466_v56  ;;  %4816 = vpow2.f32 %v3918_v62  ;;  %v3934_v16 = vmul.f32 -1.442695, %v2081_v45 }
 0x3f6   : > { %v4799_v3 = vpop.eup %4798  ;;  %v2422_v39 = vadd.f32 %v2406_v54, %v2152_v13  ;;  %v2407_v41 = vmul.f32 %v6222_v1, %v2158_v6  ;;  %v2452_v17 = vsub.f32 1.0, %v6204_v9  ;;  %v2093_v21 = vadd.f32 %v6184_v23, %v6128_v5  ;;  %v5048_v13 = vld [vmem:[#allocation8 + $0x10] sm:$0xff] }
 0x3f7   : > { %v6253_v25 = vpop.eup %4800  ;;  %v6257_v32 = vadd.f32 %v2483_v26, %v2467_v58  ;;  %v2268_v48 = vadd.f32 1.0, %v4799_v3  ;;  %v2453_v22 = vsub.f32 1.0, %v6211_v24  ;;  %v2484_v54 = vmul.f32 %v5048_v13, %v6204_v9 }
 0x3f8   : > { %v6259_v44 = vpop.eup %4802  ;;  %4818 = vtanh.f32 %v2422_v39  ;;  %v2423_v27 = vadd.f32 %v2407_v41, %v2156_v2  ;;  %v2161_v7 = vpop.f32.mrb[76].mxu1  ;;  %v2085_v23 = vadd.f32 %v6172_v60, %v6131_v61  ;;  %v3920_v56 = vmul.f32 -1.442695, %v2089_v8  ;;  %v5049_v39 = vld [vmem:[%s5505_s23 + $0x8] ss:$12 sps:$4 sm:$0xff]  }
 0x3f9   : > { %v4805_v1 = vpop.eup %4804  ;;  %4820 = vpow2.f32 %v3919_v11  ;;  %v2163_v49 = vpop.f32.mrb[77].mxu1  ;;  %v6266_v42 = vpack.c.bf16 %v6257_v32, %v6251_v33  ;;  %v2162_v18 = vadd.f32 %v2161_v7, %v6202_v50  ;;  %v3921_v2 = vmul.f32 -1.442695, %v2093_v21 }
 0x3fa   : > { %v6268_v62 = vpop.eup %4806  ;;  %4822 = vtanh.f32 %v2423_v27  ;;  %v2164_v45 = vadd.f32 %v2163_v49, %v6199_v15  ;;  %v2165_v47 = vpop.f32.mrb[78].mxu1  ;;  %v5051_v27 = vld [vmem:[%s5505_s23 + $0x20] ss:$12 sps:$4 sm:$0xff]  }
 0x3fb   : > { %v4809_v6 = vpop.eup %4808  ;;  %4824 = vrcp.f32 %v2267_v14  ;;  %v2167_v26 = vpop.f32.mrb[79].mxu1  ;;  %2555 = vmatmul.mubr.bf16.vlgmr.msra.gmra.mrb[48].mxu0 %v6266_v42  ;;  %3135 = vmatprep.mubr.bf16.mxu1 %v6266_v42  ;;  %v5050_v14 = vld [vmem:[#allocation8 + $0x18] sm:$0xff] }
 0x3fc   : > { %v4811_v11 = vpop.eup %4810  ;;  %4826 = vpow2.f32 %v3934_v16  ;;  %v2408_v58 = vmul.f32 %v6234_v59, %v2164_v45  ;;  %v2168_v9 = vadd.f32 %v2167_v26, %v6199_v15  ;;  %2564 = vmatprep.mubr.bf16.mxu0 %v6796_v20  ;;  %v2468_v3 = vmul.f32 %v4809_v6, %v2452_v17  ;;  %4275 = vmatpush3.bf16.msra.mxu0 %v5049_v39 }
 0x3fd   : > { %v4813_v60 = vpop.eup %4812  ;;  %4828 = vrcp.f32 %v2268_v48  ;;  %v2469_v41 = vmul.f32 %v4811_v11, %v2453_v22  ;;  %v2485_v8 = vmul.f32 %v5050_v14, %v6211_v24  ;;  %4276 = vmatprep.subr.bf16.mxu0 %v5051_v27  ;;  %v2166_v16 = vadd.f32 %v2165_v47, %v6202_v50 }
 0x3fe   : > { %v2424_v7 = vadd.f32 %v2408_v58, %v2162_v18  ;;  %v2409_v59 = vmul.f32 %v4797_v51, %v2168_v9  ;;  %v6285_v49 = vadd.f32 %v2484_v54, %v2468_v3  ;;  %v6287_v45 = vpop.eup %4814  ;;  %v2269_v17 = vadd.f32 1.0, %v4805_v1  ;;  %v5052_v54 = vld [vmem:[#allocation8 + $0x20] sm:$0xff] }
 0x3ff   : > { %4830 = vpow2.f32 %v3920_v56  ;;  %v2091_v48 = vadd.f32 %v6180_v29, %v6131_v61  ;;  %v6291_v21 = vadd.f32 %v2485_v8, %v2469_v41  ;;  %v3935_v22 = vmul.f32 -1.442695, %v2085_v23  ;;  %v4817_v6 = vpop.eup %4816  ;;  %v5053_v29 = vld [vmem:[%s5505_s23 + $0x38] ss:$12 sps:$4 sm:$0xff]  }
 0x400   : > { %4832 = vtanh.f32 %v2424_v7  ;;  %v2425_v24 = vadd.f32 %v2409_v59, %v2166_v16  ;;  %v2171_v13 = vpop.f32.mrb[80].mxu1  ;;  %4277 = vmatpush3.bf16.msra.mxu0 %v5051_v27  ;;  %v2454_v1 = vsub.f32 1.0, %v6220_v31  ;;  %v2486_v56 = vmul.f32 %v5052_v54, %v6220_v31  ;;  %v5054_v31 = vld [vmem:[#allocation8 + $0x28] sm:$0xff] }
 0x401   : > { %4834 = vpow2.f32 %v3921_v2  ;;  %v2173_v51 = vpop.f32.mrb[81].mxu1  ;;  %v6295_v47 = vpack.c.bf16 %v6291_v21, %v6285_v49  ;;  %4278 = vmatprep.subr.bf16.mxu0 %v5053_v29  ;;  %v2363_v23 = vadd.f32 1.0, %v6230_v19  ;;  %v2455_v58 = vsub.f32 1.0, %v6224_v12 }
 0x402   : > { %v4819_v18 = vpop.eup %4818  ;;  %4836 = vtanh.f32 %v2425_v24  ;;  %v2174_v26 = vadd.f32 %v2173_v51, %v6199_v15  ;;  %v2175_v11 = vpop.f32.mrb[82].mxu1  ;;  %v3936_v3 = vmul.f32 -1.442695, %v2091_v48  ;;  %v2487_v41 = vmul.f32 %v5054_v31, %v6224_v12  ;;  %v5055_v24 = vld [vmem:[%s5505_s23 + $0x50] ss:$12 sps:$4 sm:$0xff]  }
 0x403   : > { %v4821_v9 = vpop.eup %4820  ;;  %4838 = vrcp.f32 %v2269_v17  ;;  %v2177_v39 = vpop.f32.mrb[83].mxu1  ;;  %2565 = vmatmul.mubr.bf16.gmra.mrb[52].mxu0 %v6295_v47  ;;  %v2470_v2 = vmul.f32 %v4819_v18, %v2454_v1  ;;  %v2172_v19 = vadd.f32 %v2171_v13, %v6202_v50  ;;  %v2270_v16 = vadd.f32 1.0, %v4817_v6 }
 0x404   : > { %v4823_v14 = vpop.eup %4822  ;;  %4840 = vpow2.f32 %v3935_v22  ;;  %v2410_v8 = vmul.f32 %v4813_v60, %v2174_v26  ;;  %v2178_v27 = vadd.f32 %v2177_v39, %v6199_v15  ;;  %2574 = vmatprep.mubr.bf16.mxu0 %v6796_v20  ;;  %4279 = vmatpush3.bf16.msra.mxu0 %v5053_v29  ;;  %v2095_v59 = vadd.f32 %v6189_v10, %v6131_v61 }
 0x405   : > { %v4825_v7 = vpop.eup %4824  ;;  %v2471_v17 = vmul.f32 %v4823_v14, %v2455_v58  ;;  %v6310_v48 = vadd.f32 %v2486_v56, %v2470_v2  ;;  %4280 = vmatprep.subr.bf16.mxu0 %v5055_v24  ;;  %4842 = vrcp.f32 %v2363_v23  ;;  %v2176_v60 = vadd.f32 %v2175_v11, %v6202_v50  ;;  %v5056_v58 = vld [vmem:[%s5505_s23 + $0x68] ss:$12 sps:$4 sm:$0xff]  }
 0x406   : > { %v4827_v12 = vpop.eup %4826  ;;  %v2426_v22 = vadd.f32 %v2410_v8, %v2172_v19  ;;  %v2411_v13 = vmul.f32 %v4825_v7, %v2178_v27  ;;  %v2271_v1 = vadd.f32 1.0, %v4821_v9  ;;  %4844 = vpow2.f32 %v3936_v3  ;;  %v5057_v2 = vld [vmem:[#allocation8 + $0x30] sm:$0xff]  ;;  %v5058_v27 = vld [vmem:[#allocation8 + $0x38] sm:$0xff] }
 0x407   : > { %v4829_v51 = vpop.eup %4828  ;;  %v6314_v54 = vadd.f32 %v2487_v41, %v2471_v17  ;;  %v2364_v6 = vadd.f32 1.0, %v6259_v44  ;;  %v3937_v18 = vmul.f32 -1.442695, %v2095_v59  ;;  %v2456_v11 = vsub.f32 1.0, %v6238_v4 }
 0x408   : > { %4846 = vtanh.f32 %v2426_v22  ;;  %v2427_v10 = vadd.f32 %v2411_v13, %v2176_v60  ;;  %v2181_v56 = vpop.f32.mrb[84].mxu1  ;;  %4281 = vmatpush3.bf16.msra.mxu0 %v5055_v24  ;;  %v2365_v3 = vadd.f32 1.0, %v6268_v62  ;;  %v2488_v31 = vmul.f32 %v5057_v2, %v6238_v4  ;;  %v5059_v13 = vld [vmem:[%s5505_s23 + $0x80] ss:$12 sps:$4 sm:$0xff]  }
 0x409   : > { %v4831_v29 = vpop.eup %4830  ;;  %4848 = vrcp.f32 %v2270_v16  ;;  %v2183_v23 = vpop.f32.mrb[85].mxu1  ;;  %v6319_v26 = vpack.c.bf16 %v6314_v54, %v6310_v48  ;;  %4282 = vmatprep.subr.bf16.mxu0 %v5056_v58  ;;  %v2457_v19 = vsub.f32 1.0, %v6253_v25  ;;  %v2489_v7 = vmul.f32 %v5058_v27, %v6253_v25 }
 0x40a   : > { %v4833_v9 = vpop.eup %4832  ;;  %4850 = vtanh.f32 %v2427_v10  ;;  %v2184_v44 = vadd.f32 %v2183_v23, %v6199_v15  ;;  %v2185_v39 = vpop.f32.mrb[86].mxu1  ;;  %v2182_v16 = vadd.f32 %v2181_v56, %v6202_v50  ;;  %v2272_v24 = vadd.f32 1.0, %v4831_v29 }
 0x40b   : > { %v4835_v41 = vpop.eup %4834  ;;  %4852 = vrcp.f32 %v2271_v1  ;;  %v2187_v14 = vpop.f32.mrb[87].mxu1  ;;  %2575 = vmatmul.mubr.bf16.gmra.mrb[56].mxu0 %v6319_v26  ;;  %v2472_v8 = vmul.f32 %v4833_v9, %v2456_v11  ;;  %v2366_v11 = vadd.f32 1.0, %v4827_v12 }
 0x40c   : > { %v4837_v62 = vpop.eup %4836  ;;  %4854 = vrcp.f32 %v2364_v6  ;;  %v2412_v59 = vmul.f32 %v4829_v51, %v2184_v44  ;;  %v2188_v17 = vadd.f32 %v2187_v14, %v6199_v15  ;;  %2584 = vmatprep.mubr.bf16.mxu0 %v6796_v20  ;;  %4283 = vmatpush3.bf16.msra.mxu0 %v5056_v58  ;;  %v2186_v6 = vadd.f32 %v2185_v39, %v6202_v50  ;;  %v5060_v39 = vld [vmem:[%s5505_s23 + $0x98] ss:$12 sps:$4 sm:$0xff]  }
 0x40d   : > { %v4839_v4 = vpop.eup %4838  ;;  %4856 = vpow2.f32 %v3937_v18  ;;  %v2473_v22 = vmul.f32 %v4837_v62, %v2457_v19  ;;  %v6332_v60 = vadd.f32 %v2488_v31, %v2472_v8  ;;  %4284 = vmatprep.subr.bf16.mxu0 %v5059_v13  ;;  %v2273_v10 = vadd.f32 1.0, %v4835_v41 }
 0x40e   : > { %v4841_v1 = vpop.eup %4840  ;;  %4858 = vrcp.f32 %v2365_v3  ;;  %v2428_v25 = vadd.f32 %v2412_v59, %v2182_v16  ;;  %v2413_v51 = vmul.f32 %v4839_v4, %v2188_v17  ;;  %v2458_v44 = vsub.f32 1.0, %v6287_v45 }
 0x40f   : > { %v6336_v56 = vadd.f32 %v2489_v7, %v2473_v22  ;;  %v4843_v23 = vpop.eup %4842  ;;  %v2367_v31 = vadd.f32 1.0, %v4841_v1  ;;  %v5061_v7 = vld [vmem:[#allocation8 + $0x40] sm:$0xff] }
 0x410   : > { %4860 = vtanh.f32 %v2428_v25  ;;  %v2429_v29 = vadd.f32 %v2413_v51, %v2186_v6  ;;  %v2191_v18 = vpop.f32.mrb[88].mxu1  ;;  %4285 = vmatpush3.bf16.msra.mxu0 %v5059_v13  ;;  %v4845_v58 = vpop.eup %4844  ;;  %v2459_v8 = vsub.f32 1.0, %v4843_v23  ;;  %v2490_v62 = vmul.f32 %v5061_v7, %v6287_v45  ;;  %v5062_v13 = vld [vmem:[#allocation8 + $0x48] sm:$0xff]  ;;  %v5063_v6 = vld [vmem:[%s5505_s23 + $0xb0] ss:$12 sps:$4 sm:$0xff]   ;;  %s5293_s23 = smov [#allocation8]  }
 0x411   : > { %4862 = vrcp.f32 %v2272_v24  ;;  %v2193_v9 = vpop.f32.mrb[89].mxu1  ;;  %v6340_v3 = vpack.c.bf16 %v6336_v56, %v6332_v60  ;;  %4286 = vmatprep.subr.bf16.mxu0 %v5060_v39  ;;  %v2192_v59 = vadd.f32 %v2191_v18, %v6202_v50  ;;  %v2491_v1 = vmul.f32 %v5062_v13, %v4843_v23  ;;  %s3655_s11 = sshll.u32 %s5293_s23, 4  ;;  %s3656_s11 = int_to_ptr.vmem [resolvable:$true] %s3655_s11 }
 0x412   : > { %v4847_v2 = vpop.eup %4846  ;;  %4864 = vtanh.f32 %v2429_v29  ;;  %v2194_v12 = vadd.f32 %v2193_v9, %v6199_v15  ;;  %v2195_v41 = vpop.f32.mrb[90].mxu1  ;;  %p5220_p7 = scmp.lt.s32.totalorder %s3656_s11, %s3656_s11 }
 0x413   : > { %v4849_v14 = vpop.eup %4848  ;;  %4866 = vrcp.f32 %v2273_v10  ;;  %v2197_v19 = vpop.f32.mrb[91].mxu1  ;;  %2585 = vmatmul.mubr.bf16.gmra.mrb[60].mxu0 %v6340_v3  ;;  %v2474_v27 = vmul.f32 %v4847_v2, %v2458_v44  ;;  %v2196_v10 = vadd.f32 %v2195_v41, %v6202_v50  ;;  %v2368_v44 = vadd.f32 1.0, %v4845_v58 }
 0x414   : > { %v4851_v16 = vpop.eup %4850  ;;  %4868 = vrcp.f32 %v2366_v11  ;;  %v2414_v17 = vmul.f32 %v4849_v14, %v2194_v12  ;;  %v2198_v4 = vadd.f32 %v2197_v19, %v6199_v15  ;;  %2594 = vmatprep.mubr.bf16.mxu0 %v6796_v20  ;;  %4287 = vmatpush3.bf16.msra.mxu0 %v5060_v39 }
 0x415   : > { %v4853_v24 = vpop.eup %4852  ;;  %v2475_v22 = vmul.f32 %v4851_v16, %v2459_v8  ;;  %v6350_v25 = vadd.f32 %v2490_v62, %v2474_v27  ;;  %4288 = vmatprep.subr.bf16.mxu0 %v5063_v6  ;;  %4870 = vrcp.f32 %v2367_v31  ;;  %v5064_v16 = vld [vmem:[#allocation8 + $0x50] sm:$0xff] }
 0x416   : > { %v4855_v51 = vpop.eup %4854  ;;  %v2430_v45 = vadd.f32 %v2414_v17, %v2192_v59  ;;  %v2415_v11 = vmul.f32 %v4853_v24, %v2198_v4 }
 0x417   : > { %v4857_v29 = vpop.eup %4856  ;;  %v6354_v18 = vadd.f32 %v2491_v1, %v2475_v22  ;;  %v2460_v14 = vsub.f32 1.0, %v4855_v51  ;;  %v2492_v59 = vmul.f32 %v5064_v16, %v4855_v51 }
 0x418   : > { %v4859_v9 = vpop.eup %4858  ;;  %4872 = vtanh.f32 %v2430_v45  ;;  %v2431_v39 = vadd.f32 %v2415_v11, %v2196_v10  ;;  %v2201_v2 = vpop.f32.mrb[92].mxu1  ;;  %4289 = vmatpush3.bf16.msra.mxu0 %v5063_v6  ;;  %v2369_v19 = vadd.f32 1.0, %v4857_v29  ;;  %v5065_v6 = vld [vmem:[#allocation8 + $0x58] sm:$0xff] }
 0x419   : > { %v2203_v23 = vpop.f32.mrb[93].mxu1  ;;  %v6358_v12 = vpack.c.bf16 %v6354_v18, %v6350_v25  ;;  %v2461_v58 = vsub.f32 1.0, %v4859_v9  ;;  %v2202_v4 = vadd.f32 %v2201_v2, %v6202_v50  ;;  %v2493_v45 = vmul.f32 %v5065_v6, %v4859_v9 }
 0x41a   : > { %v4861_v31 = vpop.eup %4860  ;;  %4874 = vtanh.f32 %v2431_v39  ;;  %v2204_v41 = vadd.f32 %v2203_v23, %v6199_v15  ;;  %v2205_v8 = vpop.f32.mrb[94].mxu1 }
 0x41b   : > { %v4863_v27 = vpop.eup %4862  ;;  %v2207_v7 = vpop.f32.mrb[95].mxu1  ;;  %2595 = vmatmul.mubr.bf16.gmra.mrb[64].mxu0 %v6358_v12  ;;  %v2476_v62 = vmul.f32 %v4861_v31, %v2460_v14  ;;  %4876 = vrcp.f32 %v2368_v44  ;;  %v2206_v51 = vadd.f32 %v2205_v8, %v6202_v50 }
 0x41c   : > { %v4865_v17 = vpop.eup %4864  ;;  %v2416_v24 = vmul.f32 %v4863_v27, %v2204_v41  ;;  %v2208_v22 = vadd.f32 %v2207_v7, %v6199_v15  ;;  %2604 = vmatprep.mubr.bf16.mxu0 %v6796_v20  ;;  %4878 = vrcp.f32 %v2369_v19  ;;  %v5066_v27 = vld [vmem:[#allocation8 + $0x60] sm:$0xff] }
 0x41d   : > { %v4867_v13 = vpop.eup %4866  ;;  %v2477_v1 = vmul.f32 %v4865_v17, %v2461_v58  ;;  %v6365_v10 = vadd.f32 %v2492_v59, %v2476_v62  ;;  %v5067_v62 = vld [vmem:[#allocation8 + $0x68] sm:$0xff] }
 0x41e   : > { %v4869_v11 = vpop.eup %4868  ;;  %v2432_v29 = vadd.f32 %v2416_v24, %v2202_v4  ;;  %v2417_v39 = vmul.f32 %v4867_v13, %v2208_v22 }
 0x41f   : > { %v6368_v44 = vadd.f32 %v2493_v45, %v2477_v1  ;;  %v4871_v2 = vpop.eup %4870  ;;  %v2462_v31 = vsub.f32 1.0, %v4869_v11  ;;  %v2494_v7 = vmul.f32 %v5066_v27, %v4869_v11  ;;  %v5068_v11 = vld [vmem:[#allocation8 + $0x70] sm:$0xff] }
 0x420   : > { %4880 = vtanh.f32 %v2432_v29  ;;  %v2433_v23 = vadd.f32 %v2417_v39, %v2206_v51  ;;  %v2463_v9 = vsub.f32 1.0, %v4871_v2  ;;  %v2495_v16 = vmul.f32 %v5067_v62, %v4871_v2  ;;  %v5069_v2 = vld [vmem:[#allocation8 + $0x78] sm:$0xff] }
 0x421   : > { %v6372_v14 = vpack.c.bf16 %v6368_v44, %v6365_v10 }
 0x422   : > { %v4873_v41 = vpop.eup %4872  ;;  %4882 = vtanh.f32 %v2433_v23 }
 0x423   : > { %2605 = vmatmul.mubr.bf16.gmra.mrb[68].mxu0 %v6372_v14  ;;  %v2478_v19 = vmul.f32 %v4873_v41, %v2462_v31 }
 0x424   : > { %v4875_v8 = vpop.eup %4874  ;;  %2614 = vmatprep.mubr.bf16.mxu0 %v6796_v20 }
 0x425   : > { %v2479_v58 = vmul.f32 %v4875_v8, %v2463_v9  ;;  %v6376_v59 = vadd.f32 %v2494_v7, %v2478_v19  ;;  %v4877_v17 = vpop.eup %4876 }
 0x426   : > { %v4879_v24 = vpop.eup %4878  ;;  %v2464_v13 = vsub.f32 1.0, %v4877_v17  ;;  %v2496_v29 = vmul.f32 %v5068_v11, %v4877_v17 }
 0x427   : > { %v6378_v4 = vadd.f32 %v2495_v16, %v2479_v58  ;;  %v2465_v6 = vsub.f32 1.0, %v4879_v24  ;;  %v2497_v23 = vmul.f32 %v5069_v2, %v4879_v24 }
 0x429   : > { %6818 = vst [vmem:[#allocation13_spill] sm:$0xff] %v6378_v4  ;;  %v6382_v22 = vpack.c.bf16 %v6378_v4, %v6376_v59 }
 0x42a   : > { %v4881_v1 = vpop.eup %4880 }
 0x42b   : > { %2615 = vmatmul.mubr.bf16.gmra.mrb[72].mxu0 %v6382_v22  ;;  %v2480_v45 = vmul.f32 %v4881_v1, %v2464_v13 }
 0x42c   : > { %v4883_v51 = vpop.eup %4882  ;;  %2624 = vmatprep.mubr.bf16.mxu0 %v6796_v20  ;;  %v5070_v20 = vld [vmem:[#allocation2] sm:$0xff]  }
 0x42d   : > { %v2481_v39 = vmul.f32 %v4883_v51, %v2465_v6  ;;  %v6386_v31 = vadd.f32 %v2496_v29, %v2480_v45 }
 0x42f   : > { %6819 = vst [vmem:[#allocation12_spill] sm:$0xff] %v6386_v31  ;;  %v6388_v41 = vadd.f32 %v2497_v23, %v2481_v39 }
 0x431   : > { %6820 = vst [vmem:[#allocation15_spill] sm:$0xff] %v6388_v41  ;;  %v6392_v9 = vpack.c.bf16 %v6388_v41, %v6386_v31 }
 0x433   : > { %2625 = vmatmul.mubr.bf16.gmra.mrb[76].mxu0 %v6392_v9 }
 0x434   : > { %4290 = vmatprep.mubr.bf16.mxu0 %v6266_v42 }
 0x43b   : > { %4291 = vmatmul.mubr.bf16.vlgmr.msra.gmra.mrb[80].mxu0 %v6295_v47 }
 0x43c   : > { %4294 = vmatprep.mubr.bf16.mxu0 %v6319_v26 }
 0x443   : > { %4295 = vmatmul.mubr.bf16.gmra.mrb[84].mxu0 %v6340_v3 }
 0x444   : > { %4298 = vmatprep.mubr.bf16.mxu0 %v6358_v12 }
 0x44b   : > { %4299 = vmatmul.mubr.bf16.gmra.mrb[88].mxu0 %v6372_v14 }
 0x44c   : > { %4302 = vmatprep.mubr.bf16.mxu0 %v6382_v22 }
 0x453   : > { %4303 = vmatmul.mubr.bf16.gmra.mrb[92].mxu0 %v6392_v9 }
 0x454   : > { %4322 = vmatprep.mubr.bf16.mxu0 %v5070_v20 }
 0x4ce   : > { %v2556_v19 = vpop.f32.mrb[48].mxu0 }
 0x4cf   : > { %v2558_v27 = vpop.f32.mrb[49].mxu0 }
 0x4d0   : > { %v2560_v7 = vpop.f32.mrb[50].mxu0 }
 0x4d1   : > { %v2732_v8 = vpack.c.bf16 %v2560_v7, %v2556_v19  ;;  %v2562_v58 = vpop.f32.mrb[51].mxu0 }
 0x4d2   : > { %v6403_v62 = vpack.c.bf16 %v2562_v58, %v2558_v27 }
 0x4d3   : > { %4306 = vmatprep.subr.bf16.mxu0 %v2732_v8 }
 0x4d4   : > { %4307 = vmatpush3.bf16.msra.mxu0 %v2732_v8 }
 0x4d6   : > { %v2566_v16 = vpop.f32.mrb[52].mxu0 }
 0x4d7   : > { %v2568_v17 = vpop.f32.mrb[53].mxu0 }
 0x4d8   : > { %v2570_v24 = vpop.f32.mrb[54].mxu0 }
 0x4d9   : > { %v2735_v13 = vpack.c.bf16 %v2570_v24, %v2566_v16  ;;  %v2572_v1 = vpop.f32.mrb[55].mxu0 }
 0x4da   : > { %v6405_v6 = vpack.c.bf16 %v2572_v1, %v2568_v17 }
 0x4db   : > { %4308 = vmatprep.subr.bf16.mxu0 %v2735_v13 }
 0x4dc   : > { %4309 = vmatpush3.bf16.msra.mxu0 %v2735_v13 }
 0x4de   : > { %v2576_v45 = vpop.f32.mrb[56].mxu0 }
 0x4df   : > { %v2578_v11 = vpop.f32.mrb[57].mxu0 }
 0x4e0   : > { %v2580_v29 = vpop.f32.mrb[58].mxu0 }
 0x4e1   : > { %v2738_v51 = vpack.c.bf16 %v2580_v29, %v2576_v45  ;;  %v2582_v39 = vpop.f32.mrb[59].mxu0 }
 0x4e2   : > { %v2739_v2 = vpack.c.bf16 %v2582_v39, %v2578_v11 }
 0x4e3   : > { %4310 = vmatprep.subr.bf16.mxu0 %v2738_v51 }
 0x4e4   : > { %4311 = vmatpush3.bf16.msra.mxu0 %v2738_v51 }
 0x4e6   : > { %v2586_v23 = vpop.f32.mrb[60].mxu0 }
 0x4e7   : > { %v2588_v20 = vpop.f32.mrb[61].mxu0 }
 0x4e8   : > { %v2590_v19 = vpop.f32.mrb[62].mxu0 }
 0x4e9   : > { %v2741_v27 = vpack.c.bf16 %v2590_v19, %v2586_v23  ;;  %v2592_v7 = vpop.f32.mrb[63].mxu0 }
 0x4ea   : > { %v2742_v8 = vpack.c.bf16 %v2592_v7, %v2588_v20 }
 0x4eb   : > { %4312 = vmatprep.subr.bf16.mxu0 %v2741_v27 }
 0x4ec   : > { %4313 = vmatpush3.bf16.msra.mxu0 %v2741_v27 }
 0x4ee   : > { %v2596_v58 = vpop.f32.mrb[64].mxu0 }
 0x4ef   : > { %v2598_v16 = vpop.f32.mrb[65].mxu0 }
 0x4f0   : > { %v2600_v17 = vpop.f32.mrb[66].mxu0 }
 0x4f1   : > { %v2744_v24 = vpack.c.bf16 %v2600_v17, %v2596_v58  ;;  %v2602_v13 = vpop.f32.mrb[67].mxu0 }
 0x4f2   : > { %v2745_v1 = vpack.c.bf16 %v2602_v13, %v2598_v16 }
 0x4f3   : > { %4314 = vmatprep.subr.bf16.mxu0 %v2744_v24 }
 0x4f4   : > { %4315 = vmatpush3.bf16.msra.mxu0 %v2744_v24 }
 0x4f6   : > { %v2606_v45 = vpop.f32.mrb[68].mxu0 }
 0x4f7   : > { %v2608_v11 = vpop.f32.mrb[69].mxu0 }
 0x4f8   : > { %v2610_v29 = vpop.f32.mrb[70].mxu0 }
 0x4f9   : > { %v2747_v51 = vpack.c.bf16 %v2610_v29, %v2606_v45  ;;  %v2612_v39 = vpop.f32.mrb[71].mxu0  ;;  %v5071_v29 = vld [vmem:[#allocation2 + $0x8] sm:$0xff]  }
 0x4fa   : > { %v2748_v41 = vpack.c.bf16 %v2612_v39, %v2608_v11  ;;  %v5072_v39 = vld [vmem:[#allocation2 + $0x10] sm:$0xff]  }
 0x4fb   : > { %4316 = vmatprep.subr.bf16.mxu0 %v2747_v51 }
 0x4fc   : > { %4317 = vmatpush3.bf16.msra.mxu0 %v2747_v51 }
 0x4fe   : > { %v2616_v23 = vpop.f32.mrb[72].mxu0 }
 0x4ff   : > { %v2618_v20 = vpop.f32.mrb[73].mxu0 }
 0x500   : > { %v2620_v19 = vpop.f32.mrb[74].mxu0 }
 0x501   : > { %v2750_v27 = vpack.c.bf16 %v2620_v19, %v2616_v23  ;;  %v2622_v7 = vpop.f32.mrb[75].mxu0 }
 0x502   : > { %v2751_v31 = vpack.c.bf16 %v2622_v7, %v2618_v20 }
 0x503   : > { %4318 = vmatprep.subr.bf16.mxu0 %v2750_v27 }
 0x504   : > { %4319 = vmatpush3.bf16.msra.mxu0 %v2750_v27 }
 0x506   : > { %v2626_v58 = vpop.f32.mrb[76].mxu0 }
 0x507   : > { %v2628_v16 = vpop.f32.mrb[77].mxu0 }
 0x508   : > { %v2630_v17 = vpop.f32.mrb[78].mxu0 }
 0x509   : > { %v2753_v24 = vpack.c.bf16 %v2630_v17, %v2626_v58  ;;  %v2632_v13 = vpop.f32.mrb[79].mxu0  ;;  %v5073_v58 = vld [vmem:[#allocation2 + $0x18] sm:$0xff]   ;;  %v5074_v17 = vld [vmem:[#allocation2 + $0x20] sm:$0xff]  }
 0x50a   : > { %v2754_v4 = vpack.c.bf16 %v2632_v13, %v2628_v16 }
 0x50b   : > { %4320 = vmatprep.subr.bf16.mxu0 %v2753_v24 }
 0x50c   : > { %4321 = vmatpush3.bf16.msra.mxu0 %v2753_v24 }
 0x50d   : > { %4338 = vmatprep.subr.bf16.mxu0 %v6403_v62 }
 0x50e   : > { %v4292_v45 = vpop.f32.mrb[80].mxu0 }
 0x50f   : > { %v2669_v11 = vpop.f32.mrb[81].mxu0  ;;  %4323 = vmatmul.mubr.bf16.vlgmr.msra.gmra.mrb[96].mxu0 %v5071_v29 }
 0x510   : > { %v4293_v51 = vpop.f32.mrb[82].mxu0  ;;  %4339 = vmatpush3.bf16.msra.mxu0 %v6403_v62  ;;  %4326 = vmatprep.mubr.bf16.mxu0 %v5072_v39 }
 0x511   : > { %v2737_v23 = vpack.c.bf16 %v4293_v51, %v4292_v45  ;;  %v2672_v20 = vpop.f32.mrb[83].mxu0  ;;  %4340 = vmatprep.subr.bf16.mxu0 %v6405_v6  ;;  %v5076_v51 = vld [vmem:[#allocation2 + $0x30] sm:$0xff]  }
 0x512   : > { %v2734_v19 = vpack.c.bf16 %v2672_v20, %v2669_v11  ;;  %v5075_v11 = vld [vmem:[#allocation2 + $0x28] sm:$0xff]  }
 0x514   : > { %4341 = vmatpush3.bf16.msra.mxu0 %v6405_v6 }
 0x515   : > { %4342 = vmatprep.subr.bf16.mxu0 %v2739_v2 }
 0x516   : > { %v4296_v27 = vpop.f32.mrb[84].mxu0 }
 0x517   : > { %v2685_v7 = vpop.f32.mrb[85].mxu0  ;;  %4327 = vmatmul.mubr.bf16.gmra.mrb[100].mxu0 %v5073_v58 }
 0x518   : > { %v4297_v16 = vpop.f32.mrb[86].mxu0  ;;  %4343 = vmatpush3.bf16.msra.mxu0 %v2739_v2  ;;  %4330 = vmatprep.mubr.bf16.mxu0 %v5074_v17 }
 0x519   : > { %v2743_v24 = vpack.c.bf16 %v4297_v16, %v4296_v27  ;;  %v2688_v62 = vpop.f32.mrb[87].mxu0  ;;  %4344 = vmatprep.subr.bf16.mxu0 %v2742_v8  ;;  %v5077_v16 = vld [vmem:[#allocation2 + $0x38] sm:$0xff]  }
 0x51a   : > { %v2740_v13 = vpack.c.bf16 %v2688_v62, %v2685_v7  ;;  %v5078_v7 = vld [vmem:[#allocation2 + $0x40] sm:$0xff]  }
 0x51c   : > { %4345 = vmatpush3.bf16.msra.mxu0 %v2742_v8 }
 0x51d   : > { %4346 = vmatprep.subr.bf16.mxu0 %v2745_v1 }
 0x51e   : > { %v4300_v45 = vpop.f32.mrb[88].mxu0 }
 0x51f   : > { %v2701_v29 = vpop.f32.mrb[89].mxu0  ;;  %4331 = vmatmul.mubr.bf16.gmra.mrb[104].mxu0 %v5075_v11  ;;  %v5083_v11 = vld [vmem:[#allocation2 + $0x68] sm:$0xff]  }
 0x520   : > { %v4301_v6 = vpop.f32.mrb[90].mxu0  ;;  %4347 = vmatpush3.bf16.msra.mxu0 %v2745_v1  ;;  %4334 = vmatprep.mubr.bf16.mxu0 %v5076_v51  ;;  %v5090_v51 = vld [vmem:[#allocation2 + $0xa0] sm:$0xff]  }
 0x521   : > { %v2749_v39 = vpack.c.bf16 %v4301_v6, %v4300_v45  ;;  %v2704_v20 = vpop.f32.mrb[91].mxu0  ;;  %4348 = vmatprep.subr.bf16.mxu0 %v2748_v41  ;;  %v5079_v45 = vld [vmem:[#allocation2 + $0x48] sm:$0xff]   ;;  %v5088_v6 = vld [vmem:[#allocation2 + $0x90] sm:$0xff]  }
 0x522   : > { %v2746_v2 = vpack.c.bf16 %v2704_v20, %v2701_v29  ;;  %v5080_v29 = vld [vmem:[#allocation2 + $0x50] sm:$0xff]   ;;  %v5091_v20 = vld [vmem:[#allocation2 + $0xa8] sm:$0xff]  }
 0x524   : > { %4349 = vmatpush3.bf16.msra.mxu0 %v2748_v41  ;;  %v5081_v41 = vld [vmem:[#allocation2 + $0x58] sm:$0xff]  }
 0x525   : > { %4350 = vmatprep.subr.bf16.mxu0 %v2751_v31 }
 0x526   : > { %v4304_v27 = vpop.f32.mrb[92].mxu0 }
 0x527   : > { %v2717_v58 = vpop.f32.mrb[93].mxu0  ;;  %4335 = vmatmul.mubr.bf16.gmra.mrb[108].mxu0 %v5077_v16 }
 0x528   : > { %v4305_v8 = vpop.f32.mrb[94].mxu0  ;;  %4351 = vmatpush3.bf16.msra.mxu0 %v2751_v31  ;;  %4354 = vmatprep.mubr.bf16.mxu0 %v5078_v7  ;;  %v5082_v31 = vld [vmem:[#allocation2 + $0x60] sm:$0xff]  }
 0x529   : > { %v2755_v17 = vpack.c.bf16 %v4305_v8, %v4304_v27  ;;  %v2720_v62 = vpop.f32.mrb[95].mxu0  ;;  %4352 = vmatprep.subr.bf16.mxu0 %v2754_v4 }
 0x52a   : > { %v2752_v1 = vpack.c.bf16 %v2720_v62, %v2717_v58 }
 0x52c   : > { %4353 = vmatpush3.bf16.msra.mxu0 %v2754_v4  ;;  %v5084_v4 = vld [vmem:[#allocation2 + $0x70] sm:$0xff]  }
 0x52d   : > { %4370 = vmatprep.subr.bf16.mxu0 %v2734_v19 }
 0x52f   : > { %4355 = vmatmul.mubr.bf16.vlgmr.msra.gmra.mrb[96].mxu0 %v5079_v45 }
 0x530   : > { %4371 = vmatpush3.bf16.msra.mxu0 %v2734_v19  ;;  %4358 = vmatprep.mubr.bf16.mxu0 %v5080_v29  ;;  %v5085_v19 = vld [vmem:[#allocation2 + $0x78] sm:$0xff]  }
 0x531   : > { %4372 = vmatprep.subr.bf16.mxu0 %v2737_v23 }
 0x534   : > { %4373 = vmatpush3.bf16.msra.mxu0 %v2737_v23  ;;  %v5086_v23 = vld [vmem:[#allocation2 + $0x80] sm:$0xff]  }
 0x535   : > { %4374 = vmatprep.subr.bf16.mxu0 %v2740_v13 }
 0x537   : > { %4359 = vmatmul.mubr.bf16.gmra.mrb[100].mxu0 %v5081_v41 }
 0x538   : > { %4375 = vmatpush3.bf16.msra.mxu0 %v2740_v13  ;;  %4362 = vmatprep.mubr.bf16.mxu0 %v5082_v31  ;;  %v5087_v13 = vld [vmem:[#allocation2 + $0x88] sm:$0xff]  }
 0x539   : > { %4376 = vmatprep.subr.bf16.mxu0 %v2743_v24 }
 0x53c   : > { %4377 = vmatpush3.bf16.msra.mxu0 %v2743_v24  ;;  %v5089_v24 = vld [vmem:[#allocation2 + $0x98] sm:$0xff]  }
 0x53d   : > { %4378 = vmatprep.subr.bf16.mxu0 %v2746_v2 }
 0x53f   : > { %4363 = vmatmul.mubr.bf16.gmra.mrb[104].mxu0 %v5083_v11 }
 0x540   : > { %4379 = vmatpush3.bf16.msra.mxu0 %v2746_v2  ;;  %4366 = vmatprep.mubr.bf16.mxu0 %v5084_v4  ;;  %v5092_v2 = vld [vmem:[#allocation2 + $0xb0] sm:$0xff]  }
 0x541   : > { %4380 = vmatprep.subr.bf16.mxu0 %v2749_v39 }
 0x544   : > { %4381 = vmatpush3.bf16.msra.mxu0 %v2749_v39  ;;  %v5093_v39 = vld [vmem:[#allocation2 + $0xb8] sm:$0xff]  }
 0x545   : > { %4382 = vmatprep.subr.bf16.mxu0 %v2752_v1 }
 0x547   : > { %4367 = vmatmul.mubr.bf16.gmra.mrb[108].mxu0 %v5085_v19 }
 0x548   : > { %4383 = vmatpush3.bf16.msra.mxu0 %v2752_v1  ;;  %4386 = vmatprep.mubr.bf16.mxu0 %v5086_v23 }
 0x549   : > { %4384 = vmatprep.subr.bf16.mxu0 %v2755_v17 }
 0x54c   : > { %4385 = vmatpush3.bf16.msra.mxu0 %v2755_v17 }
 0x54f   : > { %4387 = vmatmul.mubr.bf16.vlgmr.msra.gmra.mrb[96].mxu0 %v5087_v13 }
 0x550   : > { %4390 = vmatprep.mubr.bf16.mxu0 %v5088_v6 }
 0x557   : > { %4391 = vmatmul.mubr.bf16.gmra.mrb[100].mxu0 %v5089_v24  ;;  %v5097_v24 = vld [vmem:[%s5523_s14 + $0x4c] ss:$16 sps:$4 sm:$0xff]  }
 0x558   : > { %4394 = vmatprep.mubr.bf16.mxu0 %v5090_v51 }
 0x55f   : > { %4395 = vmatmul.mubr.bf16.gmra.mrb[104].mxu0 %v5091_v20 }
 0x560   : > { %4398 = vmatprep.mubr.bf16.mxu0 %v5092_v2 }
 0x567   : > { %4399 = vmatmul.mubr.bf16.gmra.mrb[108].mxu0 %v5093_v39  ;;  %v5099_v39 = vld [vmem:[%s5523_s14 + $0x6c] ss:$16 sps:$4 sm:$0xff]  }
 0x622   : > { %v4388_v27 = vpop.f32.mrb[96].mxu0 }
 0x623   : > { %v4418_v58 = vadd.f32 %v4388_v27, %v5757_v35  ;;  %v3016_v16 = vpop.f32.mrb[97].mxu0 }
 0x624   : > { %v4419_v8 = vadd.f32 %v3016_v16, %v5753_v30  ;;  %v4389_v7 = vpop.f32.mrb[98].mxu0  ;;  %v5094_v30 = vld [vmem:[%s5523_s14 + $0x8] ss:$16 sps:$4 sm:$0xff]  }
 0x625   : > { %v4420_v17 = vadd.f32 %v4389_v7, %v5755_v34  ;;  %v3019_v62 = vpop.f32.mrb[99].mxu0 }
 0x626   : > { %v4421_v1 = vadd.f32 %v5751_v28, %v3019_v62  ;;  %v5095_v28 = vld [vmem:[%s5523_s14 + $0x2c] ss:$16 sps:$4 sm:$0xff]  }
 0x627   : > { %v6415_v45 = vpack.c.bf16 %v4420_v17, %v4418_v58  ;;  %v5101_v17 = vld [vmem:[%s5523_s14 + $0x8c] ss:$16 sps:$4 sm:$0xff]  }
 0x628   : > { %v6417_v29 = vpack.c.bf16 %v4421_v1, %v4419_v8 }
 0x62a   : > { %v4392_v41 = vpop.f32.mrb[100].mxu0  ;;  %3136 = vmatmul.mubr.bf16.vlgmr.msra.gmra.mrb[96].mxu1 %v6417_v29 }
 0x62b   : > { %v4422_v35 = vadd.f32 %v4392_v41, %v5765_v40  ;;  %v3032_v31 = vpop.f32.mrb[101].mxu0  ;;  %3145 = vmatprep.mubr.bf16.mxu1 %v6295_v47  ;;  %3217 = vmatpush1.bf16.msra.mxu1 %v5094_v30  ;;  %v5096_v40 = vld [vmem:[%s5523_s14 + $0x28] ss:$16 sps:$4 sm:$0xff]  }
 0x62c   : > { %v4423_v34 = vadd.f32 %v3032_v31, %v5761_v37  ;;  %v4393_v11 = vpop.f32.mrb[102].mxu0  ;;  %3218 = vmatprep.subr.bf16.mxu1 %v5095_v28 }
 0x62d   : > { %v4424_v4 = vadd.f32 %v4393_v11, %v5763_v38  ;;  %v3035_v19 = vpop.f32.mrb[103].mxu0  ;;  %v5104_v11 = vld [vmem:[%s5523_s14 + $0xa8] ss:$16 sps:$4 sm:$0xff]  }
 0x62e   : > { %v4425_v23 = vadd.f32 %v5759_v36, %v3035_v19  ;;  %v5098_v36 = vld [vmem:[%s5523_s14 + $0x48] ss:$16 sps:$4 sm:$0xff]   ;;  %v5109_v19 = vld [vmem:[%s5523_s14 + $0x10c] ss:$16 sps:$4 sm:$0xff]  }
 0x62f   : > { %v6427_v13 = vpack.c.bf16 %v4424_v4, %v4422_v35  ;;  %3219 = vmatpush1.bf16.msra.mxu1 %v5096_v40  ;;  %v5103_v35 = vld [vmem:[%s5523_s14 + $0xac] ss:$16 sps:$4 sm:$0xff]  }
 0x630   : > { %v6430_v6 = vpack.c.bf16 %v4425_v23, %v4423_v34  ;;  %3220 = vmatprep.subr.bf16.mxu1 %v5097_v24  ;;  %v5105_v4 = vld [vmem:[%s5523_s14 + $0xcc] ss:$16 sps:$4 sm:$0xff]   ;;  %v5110_v23 = vld [vmem:[%s5523_s14 + $0x108] ss:$16 sps:$4 sm:$0xff]  }
 0x631   : > { %v5111_v40 = vld [vmem:[%s5523_s14 + $0x12c] ss:$16 sps:$4 sm:$0xff]   ;;  %v5112_v24 = vld [vmem:[%s5523_s14 + $0x128] ss:$16 sps:$4 sm:$0xff]  }
 0x632   : > { %v4396_v37 = vpop.f32.mrb[104].mxu0  ;;  %3146 = vmatmul.mubr.bf16.gmra.mrb[100].mxu1 %v6415_v45 }
 0x633   : > { %v4426_v51 = vadd.f32 %v4396_v37, %v5775_v53  ;;  %v3048_v38 = vpop.f32.mrb[105].mxu0  ;;  %3155 = vmatprep.mubr.bf16.mxu1 %v6319_v26  ;;  %3221 = vmatpush1.bf16.msra.mxu1 %v5098_v36  ;;  %v5100_v53 = vld [vmem:[%s5523_s14 + $0x68] ss:$16 sps:$4 sm:$0xff]   ;;  %v5113_v37 = vld [vmem:[%s5523_s14 + $0x14c] ss:$16 sps:$4 sm:$0xff]  }
 0x634   : > { %v4427_v20 = vadd.f32 %v3048_v38, %v5769_v46  ;;  %v4397_v2 = vpop.f32.mrb[106].mxu0  ;;  %3222 = vmatprep.subr.bf16.mxu1 %v5099_v39  ;;  %v5115_v38 = vld [vmem:[%s5523_s14 + $0x16c] ss:$16 sps:$4 sm:$0xff]   ;;  %v5116_v36 = vld [vmem:[%s5523_s14 + $0x168] ss:$16 sps:$4 sm:$0xff]  }
 0x635   : > { %v4428_v27 = vadd.f32 %v4397_v2, %v5773_v52  ;;  %v3051_v58 = vpop.f32.mrb[107].mxu0  ;;  %v5118_v2 = vld [vmem:[%s5523_s14 + $0x188] ss:$16 sps:$4 sm:$0xff]   ;;  %v5119_v39 = vld [vmem:[%s5523_s14 + $0x1ac] ss:$16 sps:$4 sm:$0xff]  }
 0x636   : > { %v4429_v16 = vadd.f32 %v5767_v43, %v3051_v58  ;;  %v5102_v43 = vld [vmem:[%s5523_s14 + $0x88] ss:$16 sps:$4 sm:$0xff]   ;;  %v5121_v58 = vld [vmem:[%s5523_s14 + $0x1cc] ss:$16 sps:$4 sm:$0xff]  }
 0x637   : > { %v6441_v8 = vpack.c.bf16 %v4428_v27, %v4426_v51  ;;  %3223 = vmatpush1.bf16.msra.mxu1 %v5100_v53  ;;  %v5114_v51 = vld [vmem:[%s5523_s14 + $0x148] ss:$16 sps:$4 sm:$0xff]   ;;  %v5123_v53 = vld [vmem:[%s5523_s14 + $0x1ec] ss:$16 sps:$4 sm:$0xff]  }
 0x638   : > { %v6444_v7 = vpack.c.bf16 %v4429_v16, %v4427_v20  ;;  %3224 = vmatprep.subr.bf16.mxu1 %v5101_v17  ;;  %v5117_v20 = vld [vmem:[%s5523_s14 + $0x18c] ss:$16 sps:$4 sm:$0xff]   ;;  %v5120_v27 = vld [vmem:[%s5523_s14 + $0x1a8] ss:$16 sps:$4 sm:$0xff]  }
 0x639   : > { %v5122_v16 = vld [vmem:[%s5523_s14 + $0x1c8] ss:$16 sps:$4 sm:$0xff]  }
 0x63a   : > { %v4400_v46 = vpop.f32.mrb[108].mxu0  ;;  %3156 = vmatmul.mubr.bf16.gmra.mrb[104].mxu1 %v6430_v6  ;;  %v5124_v17 = vld [vmem:[%s5523_s14 + $0x1e8] ss:$16 sps:$4 sm:$0xff]  }
 0x63b   : > { %v4430_v62 = vadd.f32 %v4400_v46, %v5785_v0  ;;  %v3064_v52 = vpop.f32.mrb[109].mxu0  ;;  %3165 = vmatprep.mubr.bf16.mxu1 %v6340_v3  ;;  %3225 = vmatpush1.bf16.msra.mxu1 %v5102_v43 }
 0x63c   : > { %v4431_v1 = vadd.f32 %v3064_v52, %v5779_v57  ;;  %v4401_v41 = vpop.f32.mrb[110].mxu0  ;;  %3226 = vmatprep.subr.bf16.mxu1 %v5103_v35  ;;  %v5106_v57 = vld [vmem:[%s5523_s14 + $0xc8] ss:$16 sps:$4 sm:$0xff]  }
 0x63d   : > { %v4432_v31 = vadd.f32 %v4401_v41, %v5783_v63  ;;  %v3067_v30 = vpop.f32.mrb[111].mxu0  ;;  %v5107_v63 = vld [vmem:[%s5523_s14 + $0xec] ss:$16 sps:$4 sm:$0xff]  }
 0x63e   : > { %v4433_v0 = vadd.f32 %v5777_v55, %v3067_v30  ;;  %v5108_v55 = vld [vmem:[%s5523_s14 + $0xe8] ss:$16 sps:$4 sm:$0xff]   ;;  %s5213_s14 = scalar_lea.vmem %s3656_s11, 2048 }
 0x63f   : > { %v6455_v34 = vpack.c.bf16 %v4432_v31, %v4430_v62  ;;  %3227 = vmatpush1.bf16.msra.mxu1 %v5104_v11  ;;  %p5214_p0 = scmp.ne.s32.totalorder %s3656_s11, %s5213_s14  ;;  %p5221_p12 = scmp.lt.s32.totalorder %s5213_s14, %s5213_s14 }
 0x640   : > { %v3101_v28 = vpack.c.bf16 %v4433_v0, %v4431_v1  ;;  %3228 = vmatprep.subr.bf16.mxu1 %v5105_v4 }
 0x641   : > { %p5215_p4 = pnand %p5214_p0, %p4527_p6  ;;  %p5222_p2 = por %p5221_p12, %p5220_p7 }
 0x642   : > { %3166 = vmatmul.mubr.bf16.gmra.mrb[108].mxu1 %v6427_v13 }
 0x643   : > { %3175 = vmatprep.mubr.bf16.mxu1 %v6358_v12  ;;  %3229 = vmatpush1.bf16.msra.mxu1 %v5106_v57  ;;  %p5216_p1 = pneg %p5215_p4 }
 0x644   : > { %3230 = vmatprep.subr.bf16.mxu1 %v5107_v63 }
 0x645   : > { %p5223_p3 = pnand %p5222_p2, %p5216_p1 }
 0x647   : > { %3231 = vmatpush1.bf16.msra.mxu1 %v5108_v55 }
 0x648   : > { %3232 = vmatprep.subr.bf16.mxu1 %v5109_v19 }
 0x64a   : > { %3176 = vmatmul.mubr.bf16.gmra.mrb[112].mxu1 %v6444_v7 }
 0x64b   : > { %3185 = vmatprep.mubr.bf16.mxu1 %v6372_v14  ;;  %3233 = vmatpush1.bf16.msra.mxu1 %v5110_v23 }
 0x64c   : > { %3234 = vmatprep.subr.bf16.mxu1 %v5111_v40 }
 0x64f   : > { %3235 = vmatpush1.bf16.msra.mxu1 %v5112_v24 }
 0x650   : > { %3236 = vmatprep.subr.bf16.mxu1 %v5113_v37 }
 0x652   : > { %3186 = vmatmul.mubr.bf16.gmra.mrb[116].mxu1 %v6441_v8 }
 0x653   : > { %3195 = vmatprep.mubr.bf16.mxu1 %v6382_v22  ;;  %3237 = vmatpush1.bf16.msra.mxu1 %v5114_v51 }
 0x654   : > { %3238 = vmatprep.subr.bf16.mxu1 %v5115_v38 }
 0x657   : > { %3239 = vmatpush1.bf16.msra.mxu1 %v5116_v36 }
 0x658   : > { %3240 = vmatprep.subr.bf16.mxu1 %v5117_v20 }
 0x65a   : > { %3196 = vmatmul.mubr.bf16.gmra.mrb[120].mxu1 %v3101_v28 }
 0x65b   : > { %3205 = vmatprep.mubr.bf16.mxu1 %v6392_v9  ;;  %3241 = vmatpush1.bf16.msra.mxu1 %v5118_v2 }
 0x65c   : > { %3242 = vmatprep.subr.bf16.mxu1 %v5119_v39 }
 0x65f   : > { %3243 = vmatpush1.bf16.msra.mxu1 %v5120_v27 }
 0x660   : > { %3244 = vmatprep.subr.bf16.mxu1 %v5121_v58 }
 0x662   : > { %3206 = vmatmul.mubr.bf16.gmra.mrb[124].mxu1 %v6455_v34 }
 0x663   : > { %3245 = vmatpush1.bf16.msra.mxu1 %v5122_v16  ;;  %3248 = vmatprep.mubr.bf16.mxu1 %v6266_v42 }
 0x664   : > { %3246 = vmatprep.subr.bf16.mxu1 %v5123_v53 }
 0x667   : > { %3247 = vmatpush1.bf16.msra.mxu1 %v5124_v17 }
 0x66a   : > { %3249 = vmatmul.mubr.bf16.vlgmr.msra.gmra.mrb[128].mxu1 %v6417_v29 }
 0x66b   : > { %3258 = vmatprep.mubr.bf16.mxu1 %v6295_v47 }
 0x672   : > { %3259 = vmatmul.mubr.bf16.gmra.mrb[132].mxu1 %v6415_v45 }
 0x673   : > { %3268 = vmatprep.mubr.bf16.mxu1 %v6319_v26 }
 0x67a   : > { %3269 = vmatmul.mubr.bf16.gmra.mrb[136].mxu1 %v6430_v6 }
 0x67b   : > { %3278 = vmatprep.mubr.bf16.mxu1 %v6340_v3 }
 0x682   : > { %3279 = vmatmul.mubr.bf16.gmra.mrb[140].mxu1 %v6427_v13 }
 0x683   : > { %3288 = vmatprep.mubr.bf16.mxu1 %v6358_v12 }
 0x68a   : > { %3289 = vmatmul.mubr.bf16.gmra.mrb[144].mxu1 %v6444_v7 }
 0x68b   : > { %3298 = vmatprep.mubr.bf16.mxu1 %v6372_v14 }
 0x692   : > { %3299 = vmatmul.mubr.bf16.gmra.mrb[148].mxu1 %v6441_v8 }
 0x693   : > { %3308 = vmatprep.mubr.bf16.mxu1 %v6382_v22 }
 0x69a   : > { %3309 = vmatmul.mubr.bf16.gmra.mrb[152].mxu1 %v3101_v28 }
 0x69b   : > { %3318 = vmatprep.mubr.bf16.mxu1 %v6392_v9 }
 0x6a2   : > { %3319 = vmatmul.mubr.bf16.gmra.mrb[156].mxu1 %v6455_v34 }
 0x6fd   : > { %v3137_v42 = vpop.f32.mrb[96].mxu1 }
 0x6fe   : > { %v3139_v47 = vpop.f32.mrb[97].mxu1  ;;  %v3138_v8 = vadd.f32 %v3137_v42, %v6128_v5 }
 0x6ff   : > { %v3141_v26 = vpop.f32.mrb[98].mxu1  ;;  %v3140_v22 = vadd.f32 %v3139_v47, %v6131_v61 }
 0x700   : > { %v3143_v3 = vpop.f32.mrb[99].mxu1  ;;  %v3142_v9 = vadd.f32 %v3141_v26, %v6128_v5  ;;  %v3938_v41 = vmul.f32 -1.442695, %v3138_v8 }
 0x701   : > { %v3144_v43 = vadd.f32 %v3143_v3, %v6131_v61  ;;  %v3954_v31 = vmul.f32 -1.442695, %v3140_v22 }
 0x702   : > { %v3939_v30 = vmul.f32 -1.442695, %v3142_v9  ;;  %4884 = vpow2.f32 %v3938_v41 }
 0x703   : > { %v3955_v0 = vmul.f32 -1.442695, %v3144_v43  ;;  %4886 = vpow2.f32 %v3954_v31 }
 0x704   : > { %4888 = vpow2.f32 %v3939_v30 }
 0x705   : > { %v3147_v45 = vpop.f32.mrb[100].mxu1  ;;  %4890 = vpow2.f32 %v3955_v0 }
 0x706   : > { %v3149_v29 = vpop.f32.mrb[101].mxu1  ;;  %v3148_v34 = vadd.f32 %v3147_v45, %v6128_v5 }
 0x707   : > { %v3151_v12 = vpop.f32.mrb[102].mxu1  ;;  %v3150_v11 = vadd.f32 %v3149_v29, %v6131_v61 }
 0x708   : > { %v3153_v13 = vpop.f32.mrb[103].mxu1  ;;  %v3152_v4 = vadd.f32 %v3151_v12, %v6128_v5  ;;  %v3940_v19 = vmul.f32 -1.442695, %v3148_v34 }
 0x709   : > { %v3154_v63 = vadd.f32 %v3153_v13, %v6131_v61  ;;  %v3956_v24 = vmul.f32 -1.442695, %v3150_v11 }
 0x70a   : > { %v3941_v51 = vmul.f32 -1.442695, %v3152_v4  ;;  %4892 = vpow2.f32 %v3940_v19 }
 0x70b   : > { %v3957_v36 = vmul.f32 -1.442695, %v3154_v63  ;;  %4894 = vpow2.f32 %v3956_v24 }
 0x70c   : > { %v4885_v58 = vpop.eup %4884  ;;  %4896 = vpow2.f32 %v3941_v51 }
 0x70d   : > { %v3157_v6 = vpop.f32.mrb[104].mxu1  ;;  %v4887_v17 = vpop.eup %4886  ;;  %4898 = vpow2.f32 %v3957_v36  ;;  %v3377_v29 = vadd.f32 1.0, %v4885_v58 }
 0x70e   : > { %v3159_v7 = vpop.f32.mrb[105].mxu1  ;;  %v3158_v23 = vadd.f32 %v3157_v6, %v6128_v5  ;;  %v4889_v47 = vpop.eup %4888  ;;  %v3473_v13 = vadd.f32 1.0, %v4887_v17 }
 0x70f   : > { %v3161_v14 = vpop.f32.mrb[106].mxu1  ;;  %v3160_v37 = vadd.f32 %v3159_v7, %v6131_v61  ;;  %v4891_v45 = vpop.eup %4890  ;;  %v3378_v7 = vadd.f32 1.0, %v4889_v47 }
 0x710   : > { %v3163_v46 = vpop.f32.mrb[107].mxu1  ;;  %v3162_v38 = vadd.f32 %v3161_v14, %v6128_v5  ;;  %v3942_v20 = vmul.f32 -1.442695, %v3158_v23 }
 0x711   : > { %v3164_v2 = vadd.f32 %v3163_v46, %v6131_v61  ;;  %v3958_v39 = vmul.f32 -1.442695, %v3160_v37  ;;  %v3474_v46 = vadd.f32 1.0, %v4891_v45 }
 0x712   : > { %v3943_v16 = vmul.f32 -1.442695, %v3162_v38  ;;  %4900 = vpow2.f32 %v3942_v20 }
 0x713   : > { %v3959_v26 = vmul.f32 -1.442695, %v3164_v2  ;;  %4902 = vpow2.f32 %v3958_v39 }
 0x714   : > { %4904 = vpow2.f32 %v3943_v16  ;;  %v4893_v43 = vpop.eup %4892 }
 0x715   : > { %v3167_v62 = vpop.f32.mrb[108].mxu1  ;;  %4906 = vpow2.f32 %v3959_v26  ;;  %v3379_v11 = vadd.f32 1.0, %v4893_v43 }
 0x716   : > { %v3169_v52 = vpop.f32.mrb[109].mxu1  ;;  %v3168_v12 = vadd.f32 %v3167_v62, %v6128_v5  ;;  %4908 = vrcp.f32 %v3377_v29  ;;  %v4895_v62 = vpop.eup %4894 }
 0x717   : > { %v3171_v1 = vpop.f32.mrb[110].mxu1  ;;  %v3170_v6 = vadd.f32 %v3169_v52, %v6131_v61  ;;  %4910 = vrcp.f32 %v3473_v13  ;;  %v4897_v0 = vpop.eup %4896  ;;  %v3475_v63 = vadd.f32 1.0, %v4895_v62 }
 0x718   : > { %v3173_v35 = vpop.f32.mrb[111].mxu1  ;;  %v3172_v14 = vadd.f32 %v3171_v1, %v6128_v5  ;;  %v3944_v22 = vmul.f32 -1.442695, %v3168_v12  ;;  %4912 = vrcp.f32 %v3378_v7  ;;  %v3380_v23 = vadd.f32 1.0, %v4897_v0 }
 0x719   : > { %v3174_v8 = vadd.f32 %v3173_v35, %v6131_v61  ;;  %v3960_v41 = vmul.f32 -1.442695, %v3170_v6  ;;  %4914 = vrcp.f32 %v3474_v46  ;;  %v4899_v35 = vpop.eup %4898 }
 0x71a   : > { %v3945_v30 = vmul.f32 -1.442695, %v3172_v14  ;;  %4916 = vpow2.f32 %v3944_v22  ;;  %v3476_v37 = vadd.f32 1.0, %v4899_v35 }
 0x71b   : > { %v3961_v1 = vmul.f32 -1.442695, %v3174_v8  ;;  %4918 = vpow2.f32 %v3960_v41 }
 0x71c   : > { %v4901_v4 = vpop.eup %4900  ;;  %4920 = vpow2.f32 %v3945_v30 }
 0x71d   : > { %v6507_v28 = vpop.f32.mrb[112].mxu1  ;;  %v4903_v19 = vpop.eup %4902  ;;  %4922 = vpow2.f32 %v3961_v1  ;;  %v3381_v38 = vadd.f32 1.0, %v4901_v4 }
 0x71e   : > { %v6510_v57 = vpop.f32.mrb[113].mxu1  ;;  %v4905_v24 = vpop.eup %4904  ;;  %v3178_v51 = vadd.f32 %v6507_v28, %v6128_v5  ;;  %4924 = vrcp.f32 %v3379_v11  ;;  %v3477_v2 = vadd.f32 1.0, %v4903_v19 }
 0x71f   : > { %v6513_v55 = vpop.f32.mrb[114].mxu1  ;;  %v4907_v20 = vpop.eup %4906  ;;  %4926 = vrcp.f32 %v3475_v63  ;;  %v3180_v39 = vadd.f32 %v6510_v57, %v6131_v61  ;;  %v3382_v17 = vadd.f32 1.0, %v4905_v24 }
 0x720   : > { %v6516_v40 = vpop.f32.mrb[115].mxu1  ;;  %v4909_v16 = vpop.eup %4908  ;;  %4928 = vrcp.f32 %v3380_v23  ;;  %v3182_v47 = vadd.f32 %v6513_v55, %v6128_v5  ;;  %v3946_v45 = vmul.f32 -1.442695, %v3178_v51  ;;  %v3478_v13 = vadd.f32 1.0, %v4907_v20 }
 0x721   : > { %v6553_v28 = vpop.eup %4910  ;;  %4930 = vrcp.f32 %v3476_v37  ;;  %v3184_v29 = vadd.f32 %v6516_v40, %v6131_v61  ;;  %v3962_v7 = vmul.f32 -1.442695, %v3180_v39 }
 0x722   : > { %v4913_v57 = vpop.eup %4912  ;;  %4932 = vrcp.f32 %v3381_v38  ;;  %v3947_v55 = vmul.f32 -1.442695, %v3182_v47 }
 0x723   : > { %v6559_v6 = vpop.eup %4914  ;;  %4934 = vrcp.f32 %v3477_v2  ;;  %v3963_v8 = vmul.f32 -1.442695, %v3184_v29 }
 0x724   : > { %v4917_v14 = vpop.eup %4916  ;;  %4936 = vrcp.f32 %v3382_v17 }
 0x725   : > { %v6521_v27 = vpop.f32.mrb[116].mxu1  ;;  %v4919_v46 = vpop.eup %4918  ;;  %4938 = vpow2.f32 %v3946_v45  ;;  %v3383_v40 = vadd.f32 1.0, %v4917_v14 }
 0x726   : > { %v6523_v53 = vpop.f32.mrb[117].mxu1  ;;  %v4921_v22 = vpop.eup %4920  ;;  %4940 = vrcp.f32 %v3478_v13  ;;  %v3479_v0 = vadd.f32 1.0, %v4919_v46  ;;  %v3188_v63 = vadd.f32 %v6521_v27, %v6128_v5 }
 0x727   : > { %v6525_v42 = vpop.f32.mrb[118].mxu1  ;;  %v4923_v41 = vpop.eup %4922  ;;  %4942 = vpow2.f32 %v3962_v7  ;;  %v3384_v4 = vadd.f32 1.0, %v4921_v22  ;;  %v3190_v2 = vadd.f32 %v6523_v53, %v6131_v61 }
 0x728   : > { %v6527_v3 = vpop.f32.mrb[119].mxu1  ;;  %v4925_v30 = vpop.eup %4924  ;;  %4944 = vpow2.f32 %v3947_v55  ;;  %v3480_v24 = vadd.f32 1.0, %v4923_v41  ;;  %v3192_v39 = vadd.f32 %v6525_v42, %v6128_v5 }
 0x729   : > { %v6562_v11 = vpop.eup %4926  ;;  %4946 = vpow2.f32 %v3963_v8  ;;  %v3194_v13 = vadd.f32 %v6527_v3, %v6131_v61  ;;  %v3964_v55 = vmul.f32 -1.442695, %v3190_v2 }
 0x72a   : > { %v4929_v23 = vpop.eup %4928  ;;  %4948 = vrcp.f32 %v3383_v40  ;;  %v3949_v22 = vmul.f32 -1.442695, %v3192_v39 }
 0x72b   : > { %v6568_v20 = vpop.eup %4930  ;;  %4950 = vrcp.f32 %v3479_v0  ;;  %v3965_v40 = vmul.f32 -1.442695, %v3194_v13 }
 0x72c   : > { %v6574_v17 = vpop.eup %4932  ;;  %4952 = vrcp.f32 %v3384_v4 }
 0x72d   : > { %v6533_v9 = vpop.f32.mrb[120].mxu1  ;;  %v6577_v29 = vpop.eup %4934  ;;  %4954 = vrcp.f32 %v3480_v24 }
 0x72e   : > { %v6535_v31 = vpop.f32.mrb[121].mxu1  ;;  %v6581_v7 = vpop.eup %4936  ;;  %v3198_v2 = vadd.f32 %v6533_v9, %v6128_v5  ;;  %v3601_v9 = vmul.f32 %v6553_v28, %v6251_v33 }
 0x72f   : > { %v6537_v52 = vpop.f32.mrb[122].mxu1  ;;  %v4939_v42 = vpop.eup %4938 }
 0x730   : > { %v6539_v34 = vpop.f32.mrb[123].mxu1  ;;  %v6583_v8 = vpop.eup %4940  ;;  %v3385_v0 = vadd.f32 1.0, %v4939_v42 }
 0x731   : > { %v4943_v41 = vpop.eup %4942 }
 0x735   : > { %v6543_v36 = vpop.f32.mrb[124].mxu1 }
 0x736   : > { %v6547_v58 = vpop.f32.mrb[125].mxu1 }
 0x737   : > { %v6551_v26 = vpop.f32.mrb[126].mxu1 }
 0x738   : > { %v6557_v12 = vpop.f32.mrb[127].mxu1 }
 0x73d   : > { %v3250_v43 = vpop.f32.mrb[128].mxu1 }
 0x73e   : > { %v3252_v62 = vpop.f32.mrb[129].mxu1  ;;  %v3251_v37 = vadd.f32 %v3250_v43, %v6202_v50 }
 0x73f   : > { %v3253_v1 = vadd.f32 %v3252_v62, %v6199_v15  ;;  %v3254_v35 = vpop.f32.mrb[130].mxu1  ;;  %v4945_v62 = vpop.eup %4944 }
 0x740   : > { %v3256_v19 = vpop.f32.mrb[131].mxu1  ;;  %v3255_v47 = vadd.f32 %v3254_v35, %v6202_v50 }
 0x741   : > { %v3521_v51 = vmul.f32 %v4909_v16, %v3253_v1  ;;  %v3257_v38 = vadd.f32 %v3256_v19, %v6199_v15  ;;  %v3948_v16 = vmul.f32 -1.442695, %v3188_v63  ;;  %v6588_v63 = vpop.eup %4946 }
 0x743   : > { %v3537_v27 = vadd.f32 %v3521_v51, %v3251_v37  ;;  %v3522_v45 = vmul.f32 %v4913_v57, %v3257_v38  ;;  %v6591_v51 = vpop.eup %4948  ;;  %v3481_v38 = vadd.f32 1.0, %v4943_v41 }
 0x744   : > { %v6595_v39 = vpop.eup %4950 }
 0x745   : > { %v3538_v53 = vadd.f32 %v3522_v45, %v3255_v47  ;;  %v3260_v14 = vpop.f32.mrb[132].mxu1  ;;  %4956 = vtanh.f32 %v3537_v27  ;;  %v6597_v47 = vpop.eup %4952  ;;  %v3386_v45 = vadd.f32 1.0, %v4945_v62  ;;  %v3602_v62 = vmul.f32 %v6559_v6, %v6257_v32 }
 0x746   : > { %v3262_v46 = vpop.f32.mrb[133].mxu1  ;;  %v3261_v1 = vadd.f32 %v3260_v14, %v6202_v50  ;;  %v6601_v13 = vpop.eup %4954 }
 0x747   : > { %4958 = vtanh.f32 %v3538_v53  ;;  %v3263_v57 = vadd.f32 %v3262_v46, %v6199_v15  ;;  %v3264_v43 = vpop.f32.mrb[134].mxu1  ;;  %v3569_v53 = vsub.f32 1.0, %v6553_v28  ;;  %v3570_v46 = vsub.f32 1.0, %v6559_v6 }
 0x748   : > { %4960 = vpow2.f32 %v3948_v16  ;;  %v3266_v3 = vpop.f32.mrb[135].mxu1  ;;  %v3265_v24 = vadd.f32 %v3264_v43, %v6202_v50  ;;  %v3202_v16 = vadd.f32 %v6537_v52, %v6128_v5  ;;  %v3200_v52 = vadd.f32 %v6535_v31, %v6131_v61 }
 0x749   : > { %v3523_v35 = vmul.f32 %v4925_v30, %v3263_v57  ;;  %v3267_v4 = vadd.f32 %v3266_v3, %v6199_v15  ;;  %4962 = vpow2.f32 %v3964_v55 }
 0x74a   : > { %4964 = vpow2.f32 %v3949_v22  ;;  %v3950_v22 = vmul.f32 -1.442695, %v3198_v2 }
 0x74b   : > { %v3539_v19 = vadd.f32 %v3523_v35, %v3261_v1  ;;  %v3524_v37 = vmul.f32 %v4929_v23, %v3267_v4  ;;  %4966 = vpow2.f32 %v3965_v40 }
 0x74c   : > { %4968 = vrcp.f32 %v3385_v0  ;;  %v3951_v0 = vmul.f32 -1.442695, %v3202_v16 }
 0x74d   : > { %v3540_v30 = vadd.f32 %v3524_v37, %v3265_v24  ;;  %v3270_v27 = vpop.f32.mrb[136].mxu1  ;;  %4970 = vtanh.f32 %v3539_v19  ;;  %v3966_v37 = vmul.f32 -1.442695, %v3200_v52 }
 0x74e   : > { %v3272_v23 = vpop.f32.mrb[137].mxu1  ;;  %v3271_v40 = vadd.f32 %v3270_v27, %v6202_v50 }
 0x74f   : > { %4972 = vtanh.f32 %v3540_v30  ;;  %v3273_v14 = vadd.f32 %v3272_v23, %v6199_v15  ;;  %v3274_v42 = vpop.f32.mrb[138].mxu1  ;;  %v4957_v55 = vpop.eup %4956  ;;  %v3571_v23 = vsub.f32 1.0, %v6562_v11 }
 0x750   : > { %4974 = vrcp.f32 %v3481_v38  ;;  %v3276_v57 = vpop.f32.mrb[139].mxu1  ;;  %v3585_v41 = vmul.f32 %v4957_v55, %v3569_v53  ;;  %v3275_v31 = vadd.f32 %v3274_v42, %v6202_v50  ;;  %v3572_v42 = vsub.f32 1.0, %v6568_v20 }
 0x751   : > { %v4959_v43 = vpop.eup %4958  ;;  %v3525_v3 = vmul.f32 %v6574_v17, %v3273_v14  ;;  %v3277_v33 = vadd.f32 %v3276_v57, %v6199_v15  ;;  %4976 = vrcp.f32 %v3386_v45  ;;  %v3208_v17 = vadd.f32 %v6543_v36, %v6128_v5 }
 0x752   : > { %v4961_v28 = vpop.eup %4960  ;;  %v3586_v1 = vmul.f32 %v4959_v43, %v3570_v46  ;;  %v3617_v35 = vadd.f32 %v3601_v9, %v3585_v41  ;;  %4978 = vpow2.f32 %v3950_v22  ;;  %v3603_v36 = vmul.f32 %v6562_v11, %v6285_v49 }
 0x753   : > { %v3541_v4 = vadd.f32 %v3525_v3, %v3271_v40  ;;  %v3526_v19 = vmul.f32 %v6581_v7, %v3277_v33  ;;  %v6617_v24 = vpop.eup %4962  ;;  %v3387_v27 = vadd.f32 1.0, %v4961_v28  ;;  %v3212_v7 = vadd.f32 %v6551_v26, %v6128_v5 }
 0x754   : > { %v3618_v38 = vadd.f32 %v3602_v62, %v3586_v1  ;;  %v4965_v2 = vpop.eup %4964  ;;  %3633 = vst [vmem:[#allocation8] sm:$0xff] %v3617_v35  ;;  %v3204_v55 = vadd.f32 %v6539_v34, %v6131_v61  ;;  %v3952_v5 = vmul.f32 -1.442695, %v3208_v17  ;;  %v3604_v43 = vmul.f32 %v6568_v20, %v6291_v21 }
 0x755   : > { %4980 = vtanh.f32 %v3541_v4  ;;  %v3542_v32 = vadd.f32 %v3526_v19, %v3275_v31  ;;  %v3280_v6 = vpop.f32.mrb[140].mxu1  ;;  %v6621_v30 = vpop.eup %4966  ;;  %v3953_v41 = vmul.f32 -1.442695, %v3212_v7  ;;  %v3573_v31 = vsub.f32 1.0, %v6577_v29 }
 0x756   : > { %4982 = vpow2.f32 %v3951_v0  ;;  %3634 = vst [vmem:[#allocation8 + $0x8] sm:$0xff] %v3618_v38  ;;  %v3282_v45 = vpop.f32.mrb[141].mxu1  ;;  %v4969_v16 = vpop.eup %4968  ;;  %v3281_v52 = vadd.f32 %v3280_v6, %v6202_v50  ;;  %v3388_v0 = vadd.f32 1.0, %v4965_v2  ;;  %v3967_v35 = vmul.f32 -1.442695, %v3204_v55 }
 0x757   : > { %4984 = vtanh.f32 %v3542_v32  ;;  %v3283_v53 = vadd.f32 %v3282_v45, %v6199_v15  ;;  %v3284_v9 = vpop.f32.mrb[142].mxu1  ;;  %v4971_v14 = vpop.eup %4970  ;;  %v3605_v19 = vmul.f32 %v6577_v29, %v6310_v48  ;;  %v3574_v17 = vsub.f32 1.0, %v6583_v8 }
 0x758   : > { %4986 = vpow2.f32 %v3966_v37  ;;  %v3286_v26 = vpop.f32.mrb[143].mxu1  ;;  %v3587_v22 = vmul.f32 %v4971_v14, %v3571_v23  ;;  %v3285_v33 = vadd.f32 %v3284_v9, %v6202_v50  ;;  %v3606_v6 = vmul.f32 %v6583_v8, %v6314_v54 }
 0x759   : > { %v4973_v46 = vpop.eup %4972  ;;  %v3527_v57 = vmul.f32 %v6591_v51, %v3283_v53  ;;  %v3287_v49 = vadd.f32 %v3286_v26, %v6199_v15  ;;  %4988 = vrcp.f32 %v3387_v27  ;;  %v3210_v51 = vadd.f32 %v6547_v58, %v6131_v61 }
 0x75a   : > { %v6635_v11 = vpop.eup %4974  ;;  %v3588_v40 = vmul.f32 %v4973_v46, %v3572_v42  ;;  %v3619_v3 = vadd.f32 %v3603_v36, %v3587_v22  ;;  %4990 = vpow2.f32 %v3952_v5  ;;  %v3482_v58 = vadd.f32 1.0, %v6588_v63 }
 0x75b   : > { %v3543_v34 = vadd.f32 %v3527_v57, %v3281_v52  ;;  %v3528_v28 = vmul.f32 %v6597_v47, %v3287_v49  ;;  %v4977_v62 = vpop.eup %4976  ;;  %v3968_v27 = vmul.f32 -1.442695, %v3210_v51  ;;  %v3214_v9 = vadd.f32 %v6557_v12, %v6131_v61 }
 0x75c   : > { %v3620_v1 = vadd.f32 %v3604_v43, %v3588_v40  ;;  %3635 = vst [vmem:[#allocation8 + $0x10] sm:$0xff] %v3619_v3  ;;  %v4979_v4 = vpop.eup %4978  ;;  %v3575_v61 = vsub.f32 1.0, %v6595_v39  ;;  %v3484_v40 = vadd.f32 1.0, %v6621_v30 }
 0x75d   : > { %4992 = vtanh.f32 %v3543_v34  ;;  %v3544_v21 = vadd.f32 %v3528_v28, %v3285_v33  ;;  %v3290_v20 = vpop.f32.mrb[144].mxu1  ;;  %v3389_v53 = vadd.f32 1.0, %v4979_v4  ;;  %v3969_v12 = vmul.f32 -1.442695, %v3214_v9 }
 0x75e   : > { %4994 = vpow2.f32 %v3953_v41  ;;  %3636 = vst [vmem:[#allocation8 + $0x18] sm:$0xff] %v3620_v1  ;;  %v3292_v47 = vpop.f32.mrb[145].mxu1  ;;  %v3291_v45 = vadd.f32 %v3290_v20, %v6202_v50  ;;  %v3607_v41 = vmul.f32 %v6595_v39, %v6332_v60  ;;  %v3576_v33 = vsub.f32 1.0, %v6601_v13 }
 0x75f   : > { %v4981_v37 = vpop.eup %4980  ;;  %4996 = vtanh.f32 %v3544_v21  ;;  %v3293_v38 = vadd.f32 %v3292_v47, %v6199_v15  ;;  %v3294_v2 = vpop.f32.mrb[146].mxu1  ;;  %v3608_v28 = vmul.f32 %v6601_v13, %v6336_v56 }
 0x760   : > { %v4983_v32 = vpop.eup %4982  ;;  %4998 = vrcp.f32 %v3388_v0  ;;  %v3589_v7 = vmul.f32 %v4981_v37, %v3573_v31  ;;  %v3296_v48 = vpop.f32.mrb[147].mxu1  ;;  %v3295_v8 = vadd.f32 %v3294_v2, %v6202_v50 }
 0x761   : > { %v4985_v29 = vpop.eup %4984  ;;  %5000 = vpow2.f32 %v3967_v35  ;;  %v3529_v23 = vmul.f32 %v4969_v16, %v3293_v38  ;;  %v3297_v36 = vadd.f32 %v3296_v48, %v6199_v15  ;;  %v3390_v26 = vadd.f32 1.0, %v4983_v32 }
 0x762   : > { %v4987_v63 = vpop.eup %4986  ;;  %v3621_v14 = vadd.f32 %v3605_v19, %v3589_v7  ;;  %v3590_v42 = vmul.f32 %v4985_v29, %v3574_v17  ;;  %5002 = vrcp.f32 %v3482_v58  ;;  %v3483_v16 = vadd.f32 1.0, %v6617_v24 }
 0x763   : > { %v3545_v54 = vadd.f32 %v3529_v23, %v3291_v45  ;;  %v3530_v55 = vmul.f32 %v4977_v62, %v3297_v36  ;;  %v4989_v5 = vpop.eup %4988  ;;  %5004 = vpow2.f32 %v3968_v27  ;;  %v3485_v17 = vadd.f32 1.0, %v4987_v63 }
 0x764   : > { %3637 = vst [vmem:[#allocation8 + $0x20] sm:$0xff] %v3621_v14  ;;  %v3622_v46 = vadd.f32 %v3606_v6, %v3590_v42  ;;  %v4991_v57 = vpop.eup %4990  ;;  %v3577_v32 = vsub.f32 1.0, %v6635_v11  ;;  %v3609_v23 = vmul.f32 %v6635_v11, %v6350_v25 }
 0x765   : > { %5006 = vtanh.f32 %v3545_v54  ;;  %v3546_v22 = vadd.f32 %v3530_v55, %v3295_v8  ;;  %v3300_v52 = vpop.f32.mrb[148].mxu1  ;;  %v3391_v35 = vadd.f32 1.0, %v4991_v57 }
 0x766   : > { %5008 = vrcp.f32 %v3389_v53  ;;  %3638 = vst [vmem:[#allocation8 + $0x28] sm:$0xff] %v3622_v46  ;;  %v3302_v49 = vpop.f32.mrb[149].mxu1  ;;  %v3301_v1 = vadd.f32 %v3300_v52, %v6202_v50 }
 0x767   : > { %v4993_v43 = vpop.eup %4992  ;;  %5010 = vtanh.f32 %v3546_v22  ;;  %v3303_v3 = vadd.f32 %v3302_v49, %v6199_v15  ;;  %v3304_v24 = vpop.f32.mrb[150].mxu1 }
 0x768   : > { %v4995_v34 = vpop.eup %4994  ;;  %5012 = vrcp.f32 %v3390_v26  ;;  %v3591_v62 = vmul.f32 %v4993_v43, %v3575_v61  ;;  %v3306_v0 = vpop.f32.mrb[151].mxu1  ;;  %v3305_v56 = vadd.f32 %v3304_v24, %v6202_v50 }
 0x769   : > { %v4997_v51 = vpop.eup %4996  ;;  %5014 = vrcp.f32 %v3483_v16  ;;  %v3531_v60 = vmul.f32 %v4989_v5, %v3303_v3  ;;  %v3307_v39 = vadd.f32 %v3306_v0, %v6199_v15  ;;  %v3392_v19 = vadd.f32 1.0, %v4995_v34 }
 0x76a   : > { %v4999_v30 = vpop.eup %4998  ;;  %5016 = vpow2.f32 %v3969_v12  ;;  %v3623_v21 = vadd.f32 %v3607_v41, %v3591_v62  ;;  %v3592_v20 = vmul.f32 %v4997_v51, %v3576_v33 }
 0x76b   : > { %v5001_v4 = vpop.eup %5000  ;;  %5018 = vrcp.f32 %v3484_v40  ;;  %v3547_v31 = vadd.f32 %v3531_v60, %v3301_v1  ;;  %v3532_v13 = vmul.f32 %v4999_v30, %v3307_v39 }
 0x76c   : > { %3639 = vst [vmem:[#allocation8 + $0x30] sm:$0xff] %v3623_v21  ;;  %v3624_v47 = vadd.f32 %v3608_v28, %v3592_v20  ;;  %v5003_v37 = vpop.eup %5002  ;;  %v3486_v7 = vadd.f32 1.0, %v5001_v4 }
 0x76d   : > { %5020 = vtanh.f32 %v3547_v31  ;;  %v3548_v58 = vadd.f32 %v3532_v13, %v3305_v56  ;;  %v3310_v38 = vpop.f32.mrb[152].mxu1  ;;  %v5005_v2 = vpop.eup %5004  ;;  %v3578_v36 = vsub.f32 1.0, %v5003_v37  ;;  %v3610_v55 = vmul.f32 %v5003_v37, %v6354_v18 }
 0x76e   : > { %5022 = vrcp.f32 %v3391_v35  ;;  %3640 = vst [vmem:[#allocation8 + $0x38] sm:$0xff] %v3624_v47  ;;  %v3312_v6 = vpop.f32.mrb[153].mxu1  ;;  %v3311_v14 = vadd.f32 %v3310_v38, %v6202_v50  ;;  %v3487_v61 = vadd.f32 1.0, %v5005_v2  ;;  %v6821_v2 = vld [vmem:[#allocation13_spill] sm:$0xff] }
 0x76f   : > { %v5007_v27 = vpop.eup %5006  ;;  %5024 = vtanh.f32 %v3548_v58  ;;  %v3313_v48 = vadd.f32 %v3312_v6, %v6199_v15  ;;  %v3314_v29 = vpop.f32.mrb[154].mxu1 }
 0x770   : > { %v5009_v45 = vpop.eup %5008  ;;  %5026 = vrcp.f32 %v3392_v19  ;;  %v3593_v63 = vmul.f32 %v5007_v27, %v3577_v32  ;;  %v3316_v53 = vpop.f32.mrb[155].mxu1  ;;  %v3315_v25 = vadd.f32 %v3314_v29, %v6202_v50 }
 0x771   : > { %v5011_v9 = vpop.eup %5010  ;;  %5028 = vrcp.f32 %v3485_v17  ;;  %v3533_v42 = vmul.f32 %v5009_v45, %v3313_v48  ;;  %v3317_v54 = vadd.f32 %v3316_v53, %v6199_v15 }
 0x772   : > { %v5013_v8 = vpop.eup %5012  ;;  %v3625_v5 = vadd.f32 %v3609_v23, %v3593_v63  ;;  %v3594_v26 = vmul.f32 %v5011_v9, %v3578_v36  ;;  %5030 = vrcp.f32 %v3486_v7  ;;  %v6822_v23 = vld [vmem:[#allocation12_spill] sm:$0xff]  ;;  %v6823_v9 = vld [vmem:[#allocation15_spill] sm:$0xff] }
 0x773   : > { %v5015_v46 = vpop.eup %5014  ;;  %v3549_v16 = vadd.f32 %v3533_v42, %v3311_v14  ;;  %v3534_v11 = vmul.f32 %v5013_v8, %v3317_v54 }
 0x774   : > { %v5017_v22 = vpop.eup %5016  ;;  %3641 = vst [vmem:[#allocation8 + $0x40] sm:$0xff] %v3625_v5  ;;  %v3626_v52 = vadd.f32 %v3610_v55, %v3594_v26  ;;  %v3579_v43 = vsub.f32 1.0, %v5015_v46  ;;  %v3611_v33 = vmul.f32 %v5015_v46, %v6365_v10 }
 0x775   : > { %v5019_v57 = vpop.eup %5018  ;;  %5032 = vtanh.f32 %v3549_v16  ;;  %v3550_v12 = vadd.f32 %v3534_v11, %v3315_v25  ;;  %v3320_v49 = vpop.f32.mrb[156].mxu1  ;;  %v3488_v40 = vadd.f32 1.0, %v5017_v22 }
 0x776   : > { %3642 = vst [vmem:[#allocation8 + $0x48] sm:$0xff] %v3626_v52  ;;  %v3322_v41 = vpop.f32.mrb[157].mxu1  ;;  %v3580_v28 = vsub.f32 1.0, %v5019_v57  ;;  %v3321_v1 = vadd.f32 %v3320_v49, %v6202_v50  ;;  %v3612_v35 = vmul.f32 %v5019_v57, %v6368_v44 }
 0x777   : > { %v5021_v18 = vpop.eup %5020  ;;  %5034 = vtanh.f32 %v3550_v12  ;;  %v3323_v3 = vadd.f32 %v3322_v41, %v6199_v15  ;;  %v3324_v24 = vpop.f32.mrb[158].mxu1 }
 0x778   : > { %v5023_v34 = vpop.eup %5022  ;;  %v3595_v62 = vmul.f32 %v5021_v18, %v3579_v43  ;;  %v3326_v0 = vpop.f32.mrb[159].mxu1  ;;  %5036 = vrcp.f32 %v3487_v61  ;;  %v3325_v10 = vadd.f32 %v3324_v24, %v6202_v50 }
 0x779   : > { %v5025_v51 = vpop.eup %5024  ;;  %v3535_v60 = vmul.f32 %v5023_v34, %v3323_v3  ;;  %v3327_v39 = vadd.f32 %v3326_v0, %v6199_v15  ;;  %5038 = vrcp.f32 %v3488_v40 }
 0x77a   : > { %v5027_v30 = vpop.eup %5026  ;;  %v3627_v21 = vadd.f32 %v3611_v33, %v3595_v62  ;;  %v3596_v20 = vmul.f32 %v5025_v51, %v3580_v28 }
 0x77b   : > { %v5029_v4 = vpop.eup %5028  ;;  %v3551_v31 = vadd.f32 %v3535_v60, %v3321_v1  ;;  %v3536_v56 = vmul.f32 %v5027_v30, %v3327_v39 }
 0x77c   : > { %3643 = vst [vmem:[#allocation8 + $0x50] sm:$0xff] %v3627_v21  ;;  %v3628_v13 = vadd.f32 %v3612_v35, %v3596_v20  ;;  %v5031_v19 = vpop.eup %5030  ;;  %v3581_v37 = vsub.f32 1.0, %v5029_v4  ;;  %v3613_v15 = vmul.f32 %v5029_v4, %v6376_v59 }
 0x77d   : > { %5040 = vtanh.f32 %v3551_v31  ;;  %v3552_v47 = vadd.f32 %v3536_v56, %v3325_v10  ;;  %v3582_v44 = vsub.f32 1.0, %v5031_v19  ;;  %v3614_v32 = vmul.f32 %v5031_v19, %v6821_v2 }
 0x77e   : > { %3644 = vst [vmem:[#allocation8 + $0x58] sm:$0xff] %v3628_v13 }
 0x77f   : > { %v5033_v17 = vpop.eup %5032  ;;  %5042 = vtanh.f32 %v3552_v47 }
 0x780   : > { %v3597_v58 = vmul.f32 %v5033_v17, %v3581_v37 }
 0x781   : > { %v5035_v38 = vpop.eup %5034 }
 0x782   : > { %v3629_v6 = vadd.f32 %v3613_v15, %v3597_v58  ;;  %v3598_v27 = vmul.f32 %v5035_v38, %v3582_v44  ;;  %v5037_v50 = vpop.eup %5036 }
 0x783   : > { %v5039_v48 = vpop.eup %5038  ;;  %v3583_v29 = vsub.f32 1.0, %v5037_v50  ;;  %v3615_v36 = vmul.f32 %v5037_v50, %v6822_v23 }
 0x784   : > { %3645 = vst [vmem:[#allocation8 + $0x60] sm:$0xff] %v3629_v6  ;;  %v3630_v7 = vadd.f32 %v3614_v32, %v3598_v27  ;;  %v3584_v63 = vsub.f32 1.0, %v5039_v48  ;;  %v3616_v14 = vmul.f32 %v5039_v48, %v6823_v9 }
 0x786   : > { %3646 = vst [vmem:[#allocation8 + $0x68] sm:$0xff] %v3630_v7 }
 0x787   : > { %v5041_v45 = vpop.eup %5040 }
 0x788   : > { %v3599_v59 = vmul.f32 %v5041_v45, %v3583_v29 }
 0x789   : > { %v5043_v53 = vpop.eup %5042 }
 0x78a   : > { %v3631_v42 = vadd.f32 %v3615_v36, %v3599_v59  ;;  %v3600_v54 = vmul.f32 %v5043_v53, %v3584_v63 }
 0x78c   : > { %3647 = vst [vmem:[#allocation8 + $0x70] sm:$0xff] %v3631_v42  ;;  %v3632_v8 = vadd.f32 %v3616_v14, %v3600_v54 }
 0x78e   : > { %3648 = vst [vmem:[#allocation8 + $0x78] sm:$0xff] %v3632_v8 }
 0x78f   : > { %5226 = shalt.err (!%p5223_p3)
}
 0x790   : > { %s5227_s18 = scalar_lea.hbm %s6729_s7, 2048 }
 0x791   : > { %p5228_p5 = scmp.ne.s32.totalorder %s6729_s7, %s5227_s18  ;;  %p5233_p9 = scmp.lt.u32.totalorder %s5227_s18, %s6729_s7 }
 0x793   : > { %p5229_p10 = pnand %p5228_p5, %p4527_p6 }
 0x795   : > { %p5230_p11 = pneg %p5229_p10 }
 0x797   : > { %p5235_p8 = pnand %p5233_p9, %p5230_p11 }
 0x799   : > { %5238 = shalt.err (!%p5235_p8)
}
 0x79a   : > { %s5294_s30 = smov 128   ;;  %s5295_s9 = smov 8  }
 0x79b   : > { %4510 = dma.vmem_to_hbm [thread:$0]  (%p4527_p6), %s3656_s11, 2048, %s6729_s7, [#allocation4], %s5294_s30, %s5294_s30, %s5295_s9  }
 0x79c   : > { %5264 = dma.done.wait (%p4527_p6), [#allocation4], 2048  }
 0x79d   : > { %5266 = vsyncadd (%p4527_p6), [#allocation4], 4294965248 }
 0x79e PF: > { %p19_p13 = scmp.ge.s32.totalorder %s5357_s28, 4   ;;  %s6824_s24 = smov %s5273_s25 }
 0x79f   : > { %s6825_s25 = smov %s5277_s26  ;;  %s6826_s26 = smov %s5367_s8 }
 0x7a0   : > { %s6827_s27 = smov %s5357_s28  ;;  %21 = sbr.rel (!%p19_p13) target bundleno = 5 (0x5), region = 113 }
 0x7a7   :  { %3671 = vsyncpa [#allocation3], 1 }
 0x7a8   :  { %3673 = vsyncpa [#allocation3 + $0x1], 1 }
 0x7a9   :  { %3674 = vsyncpa [#allocation6], 1 }
 0x7aa   :  { %3676 = vsyncpa [#allocation6 + $0x1], 1 }
 0x7ab   :  { %3677 = vsyncpa [#allocation4], 1 }
 0x7ac   :  { %3679 = vsyncpa [#allocation4 + $0x1], 1 }

</bundles_post_ra>
